<compile_context>
chip_gen: v5e
topology: v5e:2x2
jax: 0.10.0
libtpu: 0.0.40
codegen_flags: <defaults>
</compile_context>

<pallas_src>
import math

import jax
import jax.numpy as jnp
from jax.experimental import pallas as pl
from jax.experimental.pallas import tpu as pltpu

SQRT_HALF = math.sqrt(0.5)


def _mxu(a, w):
    """bf16 x bf16 matmul with f32 accumulation (MXU-friendly)."""
    return jnp.dot(a.astype(jnp.bfloat16), w.astype(jnp.bfloat16),
                   preferred_element_type=jnp.float32)


def convcap_kernel(
    we0_ref,        # (Bb, T, F)     bf16   embedding-lookup output
    fc7_ref,        # (Bb, 1, NIMG)  bf16   fc7 features
    imgf_ref,       # (Bb, HW, F)    bf16   spatial features, feature-last
    w_emb1_ref, b_emb1_ref,          # (F, F) bf16, (1, F) f32
    w_imgproj_ref, b_imgproj_ref,    # (NIMG, F) bf16, (1, F) f32
    w_resproj_ref, b_resproj_ref,    # (2F, F) bf16, (1, F) f32
    w_conv_ref, b_conv_ref,          # (K*2F, 2F) bf16 (im2col layout), (1, 2F) f32
    w_attn_in_ref, b_attn_in_ref,    # (F, F) bf16, (1, F) f32
    w_attn_out_ref, b_attn_out_ref,  # (F, F) bf16 (scales folded), (1, F) f32 (scale folded)
    w_cls0_ref, b_cls0_ref,          # (F, F//2) bf16, (1, F//2) f32
    w_cls1_ref, b_cls1_ref,          # (F//2, Vp) bf16, (1, Vp) f32
    logits_ref,     # (Bb, T, Vp)  f32
    attn_ref,       # (Bb, T, HW)  f32
    xpad_scr,       # (Bb, PAD_SCR + T, 2F) bf16 scratch for the causal conv
):
    f32 = jnp.float32
    bf16 = jnp.bfloat16

    Bb, T, F = we0_ref.shape
    HW = imgf_ref.shape[1]
    Vp = logits_ref.shape[2]
    TWOF = 2 * F
    K = w_conv_ref.shape[0] // TWOF
    PAD = K - 1
    PAD_SCR = xpad_scr.shape[1] - T          # sublane-aligned (>= PAD) left pad
    rows = Bb * T

    # --- emb_1 (weight-normed Linear == plain Linear at init) ---
    wordemb = _mxu(we0_ref[...].reshape(rows, F), w_emb1_ref[...]) + b_emb1_ref[...]   # (rows, F)

    # --- imgproj + ReLU (one row per batch element) ---
    y_img = _mxu(fc7_ref[...].reshape(Bb, -1), w_imgproj_ref[...]) + b_imgproj_ref[...]
    y_img = jnp.maximum(y_img, 0.0)                                                    # (Bb, F)

    # x = concat([wordemb, y_img broadcast over time]) on the channel axis
    x = jnp.concatenate(
        [wordemb.reshape(Bb, T, F),
         jnp.broadcast_to(y_img[:, None, :], (Bb, T, F))], axis=-1)                    # (Bb, T, 2F)
    x_bf = x.astype(bf16)                                                              # cast once

    # --- resproj residual branch ---
    residual = jnp.dot(x_bf.reshape(rows, TWOF), w_resproj_ref[...],
                       preferred_element_type=f32) + b_resproj_ref[...]                # (rows, F)

    # --- causal Conv1d (left zero-pad, tail dropped) as one im2col matmul ---
    # TODO(synk): F.dropout before the conv is identity (inference mode).
    @pl.when(pl.program_id(0) == 0)
    def _zero_pad_rows():
        # Scratch persists across grid steps; the pad rows are never overwritten.
        xpad_scr[:, :PAD_SCR, :] = jnp.zeros((Bb, PAD_SCR, TWOF), bf16)

    xpad_scr[:, PAD_SCR:, :] = x_bf
    start = PAD_SCR - PAD
    x_unf = jnp.concatenate(
        [xpad_scr[:, start + k:start + k + T, :] for k in range(K)], axis=-1)          # (Bb, T, K*2F)
    conv = jnp.dot(x_unf.reshape(rows, K * TWOF), w_conv_ref[...],
                   preferred_element_type=f32) + b_conv_ref[...]                       # (rows, 2F)

    # --- GLU over the channel axis ---
    xg = conv[:, :F] * jax.nn.sigmoid(conv[:, F:])                                     # (rows, F)

    # --- AttentionLayer ---
    xa = (_mxu(xg, w_attn_in_ref[...]) + b_attn_in_ref[...] + wordemb) * SQRT_HALF     # (rows, F)
    imgf = imgf_ref[...]                                                               # (Bb, HW, F)
    scores = jax.lax.dot_general(
        xa.reshape(Bb, T, F).astype(bf16), imgf,
        (((2,), (2,)), ((0,), (0,))), preferred_element_type=f32)                      # (Bb, T, HW)
    m = jnp.max(scores, axis=-1, keepdims=True)
    p = jnp.exp(scores - m)
    attn = p * pl.reciprocal(jnp.sum(p, axis=-1, keepdims=True), approx=True)
    attn_ref[...] = attn.astype(attn_ref.dtype)

    ctx = jax.lax.dot_general(
        attn.astype(bf16), imgf,
        (((2,), (1,)), ((0,), (0,))), preferred_element_type=f32)                      # (Bb, T, F)
    # HW*sqrt(1/HW) context scale and one sqrt(0.5) are folded into w/b_attn_out.
    xa = (_mxu(ctx.reshape(rows, F), w_attn_out_ref[...]) + b_attn_out_ref[...]
          + xg * SQRT_HALF)                                                            # (rows, F)

    # --- outer residual ---
    xl = (xa + residual) * SQRT_HALF

    # --- classifiers (vocab padded to a lane-aligned width) ---
    h = _mxu(xl, w_cls0_ref[...]) + b_cls0_ref[...]                                    # (rows, F//2)
    logits = _mxu(h, w_cls1_ref[...]) + b_cls1_ref[...]                                # (rows, Vp)
    logits_ref[...] = logits.reshape(Bb, T, Vp).astype(logits_ref.dtype)


def convcap_forward(params, wordclass, imgsfc7, imgsfeats, block_batch=None):
    """Returns (logits (B, V, T), attn (B, T, fh*fw)) matching the PyTorch module."""
    B, T = wordclass.shape
    F = params["w_emb1"].shape[0]
    NIMG = params["w_imgproj"].shape[0]
    V = params["w_cls1"].shape[1]
    K = params["w_conv"].shape[0]
    _, C, fh, fw = imgsfeats.shape
    HW = fh * fw
    bf16 = jnp.bfloat16

    # Batch blocking: aim for >=128 MXU rows per grid step.
    if block_batch is None:
        block_batch = max(1, min(B, (128 + T - 1) // T))
    Bb = int(block_batch)
    Bp = ((B + Bb - 1) // Bb) * Bb
    Vp = ((V + 127) // 128) * 128
    PAD_SCR = max(8, (((K - 1) + 7) // 8) * 8)

    # Glue: embedding gather (emb_0; padding_idx row zeroed in the table),
    # layout conversion of the image features, bf16 cast, batch/vocab padding.
    wordemb0 = params["emb"][wordclass].astype(bf16)                                   # (B, T, F)
    imgf = jnp.transpose(imgsfeats.reshape(B, C, HW), (0, 2, 1)).astype(bf16)          # (B, HW, F)
    fc7 = imgsfc7[:, None, :].astype(bf16)                                             # (B, 1, NIMG)

    def pad_batch(a):
        return a if Bp == B else jnp.pad(a, ((0, Bp - B),) + ((0, 0),) * (a.ndim - 1))

    wordemb0, imgf, fc7 = pad_batch(wordemb0), pad_batch(imgf), pad_batch(fc7)

    # Host-side weight prep: bf16 matrices, im2col conv weight, folded scalar
    # scales, lane-aligned (padded) vocab dim. Biases stay f32.
    cscale = HW * math.sqrt(1.0 / HW)
    w_cls1 = jnp.pad(params["w_cls1"], ((0, 0), (0, Vp - V)))
    b_cls1 = jnp.pad(params["b_cls1"], ((0, 0), (0, Vp - V)))
    param_list = [
        params["w_emb1"].astype(bf16), params["b_emb1"],
        params["w_imgproj"].astype(bf16), params["b_imgproj"],
        params["w_resproj"].astype(bf16), params["b_resproj"],
        params["w_conv"].reshape(K * 2 * F, 2 * F).astype(bf16), params["b_conv"],
        params["w_attn_in"].astype(bf16), params["b_attn_in"],
        (params["w_attn_out"] * (cscale * SQRT_HALF)).astype(bf16),
        params["b_attn_out"] * SQRT_HALF,
        params["w_cls0"].astype(bf16), params["b_cls0"],
        w_cls1.astype(bf16), b_cls1,
    ]

    def batch_spec(shape):
        nd = len(shape)
        return pl.BlockSpec((Bb,) + tuple(shape[1:]),
                            lambda b, _nd=nd: (b,) + (0,) * (_nd - 1))

    def full_spec(shape):
        nd = len(shape)
        return pl.BlockSpec(tuple(shape), lambda b, _nd=nd: (0,) * _nd)

    in_specs = ([batch_spec(wordemb0.shape), batch_spec(fc7.shape), batch_spec(imgf.shape)]
                + [full_spec(p.shape) for p in param_list])
    out_shape = (jax.ShapeDtypeStruct((Bp, T, Vp), jnp.float32),
                 jax.ShapeDtypeStruct((Bp, T, HW), jnp.float32))
    out_specs = (batch_spec((Bp, T, Vp)), batch_spec((Bp, T, HW)))

    rows = Bp * T
    flops = 2 * rows * (F * F + 2 * F * F + K * 2 * F * 2 * F + F * F + 2 * F * HW
                        + F * F + F * (F // 2) + (F // 2) * Vp) + 2 * Bp * NIMG * F
    weight_bytes = sum(int(p.size) * p.dtype.itemsize for p in param_list)
    act_bytes = sum(int(a.size) * a.dtype.itemsize for a in (wordemb0, fc7, imgf))
    out_bytes = rows * (Vp + HW) * 4
    cost = pl.CostEstimate(flops=int(flops),
                           transcendentals=int(rows * (F + HW + 1)),
                           bytes_accessed=int(weight_bytes + act_bytes + out_bytes))

    logits_btv, attn = pl.pallas_call(
        convcap_kernel,
        grid=(Bp // Bb,),
        in_specs=in_specs,
        out_specs=out_specs,
        out_shape=out_shape,
        scratch_shapes=[pltpu.VMEM((Bb, T + PAD_SCR, 2 * F), bf16)],
        compiler_params=pltpu.CompilerParams(
            dimension_semantics=("parallel",),
            vmem_limit_bytes=64 * 1024 * 1024),
        cost_estimate=cost,
    )(wordemb0, fc7, imgf, *param_list)

    logits = jnp.transpose(logits_btv[:B, :, :V], (0, 2, 1))   # PyTorch returns (B, V, T)
    return logits, attn[:B]


def reference_forward(params, wordclass, imgsfc7, imgsfeats):
    """Pure-JAX reference mirroring the kernel's bf16-matmul / f32-accumulate policy."""
    B, T = wordclass.shape
    F = params["w_emb1"].shape[0]
    K = params["w_conv"].shape[0]
    PAD = K - 1
    _, C, fh, fw = imgsfeats.shape
    HW = fh * fw
    rows = B * T
    bf16, f32 = jnp.bfloat16, jnp.float32

    we0 = params["emb"][wordclass]
    wordemb = _mxu(we0.reshape(rows, F), params["w_emb1"]) + params["b_emb1"]
    y = jax.nn.relu(_mxu(imgsfc7, params["w_imgproj"]) + params["b_imgproj"])
    x = jnp.concatenate([wordemb.reshape(B, T, F),
                         jnp.broadcast_to(y[:, None, :], (B, T, F))], axis=-1)
    residual = _mxu(x.reshape(rows, 2 * F), params["w_resproj"]) + params["b_resproj"]

    xpad = jnp.pad(x.astype(bf16), ((0, 0), (PAD, 0), (0, 0)))
    conv = jnp.broadcast_to(params["b_conv"], (rows, 2 * F))
    for k in range(K):
        conv = conv + _mxu(xpad[:, k:k + T, :].reshape(rows, 2 * F), params["w_conv"][k])
    xg = conv[:, :F] * jax.nn.sigmoid(conv[:, F:])

    xa = (_mxu(xg, params["w_attn_in"]) + params["b_attn_in"] + wordemb) * SQRT_HALF
    imgf = jnp.transpose(imgsfeats.reshape(B, C, HW), (0, 2, 1)).astype(bf16)
    scores = jax.lax.dot_general(xa.reshape(B, T, F).astype(bf16), imgf,
                                 (((2,), (2,)), ((0,), (0,))), preferred_element_type=f32)
    attn = jax.nn.softmax(scores, axis=-1)
    ctx = jax.lax.dot_general(attn.astype(bf16), imgf,
                              (((2,), (1,)), ((0,), (0,))), preferred_element_type=f32)
    ctx = ctx * (HW * math.sqrt(1.0 / HW))
    xa = (_mxu(ctx.reshape(rows, F), params["w_attn_out"]) + params["b_attn_out"] + xg) * SQRT_HALF
    xl = (xa + residual) * SQRT_HALF
    h = _mxu(xl, params["w_cls0"]) + params["b_cls0"]
    logits = _mxu(h, params["w_cls1"]) + params["b_cls1"]
    V = params["w_cls1"].shape[1]
    return jnp.transpose(logits.reshape(B, T, V), (0, 2, 1)), attn


def init_params(key, num_wordclass, nfeats, nimgfeats, kernel_size=5, dropout=0.1):
    F, V, NIMG, K = nfeats, num_wordclass, nimgfeats, kernel_size
    ks = jax.random.split(key, 10)
    zeros = lambda *s: jnp.zeros(s, jnp.float32)

    emb = 0.1 * jax.random.normal(ks[0], (V, F), jnp.float32)
    emb = emb.at[0].set(0.0)                                # padding_idx=0

    def lin(k, d_in, d_out, drop):
        std = math.sqrt((1.0 - drop) / d_in)
        return std * jax.random.normal(k, (d_in, d_out), jnp.float32)

    conv_std = math.sqrt(4.0 * (1.0 - dropout) / (K * 2 * F))
    return {
        "emb": emb,
        "w_emb1": lin(ks[1], F, F, dropout), "b_emb1": zeros(1, F),
        "w_imgproj": lin(ks[2], NIMG, F, dropout), "b_imgproj": zeros(1, F),
        "w_resproj": lin(ks[3], 2 * F, F, dropout), "b_resproj": zeros(1, F),
        "w_conv": conv_std * jax.random.normal(ks[4], (K, 2 * F, 2 * F), jnp.float32),
        "b_conv": zeros(1, 2 * F),
        "w_attn_in": lin(ks[5], F, F, 0.0), "b_attn_in": zeros(1, F),
        "w_attn_out": lin(ks[6], F, F, 0.0), "b_attn_out": zeros(1, F),
        "w_cls0": lin(ks[7], F, F // 2, 0.0), "b_cls0": zeros(1, F // 2),
        "w_cls1": lin(ks[8], F // 2, V, dropout), "b_cls1": zeros(1, V),
    }


if __name__ == "__main__":
    B, T = 4, 8
    nfeats = 128        # stands in for 512 (multiple of 128 for lane alignment)
    nimgfeats = 256     # stands in for 2048
    num_wordclass = 160 # exercises the vocab lane-padding path (Vp = 256)
    fh = fw = 4

    key = jax.random.PRNGKey(0)
    k_p, k_w, k_fc, k_im = jax.random.split(key, 4)

    params = init_params(k_p, num_wordclass, nfeats, nimgfeats)
    wordclass = jax.random.randint(k_w, (B, T), 0, num_wordclass, jnp.int32)
    imgsfc7 = jax.random.normal(k_fc, (B, nimgfeats), jnp.float32)
    imgsfeats = jax.random.normal(k_im, (B, nfeats, fh, fw), jnp.float32)

    logits, attn = jax.block_until_ready(
        convcap_forward(params, wordclass, imgsfc7, imgsfeats))

    ref_logits, ref_attn = reference_forward(params, wordclass, imgsfc7, imgsfeats)
    assert logits.shape == (B, num_wordclass, T)
    assert attn.shape == (B, T, fh * fw)
    # bf16 MXU pipeline + approximate softmax reciprocal + host-folded scalar
    # scales -> tolerances are set accordingly (structural errors are O(1)).
    assert jnp.allclose(logits, ref_logits, atol=5e-2, rtol=5e-2), \
        float(jnp.max(jnp.abs(logits - ref_logits)))
    assert jnp.allclose(attn, ref_attn, atol=1e-2), \
        float(jnp.max(jnp.abs(attn - ref_attn)))

    print("KERNEL_OK")
</pallas_src>

<mosaic_0001>
module attributes {stable_mosaic.version = 11 : i64} {
  func.func @convcap_kernel(%arg0: i32, %arg1: memref<4x8x128xbf16, #tpu.memory_space<vmem>>, %arg2: memref<4x1x256xbf16, #tpu.memory_space<vmem>>, %arg3: memref<4x16x128xbf16, #tpu.memory_space<vmem>>, %arg4: memref<128x128xbf16, #tpu.memory_space<vmem>>, %arg5: memref<1x128xf32, #tpu.memory_space<vmem>>, %arg6: memref<256x128xbf16, #tpu.memory_space<vmem>>, %arg7: memref<1x128xf32, #tpu.memory_space<vmem>>, %arg8: memref<256x128xbf16, #tpu.memory_space<vmem>>, %arg9: memref<1x128xf32, #tpu.memory_space<vmem>>, %arg10: memref<1280x256xbf16, #tpu.memory_space<vmem>>, %arg11: memref<1x256xf32, #tpu.memory_space<vmem>>, %arg12: memref<128x128xbf16, #tpu.memory_space<vmem>>, %arg13: memref<1x128xf32, #tpu.memory_space<vmem>>, %arg14: memref<128x128xbf16, #tpu.memory_space<vmem>>, %arg15: memref<1x128xf32, #tpu.memory_space<vmem>>, %arg16: memref<128x64xbf16, #tpu.memory_space<vmem>>, %arg17: memref<1x64xf32, #tpu.memory_space<vmem>>, %arg18: memref<64x256xbf16, #tpu.memory_space<vmem>>, %arg19: memref<1x256xf32, #tpu.memory_space<vmem>>, %arg20: memref<4x8x256xf32, #tpu.memory_space<vmem>>, %arg21: memref<4x8x16xf32, #tpu.memory_space<vmem>>, %arg22: memref<4x16x256xbf16, #tpu.memory_space<vmem>>) attributes {dimension_semantics = [#tpu.dimension_semantics<parallel>], iteration_bounds = array<i64: 1>, scalar_prefetch = 0 : i64, scratch_operands = 1 : i64, tpu.core_type = #tpu.core_type<tc>, window_params = [{transform_indices = @transform_0, window_bounds = array<i64: 4, 8, 128>}, {transform_indices = @transform_1, window_bounds = array<i64: 4, 1, 256>}, {transform_indices = @transform_2, window_bounds = array<i64: 4, 16, 128>}, {pipeline_mode = #tpu.pipeline_mode<synchronous>, transform_indices = @transform_3, window_bounds = array<i64: 128, 128>}, {pipeline_mode = #tpu.pipeline_mode<synchronous>, transform_indices = @transform_4, window_bounds = array<i64: 1, 128>}, {pipeline_mode = #tpu.pipeline_mode<synchronous>, transform_indices = @transform_5, window_bounds = array<i64: 256, 128>}, {pipeline_mode = #tpu.pipeline_mode<synchronous>, transform_indices = @transform_6, window_bounds = array<i64: 1, 128>}, {pipeline_mode = #tpu.pipeline_mode<synchronous>, transform_indices = @transform_7, window_bounds = array<i64: 256, 128>}, {pipeline_mode = #tpu.pipeline_mode<synchronous>, transform_indices = @transform_8, window_bounds = array<i64: 1, 128>}, {pipeline_mode = #tpu.pipeline_mode<synchronous>, transform_indices = @transform_9, window_bounds = array<i64: 1280, 256>}, {pipeline_mode = #tpu.pipeline_mode<synchronous>, transform_indices = @transform_10, window_bounds = array<i64: 1, 256>}, {pipeline_mode = #tpu.pipeline_mode<synchronous>, transform_indices = @transform_11, window_bounds = array<i64: 128, 128>}, {pipeline_mode = #tpu.pipeline_mode<synchronous>, transform_indices = @transform_12, window_bounds = array<i64: 1, 128>}, {pipeline_mode = #tpu.pipeline_mode<synchronous>, transform_indices = @transform_13, window_bounds = array<i64: 128, 128>}, {pipeline_mode = #tpu.pipeline_mode<synchronous>, transform_indices = @transform_14, window_bounds = array<i64: 1, 128>}, {pipeline_mode = #tpu.pipeline_mode<synchronous>, transform_indices = @transform_15, window_bounds = array<i64: 128, 64>}, {pipeline_mode = #tpu.pipeline_mode<synchronous>, transform_indices = @transform_16, window_bounds = array<i64: 1, 64>}, {pipeline_mode = #tpu.pipeline_mode<synchronous>, transform_indices = @transform_17, window_bounds = array<i64: 64, 256>}, {pipeline_mode = #tpu.pipeline_mode<synchronous>, transform_indices = @transform_18, window_bounds = array<i64: 1, 256>}, {transform_indices = @transform_19, window_bounds = array<i64: 4, 8, 256>}, {transform_indices = @transform_20, window_bounds = array<i64: 4, 8, 16>}]} {
    %c0 = arith.constant 0 : index
    %c0_0 = arith.constant 0 : index
    %c0_1 = arith.constant 0 : index
    %0 = vector.load %arg1[%c0, %c0_0, %c0_1] : memref<4x8x128xbf16, #tpu.memory_space<vmem>>, vector<4x8x128xbf16>
    %1 = vector.shape_cast %0 : vector<4x8x128xbf16> to vector<32x128xbf16>
    %c0_2 = arith.constant 0 : index
    %c0_3 = arith.constant 0 : index
    %2 = vector.load %arg4[%c0_2, %c0_3] : memref<128x128xbf16, #tpu.memory_space<vmem>>, vector<128x128xbf16>
    %cst = arith.constant dense<0.000000e+00> : vector<32x128xf32>
    %3 = tpu.matmul %1, %2, %cst {dimension_numbers = #tpu.dot_dimension_numbers<[1], [0], [0], [1], [0, 0, 1, 1], [], []>} : vector<32x128xbf16>, vector<128x128xbf16>, vector<32x128xf32> -> vector<32x128xf32>
    %c0_4 = arith.constant 0 : index
    %c0_5 = arith.constant 0 : index
    %4 = vector.load %arg5[%c0_4, %c0_5] : memref<1x128xf32, #tpu.memory_space<vmem>>, vector<1x128xf32>
    %5 = vector.broadcast %4 : vector<1x128xf32> to vector<32x128xf32>
    %6 = arith.addf %3, %5 : vector<32x128xf32>
    %c0_6 = arith.constant 0 : index
    %c0_7 = arith.constant 0 : index
    %c0_8 = arith.constant 0 : index
    %7 = vector.load %arg2[%c0_6, %c0_7, %c0_8] : memref<4x1x256xbf16, #tpu.memory_space<vmem>>, vector<4x1x256xbf16>
    %8 = vector.shape_cast %7 : vector<4x1x256xbf16> to vector<4x256xbf16>
    %c0_9 = arith.constant 0 : index
    %c0_10 = arith.constant 0 : index
    %9 = vector.load %arg6[%c0_9, %c0_10] : memref<256x128xbf16, #tpu.memory_space<vmem>>, vector<256x128xbf16>
    %cst_11 = arith.constant dense<0.000000e+00> : vector<4x128xf32>
    %10 = tpu.matmul %8, %9, %cst_11 {dimension_numbers = #tpu.dot_dimension_numbers<[1], [0], [0], [1], [0, 0, 1, 1], [], []>} : vector<4x256xbf16>, vector<256x128xbf16>, vector<4x128xf32> -> vector<4x128xf32>
    %c0_12 = arith.constant 0 : index
    %c0_13 = arith.constant 0 : index
    %11 = vector.load %arg7[%c0_12, %c0_13] : memref<1x128xf32, #tpu.memory_space<vmem>>, vector<1x128xf32>
    %12 = vector.broadcast %11 : vector<1x128xf32> to vector<4x128xf32>
    %13 = arith.addf %10, %12 : vector<4x128xf32>
    %cst_14 = arith.constant 0.000000e+00 : f32
    %14 = vector.broadcast %cst_14 : f32 to vector<4x128xf32>
    %15 = arith.maximumf %13, %14 : vector<4x128xf32>
    %16 = vector.shape_cast %6 : vector<32x128xf32> to vector<4x8x128xf32>
    %17 = vector.shape_cast %15 : vector<4x128xf32> to vector<4x1x128xf32>
    %18 = vector.shape_cast %17 : vector<4x1x128xf32> to vector<4x1x128xf32>
    %19 = vector.broadcast %18 : vector<4x1x128xf32> to vector<4x8x128xf32>
    %20 = tpu.concatenate %16, %19 in 2 : vector<4x8x128xf32>, vector<4x8x128xf32> -> vector<4x8x256xf32>
    %21 = arith.truncf %20 : vector<4x8x256xf32> to vector<4x8x256xbf16>
    %22 = vector.shape_cast %21 : vector<4x8x256xbf16> to vector<32x256xbf16>
    %c0_15 = arith.constant 0 : index
    %c0_16 = arith.constant 0 : index
    %23 = vector.load %arg8[%c0_15, %c0_16] : memref<256x128xbf16, #tpu.memory_space<vmem>>, vector<256x128xbf16>
    %cst_17 = arith.constant dense<0.000000e+00> : vector<32x128xf32>
    %24 = tpu.matmul %22, %23, %cst_17 {dimension_numbers = #tpu.dot_dimension_numbers<[1], [0], [0], [1], [0, 0, 1, 1], [], []>} : vector<32x256xbf16>, vector<256x128xbf16>, vector<32x128xf32> -> vector<32x128xf32>
    %c0_18 = arith.constant 0 : index
    %c0_19 = arith.constant 0 : index
    %25 = vector.load %arg9[%c0_18, %c0_19] : memref<1x128xf32, #tpu.memory_space<vmem>>, vector<1x128xf32>
    %26 = vector.broadcast %25 : vector<1x128xf32> to vector<32x128xf32>
    %27 = arith.addf %24, %26 : vector<32x128xf32>
    %c0_i32 = arith.constant 0 : i32
    %28 = arith.cmpi eq, %arg0, %c0_i32 : i32
    %29 = arith.extui %28 : i1 to i32
    %c0_i32_20 = arith.constant 0 : i32
    %30 = arith.cmpi ne, %29, %c0_i32_20 : i32
    scf.if %30 {
      %cst_76 = arith.constant 0.000000e+00 : bf16
      %105 = vector.broadcast %cst_76 : bf16 to vector<4x8x256xbf16>
      %c0_77 = arith.constant 0 : index
      %c0_78 = arith.constant 0 : index
      %c0_79 = arith.constant 0 : index
      %106 = vector.load %arg22[%c0_77, %c0_78, %c0_79] : memref<4x16x256xbf16, #tpu.memory_space<vmem>>, vector<4x8x256xbf16>
      tpu.vector_store %arg22[%c0_77, %c0_78, %c0_79], %105 {strides = array<i32>} : memref<4x16x256xbf16, #tpu.memory_space<vmem>>, vector<4x8x256xbf16>,
    } else {
    }
    %c0_21 = arith.constant 0 : index
    %c8 = arith.constant 8 : index
    %c0_22 = arith.constant 0 : index
    %31 = vector.load %arg22[%c0_21, %c8, %c0_22] : memref<4x16x256xbf16, #tpu.memory_space<vmem>>, vector<4x8x256xbf16>
    tpu.vector_store %arg22[%c0_21, %c8, %c0_22], %21 {strides = array<i32>} : memref<4x16x256xbf16, #tpu.memory_space<vmem>>, vector<4x8x256xbf16>,
    %c0_23 = arith.constant 0 : index
    %c4 = arith.constant 4 : index
    %c0_24 = arith.constant 0 : index
    %32 = vector.load %arg22[%c0_23, %c4, %c0_24] : memref<4x16x256xbf16, #tpu.memory_space<vmem>>, vector<4x8x256xbf16>
    %c0_25 = arith.constant 0 : index
    %c5 = arith.constant 5 : index
    %c0_26 = arith.constant 0 : index
    %33 = vector.load %arg22[%c0_25, %c5, %c0_26] : memref<4x16x256xbf16, #tpu.memory_space<vmem>>, vector<4x8x256xbf16>
    %c0_27 = arith.constant 0 : index
    %c6 = arith.constant 6 : index
    %c0_28 = arith.constant 0 : index
    %34 = vector.load %arg22[%c0_27, %c6, %c0_28] : memref<4x16x256xbf16, #tpu.memory_space<vmem>>, vector<4x8x256xbf16>
    %c0_29 = arith.constant 0 : index
    %c7 = arith.constant 7 : index
    %c0_30 = arith.constant 0 : index
    %35 = vector.load %arg22[%c0_29, %c7, %c0_30] : memref<4x16x256xbf16, #tpu.memory_space<vmem>>, vector<4x8x256xbf16>
    %c0_31 = arith.constant 0 : index
    %c8_32 = arith.constant 8 : index
    %c0_33 = arith.constant 0 : index
    %36 = vector.load %arg22[%c0_31, %c8_32, %c0_33] : memref<4x16x256xbf16, #tpu.memory_space<vmem>>, vector<4x8x256xbf16>
    %37 = tpu.concatenate %32, %33, %34, %35, %36 in 2 : vector<4x8x256xbf16>, vector<4x8x256xbf16>, vector<4x8x256xbf16>, vector<4x8x256xbf16>, vector<4x8x256xbf16> -> vector<4x8x1280xbf16>
    %38 = vector.shape_cast %37 : vector<4x8x1280xbf16> to vector<32x1280xbf16>
    %c0_34 = arith.constant 0 : index
    %c0_35 = arith.constant 0 : index
    %39 = vector.load %arg10[%c0_34, %c0_35] : memref<1280x256xbf16, #tpu.memory_space<vmem>>, vector<1280x256xbf16>
    %cst_36 = arith.constant dense<0.000000e+00> : vector<32x256xf32>
    %40 = tpu.matmul %38, %39, %cst_36 {dimension_numbers = #tpu.dot_dimension_numbers<[1], [0], [0], [1], [0, 0, 1, 1], [], []>} : vector<32x1280xbf16>, vector<1280x256xbf16>, vector<32x256xf32> -> vector<32x256xf32>
    %c0_37 = arith.constant 0 : index
    %c0_38 = arith.constant 0 : index
    %41 = vector.load %arg11[%c0_37, %c0_38] : memref<1x256xf32, #tpu.memory_space<vmem>>, vector<1x256xf32>
    %42 = vector.broadcast %41 : vector<1x256xf32> to vector<32x256xf32>
    %43 = arith.addf %40, %42 : vector<32x256xf32>
    %44 = vector.extract_strided_slice %43 {offsets = [0, 0], sizes = [32, 128], strides = [1, 1]} : vector<32x256xf32> to vector<32x128xf32>
    %45 = vector.extract_strided_slice %43 {offsets = [0, 128], sizes = [32, 128], strides = [1, 1]} : vector<32x256xf32> to vector<32x128xf32>
    %46 = arith.negf %45 : vector<32x128xf32>
    %47 = math.exp %46 : vector<32x128xf32>
    %cst_39 = arith.constant 1.000000e+00 : f32
    %48 = vector.broadcast %cst_39 : f32 to vector<32x128xf32>
    %49 = arith.addf %48, %47 : vector<32x128xf32>
    %50 = arith.divf %48, %49 : vector<32x128xf32>
    %51 = arith.mulf %44, %50 : vector<32x128xf32>
    %c0_40 = arith.constant 0 : index
    %c0_41 = arith.constant 0 : index
    %52 = vector.load %arg12[%c0_40, %c0_41] : memref<128x128xbf16, #tpu.memory_space<vmem>>, vector<128x128xbf16>
    %53 = arith.truncf %51 : vector<32x128xf32> to vector<32x128xbf16>
    %cst_42 = arith.constant dense<0.000000e+00> : vector<32x128xf32>
    %54 = tpu.matmul %53, %52, %cst_42 {dimension_numbers = #tpu.dot_dimension_numbers<[1], [0], [0], [1], [0, 0, 1, 1], [], []>} : vector<32x128xbf16>, vector<128x128xbf16>, vector<32x128xf32> -> vector<32x128xf32>
    %c0_43 = arith.constant 0 : index
    %c0_44 = arith.constant 0 : index
    %55 = vector.load %arg13[%c0_43, %c0_44] : memref<1x128xf32, #tpu.memory_space<vmem>>, vector<1x128xf32>
    %56 = vector.broadcast %55 : vector<1x128xf32> to vector<32x128xf32>
    %57 = arith.addf %54, %56 : vector<32x128xf32>
    %58 = arith.addf %57, %6 : vector<32x128xf32>
    %cst_45 = arith.constant 0.707106769 : f32
    %59 = vector.broadcast %cst_45 : f32 to vector<32x128xf32>
    %60 = arith.mulf %58, %59 : vector<32x128xf32>
    %c0_46 = arith.constant 0 : index
    %c0_47 = arith.constant 0 : index
    %c0_48 = arith.constant 0 : index
    %61 = vector.load %arg3[%c0_46, %c0_47, %c0_48] : memref<4x16x128xbf16, #tpu.memory_space<vmem>>, vector<4x16x128xbf16>
    %62 = vector.shape_cast %60 : vector<32x128xf32> to vector<4x8x128xf32>
    %63 = arith.truncf %62 : vector<4x8x128xf32> to vector<4x8x128xbf16>
    %cst_49 = arith.constant dense<0.000000e+00> : vector<4x8x16xf32>
    %64 = tpu.matmul %63, %61, %cst_49 {dimension_numbers = #tpu.dot_dimension_numbers<[2], [2], [1], [1], [0, 0, 0, 1, 1, 1], [0], [0]>} : vector<4x8x128xbf16>, vector<4x16x128xbf16>, vector<4x8x16xf32> -> vector<4x8x16xf32>
    %cst_50 = arith.constant dense<0xFF800000> : vector<4x8xf32>
    %65 = vector.multi_reduction <maximumf>, %64, %cst_50 [2] : vector<4x8x16xf32> to vector<4x8xf32>
    %66 = vector.shape_cast %65 : vector<4x8xf32> to vector<4x8x1xf32>
    %67 = vector.broadcast %66 : vector<4x8x1xf32> to vector<4x8x16xf32>
    %68 = arith.subf %64, %67 : vector<4x8x16xf32>
    %69 = math.exp %68 : vector<4x8x16xf32>
    %cst_51 = arith.constant dense<0.000000e+00> : vector<4x8xf32>
    %70 = vector.multi_reduction <add>, %69, %cst_51 [2] : vector<4x8x16xf32> to vector<4x8xf32>
    %71 = vector.shape_cast %70 : vector<4x8xf32> to vector<4x8x1xf32>
    %72 = tpu.reciprocal %71 {approx = true} : vector<4x8x1xf32> -> vector<4x8x1xf32>
    %73 = vector.broadcast %72 : vector<4x8x1xf32> to vector<4x8x16xf32>
    %74 = arith.mulf %69, %73 : vector<4x8x16xf32>
    %c0_52 = arith.constant 0 : index
    %c0_53 = arith.constant 0 : index
    %c0_54 = arith.constant 0 : index
    %75 = vector.load %arg21[%c0_52, %c0_53, %c0_54] : memref<4x8x16xf32, #tpu.memory_space<vmem>>, vector<4x8x16xf32>
    tpu.vector_store %arg21[%c0_52, %c0_53, %c0_54], %74 {strides = array<i32>} : memref<4x8x16xf32, #tpu.memory_space<vmem>>, vector<4x8x16xf32>,
    %76 = arith.truncf %74 : vector<4x8x16xf32> to vector<4x8x16xbf16>
    %cst_55 = arith.constant dense<0.000000e+00> : vector<4x8x128xf32>
    %77 = tpu.matmul %76, %61, %cst_55 {dimension_numbers = #tpu.dot_dimension_numbers<[2], [1], [1], [2], [0, 0, 0, 1, 1, 2], [0], [0]>} : vector<4x8x16xbf16>, vector<4x16x128xbf16>, vector<4x8x128xf32> -> vector<4x8x128xf32>
    %78 = vector.shape_cast %77 : vector<4x8x128xf32> to vector<32x128xf32>
    %c0_56 = arith.constant 0 : index
    %c0_57 = arith.constant 0 : index
    %79 = vector.load %arg14[%c0_56, %c0_57] : memref<128x128xbf16, #tpu.memory_space<vmem>>, vector<128x128xbf16>
    %80 = arith.truncf %78 : vector<32x128xf32> to vector<32x128xbf16>
    %cst_58 = arith.constant dense<0.000000e+00> : vector<32x128xf32>
    %81 = tpu.matmul %80, %79, %cst_58 {dimension_numbers = #tpu.dot_dimension_numbers<[1], [0], [0], [1], [0, 0, 1, 1], [], []>} : vector<32x128xbf16>, vector<128x128xbf16>, vector<32x128xf32> -> vector<32x128xf32>
    %c0_59 = arith.constant 0 : index
    %c0_60 = arith.constant 0 : index
    %82 = vector.load %arg15[%c0_59, %c0_60] : memref<1x128xf32, #tpu.memory_space<vmem>>, vector<1x128xf32>
    %83 = vector.broadcast %82 : vector<1x128xf32> to vector<32x128xf32>
    %84 = arith.addf %81, %83 : vector<32x128xf32>
    %cst_61 = arith.constant 0.707106769 : f32
    %85 = vector.broadcast %cst_61 : f32 to vector<32x128xf32>
    %86 = arith.mulf %51, %85 : vector<32x128xf32>
    %87 = arith.addf %84, %86 : vector<32x128xf32>
    %88 = arith.addf %87, %27 : vector<32x128xf32>
    %cst_62 = arith.constant 0.707106769 : f32
    %89 = vector.broadcast %cst_62 : f32 to vector<32x128xf32>
    %90 = arith.mulf %88, %89 : vector<32x128xf32>
    %c0_63 = arith.constant 0 : index
    %c0_64 = arith.constant 0 : index
    %91 = vector.load %arg16[%c0_63, %c0_64] : memref<128x64xbf16, #tpu.memory_space<vmem>>, vector<128x64xbf16>
    %92 = arith.truncf %90 : vector<32x128xf32> to vector<32x128xbf16>
    %cst_65 = arith.constant dense<0.000000e+00> : vector<32x64xf32>
    %93 = tpu.matmul %92, %91, %cst_65 {dimension_numbers = #tpu.dot_dimension_numbers<[1], [0], [0], [1], [0, 0, 1, 1], [], []>} : vector<32x128xbf16>, vector<128x64xbf16>, vector<32x64xf32> -> vector<32x64xf32>
    %c0_66 = arith.constant 0 : index
    %c0_67 = arith.constant 0 : index
    %94 = vector.load %arg17[%c0_66, %c0_67] : memref<1x64xf32, #tpu.memory_space<vmem>>, vector<1x64xf32>
    %95 = vector.broadcast %94 : vector<1x64xf32> to vector<32x64xf32>
    %96 = arith.addf %93, %95 : vector<32x64xf32>
    %c0_68 = arith.constant 0 : index
    %c0_69 = arith.constant 0 : index
    %97 = vector.load %arg18[%c0_68, %c0_69] : memref<64x256xbf16, #tpu.memory_space<vmem>>, vector<64x256xbf16>
    %98 = arith.truncf %96 : vector<32x64xf32> to vector<32x64xbf16>
    %cst_70 = arith.constant dense<0.000000e+00> : vector<32x256xf32>
    %99 = tpu.matmul %98, %97, %cst_70 {dimension_numbers = #tpu.dot_dimension_numbers<[1], [0], [0], [1], [0, 0, 1, 1], [], []>} : vector<32x64xbf16>, vector<64x256xbf16>, vector<32x256xf32> -> vector<32x256xf32>
    %c0_71 = arith.constant 0 : index
    %c0_72 = arith.constant 0 : index
    %100 = vector.load %arg19[%c0_71, %c0_72] : memref<1x256xf32, #tpu.memory_space<vmem>>, vector<1x256xf32>
    %101 = vector.broadcast %100 : vector<1x256xf32> to vector<32x256xf32>
    %102 = arith.addf %99, %101 : vector<32x256xf32>
    %103 = vector.shape_cast %102 : vector<32x256xf32> to vector<4x8x256xf32>
    %c0_73 = arith.constant 0 : index
    %c0_74 = arith.constant 0 : index
    %c0_75 = arith.constant 0 : index
    %104 = vector.load %arg20[%c0_73, %c0_74, %c0_75] : memref<4x8x256xf32, #tpu.memory_space<vmem>>, vector<4x8x256xf32>
    tpu.vector_store %arg20[%c0_73, %c0_74, %c0_75], %103 {strides = array<i32>} : memref<4x8x256xf32, #tpu.memory_space<vmem>>, vector<4x8x256xf32>,
    return
  }
  func.func @transform_0(%arg0: i32) -> (i32, i32, i32) {
    %c0_i32 = arith.constant 0 : i32
    %c0_i32_0 = arith.constant 0 : i32
    %c0_i32_1 = arith.constant 0 : i32
    return %arg0, %c0_i32, %c0_i32_0 : i32, i32, i32
  }
  func.func @transform_1(%arg0: i32) -> (i32, i32, i32) {
    %c0_i32 = arith.constant 0 : i32
    %c0_i32_0 = arith.constant 0 : i32
    %c0_i32_1 = arith.constant 0 : i32
    return %arg0, %c0_i32, %c0_i32_0 : i32, i32, i32
  }
  func.func @transform_2(%arg0: i32) -> (i32, i32, i32) {
    %c0_i32 = arith.constant 0 : i32
    %c0_i32_0 = arith.constant 0 : i32
    %c0_i32_1 = arith.constant 0 : i32
    return %arg0, %c0_i32, %c0_i32_0 : i32, i32, i32
  }
  func.func @transform_3(%arg0: i32) -> (i32, i32) {
    %c0_i32 = arith.constant 0 : i32
    %c0_i32_0 = arith.constant 0 : i32
    %c0_i32_1 = arith.constant 0 : i32
    return %c0_i32, %c0_i32_0 : i32, i32
  }
  func.func @transform_4(%arg0: i32) -> (i32, i32) {
    %c0_i32 = arith.constant 0 : i32
    %c0_i32_0 = arith.constant 0 : i32
    %c0_i32_1 = arith.constant 0 : i32
    return %c0_i32, %c0_i32_0 : i32, i32
  }
  func.func @transform_5(%arg0: i32) -> (i32, i32) {
    %c0_i32 = arith.constant 0 : i32
    %c0_i32_0 = arith.constant 0 : i32
    %c0_i32_1 = arith.constant 0 : i32
    return %c0_i32, %c0_i32_0 : i32, i32
  }
  func.func @transform_6(%arg0: i32) -> (i32, i32) {
    %c0_i32 = arith.constant 0 : i32
    %c0_i32_0 = arith.constant 0 : i32
    %c0_i32_1 = arith.constant 0 : i32
    return %c0_i32, %c0_i32_0 : i32, i32
  }
  func.func @transform_7(%arg0: i32) -> (i32, i32) {
    %c0_i32 = arith.constant 0 : i32
    %c0_i32_0 = arith.constant 0 : i32
    %c0_i32_1 = arith.constant 0 : i32
    return %c0_i32, %c0_i32_0 : i32, i32
  }
  func.func @transform_8(%arg0: i32) -> (i32, i32) {
    %c0_i32 = arith.constant 0 : i32
    %c0_i32_0 = arith.constant 0 : i32
    %c0_i32_1 = arith.constant 0 : i32
    return %c0_i32, %c0_i32_0 : i32, i32
  }
  func.func @transform_9(%arg0: i32) -> (i32, i32) {
    %c0_i32 = arith.constant 0 : i32
    %c0_i32_0 = arith.constant 0 : i32
    %c0_i32_1 = arith.constant 0 : i32
    return %c0_i32, %c0_i32_0 : i32, i32
  }
  func.func @transform_10(%arg0: i32) -> (i32, i32) {
    %c0_i32 = arith.constant 0 : i32
    %c0_i32_0 = arith.constant 0 : i32
    %c0_i32_1 = arith.constant 0 : i32
    return %c0_i32, %c0_i32_0 : i32, i32
  }
  func.func @transform_11(%arg0: i32) -> (i32, i32) {
    %c0_i32 = arith.constant 0 : i32
    %c0_i32_0 = arith.constant 0 : i32
    %c0_i32_1 = arith.constant 0 : i32
    return %c0_i32, %c0_i32_0 : i32, i32
  }
  func.func @transform_12(%arg0: i32) -> (i32, i32) {
    %c0_i32 = arith.constant 0 : i32
    %c0_i32_0 = arith.constant 0 : i32
    %c0_i32_1 = arith.constant 0 : i32
    return %c0_i32, %c0_i32_0 : i32, i32
  }
  func.func @transform_13(%arg0: i32) -> (i32, i32) {
    %c0_i32 = arith.constant 0 : i32
    %c0_i32_0 = arith.constant 0 : i32
    %c0_i32_1 = arith.constant 0 : i32
    return %c0_i32, %c0_i32_0 : i32, i32
  }
  func.func @transform_14(%arg0: i32) -> (i32, i32) {
    %c0_i32 = arith.constant 0 : i32
    %c0_i32_0 = arith.constant 0 : i32
    %c0_i32_1 = arith.constant 0 : i32
    return %c0_i32, %c0_i32_0 : i32, i32
  }
  func.func @transform_15(%arg0: i32) -> (i32, i32) {
    %c0_i32 = arith.constant 0 : i32
    %c0_i32_0 = arith.constant 0 : i32
    %c0_i32_1 = arith.constant 0 : i32
    return %c0_i32, %c0_i32_0 : i32, i32
  }
  func.func @transform_16(%arg0: i32) -> (i32, i32) {
    %c0_i32 = arith.constant 0 : i32
    %c0_i32_0 = arith.constant 0 : i32
    %c0_i32_1 = arith.constant 0 : i32
    return %c0_i32, %c0_i32_0 : i32, i32
  }
  func.func @transform_17(%arg0: i32) -> (i32, i32) {
    %c0_i32 = arith.constant 0 : i32
    %c0_i32_0 = arith.constant 0 : i32
    %c0_i32_1 = arith.constant 0 : i32
    return %c0_i32, %c0_i32_0 : i32, i32
  }
  func.func @transform_18(%arg0: i32) -> (i32, i32) {
    %c0_i32 = arith.constant 0 : i32
    %c0_i32_0 = arith.constant 0 : i32
    %c0_i32_1 = arith.constant 0 : i32
    return %c0_i32, %c0_i32_0 : i32, i32
  }
  func.func @transform_19(%arg0: i32) -> (i32, i32, i32) {
    %c0_i32 = arith.constant 0 : i32
    %c0_i32_0 = arith.constant 0 : i32
    %c0_i32_1 = arith.constant 0 : i32
    return %arg0, %c0_i32, %c0_i32_0 : i32, i32, i32
  }
  func.func @transform_20(%arg0: i32) -> (i32, i32, i32) {
    %c0_i32 = arith.constant 0 : i32
    %c0_i32_0 = arith.constant 0 : i32
    %c0_i32_1 = arith.constant 0 : i32
    return %arg0, %c0_i32, %c0_i32_0 : i32, i32, i32
  }
}

</mosaic_0001>

<bundles_post_ra>
// kernel: tpu_custom_call.1
= control target key start
LH: loop header
LB: loop body
LE: loop exit
PB: predicated region body
PF: predicated region fallthrough
CT: control target
= control target key end

     0   :  { %s5542_s0 = inlined_call_operand.hbm [shape: bf16[4,8,128], index: 0, kind: input, shape index: {}]   ;;  %s5543_s1 = inlined_call_operand.vmem [shape: bf16[4,1,256], index: 1, kind: input, shape index: {}]   ;;  %s5544_s2 = inlined_call_operand.vmem [shape: bf16[4,16,128], index: 2, kind: input, shape index: {}]   ;;  %s5545_s3 = inlined_call_operand.vmem [shape: bf16[128,128], index: 3, kind: input, shape index: {}]   ;;  %s5546_s4 = inlined_call_operand.vmem [shape: f32[1,128], index: 4, kind: input, shape index: {}]   ;;  %s5547_s5 = inlined_call_operand.hbm [shape: bf16[256,128], index: 5, kind: input, shape index: {}]   ;;  %s5548_s6 = inlined_call_operand.vmem [shape: f32[1,128], index: 6, kind: input, shape index: {}]   ;;  %s5549_s7 = inlined_call_operand.hbm [shape: bf16[256,128], index: 7, kind: input, shape index: {}]   ;;  %s5550_s8 = inlined_call_operand.vmem [shape: f32[1,128], index: 8, kind: input, shape index: {}]   ;;  %s5551_s9 = inlined_call_operand.hbm [shape: bf16[1280,256], index: 9, kind: input, shape index: {}]   ;;  %s5552_s10 = inlined_call_operand.vmem [shape: f32[1,256], index: 10, kind: input, shape index: {}]   ;;  %s5553_s11 = inlined_call_operand.hbm [shape: bf16[128,128], index: 11, kind: input, shape index: {}]   ;;  %s5554_s12 = inlined_call_operand.vmem [shape: f32[1,128], index: 12, kind: input, shape index: {}]   ;;  %s5555_s13 = inlined_call_operand.hbm [shape: bf16[128,128], index: 13, kind: input, shape index: {}]   ;;  %s5556_s14 = inlined_call_operand.vmem [shape: f32[1,128], index: 14, kind: input, shape index: {}]   ;;  %s5557_s15 = inlined_call_operand.vmem [shape: bf16[128,64], index: 15, kind: input, shape index: {}]   ;;  %s5558_s16 = inlined_call_operand.vmem [shape: f32[1,64], index: 16, kind: input, shape index: {}]   ;;  %s5559_s17 = inlined_call_operand.hbm [shape: bf16[64,256], index: 17, kind: input, shape index: {}]   ;;  %s5560_s18 = inlined_call_operand.vmem [shape: f32[1,256], index: 18, kind: input, shape index: {}]   ;;  %s5561_s19 = inlined_call_operand.hbm [shape: f32[4,8,256], index: 19, kind: output, shape index: {0}]   ;;  %s5562_s20 = inlined_call_operand.hbm [shape: f32[4,8,16], index: 20, kind: output, shape index: {1}]  }
   0x1   :  { %5574 = sst [smem:[#allocation26_spill]] %s5542_s0 }
   0x2   :  { %5575 = sst [smem:[#allocation27_spill]] %s5543_s1 }
   0x3   :  { %5576 = sst [smem:[#allocation28_spill]] %s5544_s2 }
   0x4   :  { %5577 = sst [smem:[#allocation29_spill]] %s5545_s3 }
   0x5   :  { %5578 = sst [smem:[#allocation30_spill]] %s5546_s4 }
   0x6   :  { %26 = vsyncpa [#allocation4], 0 }
   0x7   :  { %27 = vsyncpa [#allocation7], 0 }
   0x8   :  { %28 = vsyncpa [#allocation10], 0 }
   0x9   :  { %29 = vsyncpa [#allocation13], 0 }
   0xa   :  { %30 = vsyncpa [#allocation5], 0 }
   0xb   :  { %31 = vsyncpa [#allocation17], 0  ;;  %s57_s23 = sshll.u32 %s5547_s5, 4  ;;  %s4802_s24 = smov [#allocation6]   ;;  %s58_s23 = int_to_ptr.hbm [resolvable:$true] %s57_s23 }
   0xc   :  { %s59_s2 = sshll.u32 %s4802_s24, 4  ;;  %s87_s26 = sshll.u32 %s5551_s9, 4  ;;  %s60_s2 = int_to_ptr.vmem [resolvable:$true] %s59_s2  ;;  %s88_s26 = int_to_ptr.hbm [resolvable:$true] %s87_s26 }
   0xd   :  { %s4803_s27 = smov 64   ;;  %s4804_s28 = smov 4  }
   0xe   :  { %65 = dma.hbm_to_vmem [thread:$0]  %s58_s23, 2048, %s60_s2, [#allocation7], %s4803_s27, %s4803_s27, %s4804_s28  }
   0xf   :  { %s4805_s4 = smov [#allocation9]   ;;  %s4806_s30 = smov 128  }
  0x10   :  { %s89_s29 = sshll.u32 %s4805_s4, 4  ;;  %s4807_s5 = smov 8   ;;  %s90_s29 = int_to_ptr.vmem [resolvable:$true] %s89_s29 }
  0x11   :  { %95 = dma.hbm_to_vmem [thread:$0]  %s88_s26, 20480, %s90_s29, [#allocation10], %s4806_s30, %s4806_s30, %s4807_s5  }
  0x12   :  { %s117_s9 = sshll.u32 %s5555_s13, 4  ;;  %s4808_s1 = smov [#allocation12]   ;;  %s118_s9 = int_to_ptr.hbm [resolvable:$true] %s117_s9 }
  0x13   :  { %s119_s22 = sshll.u32 %s4808_s1, 4  ;;  %s5579_s2 = sld [smem:[#allocation26_spill]]  ;;  %s120_s22 = int_to_ptr.vmem [resolvable:$true] %s119_s22 }
  0x14   :  { %125 = dma.hbm_to_vmem [thread:$0]  %s118_s9, 1024, %s120_s22, [#allocation13], %s4803_s27, %s4803_s27, %s4804_s28  }
  0x15   :  { %s4809_s3 = smov [#allocation3]   ;;  %s72_s0 = sshll.u32 %s5549_s7, 4  ;;  %s73_s0 = int_to_ptr.hbm [resolvable:$true] %s72_s0 }
  0x16   :  { %s38_s4 = sshll.u32 %s4809_s3, 4  ;;  %s102_s1 = sshll.u32 %s5553_s11, 4  ;;  %s39_s4 = int_to_ptr.vmem [resolvable:$true] %s38_s4  ;;  %s103_s1 = int_to_ptr.hbm [resolvable:$true] %s102_s1 }
  0x17   :  { %s4810_s24 = smov [#allocation8]   ;;  %s4811_s9 = smov [#allocation11]  }
  0x18   :  { %s74_s23 = sshll.u32 %s4810_s24, 4  ;;  %s104_s7 = sshll.u32 %s4811_s9, 4  ;;  %s75_s23 = int_to_ptr.vmem [resolvable:$true] %s74_s23  ;;  %s105_s7 = int_to_ptr.vmem [resolvable:$true] %s104_s7 }
  0x19   :  { %s36_s25 = sshll.u32 %s5579_s2, 4  ;;  %s136_s3 = sshll.u32 %s5559_s17, 4  ;;  %s37_s25 = int_to_ptr.hbm [resolvable:$true] %s36_s25  ;;  %s137_s3 = int_to_ptr.hbm [resolvable:$true] %s136_s3 }
  0x1a   :  { %44 = dma.hbm_to_vmem [thread:$0]  %s37_s25, 256, %s39_s4, [#allocation4], %s4803_s27, %s4803_s27, %s4804_s28  }
  0x1b   :  { %80 = dma.hbm_to_vmem [thread:$0]  %s73_s0, 2048, %s75_s23, [#allocation7], %s4803_s27, %s4803_s27, %s4804_s28  }
  0x1c   :  { %110 = dma.hbm_to_vmem [thread:$0]  %s103_s1, 1024, %s105_s7, [#allocation10], %s4803_s27, %s4803_s27, %s4804_s28  }
  0x1d   :  { %s4812_s11 = smov [#allocation14]  }
  0x1e   :  { %s138_s25 = sshll.u32 %s4812_s11, 4  ;;  %s139_s25 = int_to_ptr.vmem [resolvable:$true] %s138_s25 }
  0x1f   :  { %144 = dma.hbm_to_vmem [thread:$0]  %s137_s3, 1024, %s139_s25, [#allocation13], %s4806_s30, %s4806_s30, %s4807_s5  }
  0x20   :  { %4790 = dma.done.wait [#allocation4], 256  }
  0x21   :  { %4791 = vsyncadd [#allocation4], 4294967040 }
  0x22   :  { %4792 = dma.done.wait [#allocation7], 4096  }
  0x23   :  { %4793 = vsyncadd [#allocation7], 4294963200 }
  0x24   :  { %4794 = dma.done.wait [#allocation10], 21504  }
  0x25   :  { %4795 = vsyncadd [#allocation10], 4294945792 }
  0x26   :  { %4796 = dma.done.wait [#allocation13], 2048  }
  0x27   :  { %4797 = vsyncadd [#allocation13], 4294965248  ;;  %s5580_s26 = sld [smem:[#allocation29_spill]]  ;;  %v4298_v1 = vld [vmem:[#allocation6 + $0x38] sm:$0xff]  ;;  %v4297_v4 = vld [vmem:[#allocation6 + $0x30] sm:$0xff]  ;;  %vm352_vm0 = vcmask 1041409  }
  0x28   :  { %v4306_v2 = vld [vmem:[#allocation6 + $0x78] sm:$0xff]  ;;  %466 = vmatpush.bf16.msra.mxu1 %v4298_v1  ;;  %v4305_v5 = vld [vmem:[#allocation6 + $0x70] sm:$0xff]  ;;  %v4296_v7 = vld [vmem:[#allocation6 + $0x28] sm:$0xff]  ;;  %s5581_s1 = sld [smem:[#allocation27_spill]]  ;;  %vm355_vm1 = vcmask 1042434   ;;  %vm358_vm2 = vcmask 1043459  }
  0x29   :  { %479 = vmatpush.bf16.msra.mxu2 %v4306_v2  ;;  %v4304_v8 = vld [vmem:[#allocation6 + $0x68] sm:$0xff]  ;;  %v4295_v11 = vld [vmem:[#allocation6 + $0x20] sm:$0xff]  ;;  %v4294_v14 = vld [vmem:[#allocation6 + $0x18] sm:$0xff]  ;;  %s5582_s24 = sld [smem:[#allocation30_spill]]  ;;  %vm1063_vm3 = vcmask 1041408   ;;  %vm1064_vm4 = vcmask 1045508  }
  0x2a   :  { %v4303_v12 = vld [vmem:[#allocation6 + $0x60] sm:$0xff]  ;;  %v4302_v16 = vld [vmem:[#allocation6 + $0x58] sm:$0xff]  ;;  %v4293_v21 = vld [vmem:[#allocation6 + $0x10] sm:$0xff]  ;;  %s5599_s3 = sld [smem:[#allocation28_spill]]  ;;  %s3263_s21 = sshll.u32 %s5561_s19, 4  ;;  %s3264_s21 = int_to_ptr.hbm [resolvable:$true] %s3263_s21 }
  0x2b   :  { %v4314_v19 = vld [vmem:[#allocation8 + $0x38] sm:$0xff]  ;;  %v4301_v22 = vld [vmem:[#allocation6 + $0x50] sm:$0xff]  ;;  %v4292_v24 = vld [vmem:[#allocation6 + $0x8] sm:$0xff] }
  0x2c   :  { %467 = vmatpush.bf16.msra.mxu1 %v4297_v4  ;;  %661 = vmatpush.bf16.msra.mxu3 %v4314_v19  ;;  %v4300_v26 = vld [vmem:[#allocation6 + $0x48] sm:$0xff]  ;;  %v4291_v30 = vld [vmem:[#allocation6] sm:$0xff]  ;;  %v4322_v32 = vld [vmem:[#allocation8 + $0x78] sm:$0xff] }
  0x2d   :  { %v4290_v0 = vld [vmem:[%s5580_s26 + $0x38] sm:$0xff]  ;;  %v4289_v3 = vld [vmem:[%s5580_s26 + $0x30] sm:$0xff]  ;;  %v4288_v6 = vld [vmem:[%s5580_s26 + $0x28] sm:$0xff]  ;;  %480 = vmatpush.bf16.msra.mxu2 %v4305_v5 }
  0x2e   :  { %260 = vmatpush.bf16.msra.mxu0 %v4290_v0  ;;  %v279_v9 = vld [vmem:[%s5581_s1] sm:$0x3]  ;;  %v4286_v13 = vld [vmem:[%s5580_s26 + $0x18] sm:$0xff]  ;;  %v280_v15 = vld [vmem:[%s5581_s1 + $0x2] sm:$0x3] }
  0x2f   :  { %v4287_v10 = vld [vmem:[%s5580_s26 + $0x20] sm:$0xff]  ;;  %320 = vst [vmem:[#allocation1] ss:$9 sm:$0xff] %v279_v9  ;;  %v4285_v20 = vld [vmem:[%s5580_s26 + $0x10] sm:$0xff]  ;;  %v4284_v23 = vld [vmem:[%s5580_s26 + $0x8] sm:$0xff] }
  0x30   :  { %468 = vmatpush.bf16.msra.mxu1 %v4296_v7  ;;  %v281_v25 = vld [vmem:[%s5581_s1 + $0x4] sm:$0x3]  ;;  %v4299_v31 = vld [vmem:[#allocation6 + $0x40] sm:$0xff]  ;;  %v4281_v33 = vld [vmem:[#allocation3] sm:$0xff] }
  0x31   :  { %481 = vmatpush.bf16.msra.mxu2 %v4304_v8  ;;  %v4283_v29 = vld [vmem:[%s5580_s26] sm:$0xff]  ;;  %v4282_v59 = vld [vmem:[#allocation3 + $0x8] sm:$0xff]  ;;  %v4313_v62 = vld [vmem:[#allocation8 + $0x30] sm:$0xff] }
  0x32   :  { %261 = vmatpush.bf16.msra.mxu0 %v4289_v3  ;;  %v282_v34 = vld [vmem:[%s5581_s1 + $0x6] sm:$0x3]  ;;  %v4321_v63 = vld [vmem:[#allocation8 + $0x70] sm:$0xff]  ;;  %662 = vmatpush.bf16.msra.mxu3 %v4313_v62  ;;  %v4338_v3 = vld [vmem:[#allocation9 + $0x74] sm:$0xf0]  ;;  %s4817_s1 = smov 16  }
  0x33   :  { %v4312_v0 = vld [vmem:[#allocation8 + $0x28] sm:$0xff]  ;;  %v3543_v2 = vld [vmem:[#allocation9 + $0x70] sm:$0xf]  ;;  %v4311_v8 = vld [vmem:[#allocation8 + $0x20] sm:$0xff] }
  0x34   :  { %469 = vmatpush.bf16.msra.mxu1 %v4295_v11  ;;  %v4320_v1 = vld [vmem:[#allocation8 + $0x68] sm:$0xff]  ;;  %v3607_v4 = vld [vmem:[#allocation9 + $0xf0] sm:$0xf]  ;;  %v3544_v5 = vor.u32 %v4338_v3, %v3543_v2  ;;  %v4319_v9 = vld [vmem:[#allocation8 + $0x60] sm:$0xff] }
  0x35   :  { %482 = vmatpush.bf16.msra.mxu2 %v4303_v12  ;;  %v4336_v11 = vld [vmem:[#allocation9 + $0x64] sm:$0xf0]  ;;  %v3599_v12 = vld [vmem:[#allocation9 + $0xe0] sm:$0xf]  ;;  %v4334_v19 = vld [vmem:[#allocation9 + $0x54] sm:$0xf0] }
  0x36   :  { %262 = vmatpush.bf16.msra.mxu0 %v4288_v6  ;;  %v321_v17 = vld [vmem:[#allocation1] sm:$0xf]  ;;  %v323_v18 = vld [vmem:[#allocation1 + $0x9] sm:$0xf]  ;;  %663 = vmatpush.bf16.msra.mxu3 %v4312_v0  ;;  %v4354_v6 = vld [vmem:[#allocation9 + $0xf4] sm:$0xf0] }
  0x37   :  { %326 = vst [vmem:[#allocation1] ss:$9 sm:$0xff] %v280_v15  ;;  %v343_v41 = vunpack.c.l.b16 %v321_v17  ;;  %v344_v43 = vunpack.c.l.b16 %v323_v18  ;;  %v3608_v7 = vor.u32 %v4354_v6, %v3607_v4  ;;  %v4318_v17 = vld [vmem:[#allocation8 + $0x58] sm:$0xff]  ;;  %v3527_v18 = vld [vmem:[#allocation9 + $0x50] sm:$0xf]  ;;  %vm5068_vm5 = vmor %vm1063_vm3, %vm1064_vm4 }
  0x38   :  { %470 = vmatpush.bf16.msra.mxu1 %v4294_v14  ;;  %v4352_v14 = vld [vmem:[#allocation9 + $0xe4] sm:$0xf0]  ;;  %v3663_v62 = vld [vmem:[#allocation9 + $0x160] sm:$0xf] }
  0x39   :  { %483 = vmatpush.bf16.msra.mxu2 %v4302_v16  ;;  %v3600_v15 = vor.u32 %v4352_v14, %v3599_v12  ;;  %v4310_v16 = vld [vmem:[#allocation8 + $0x18] sm:$0xff]  ;;  %v3727_v0 = vld [vmem:[#allocation9 + $0x1e0] sm:$0xf]  ;;  %v4384_v3 = vld [vmem:[#allocation9 + $0x1e4] sm:$0xf0] }
  0x3a   :  { %263 = vmatpush.bf16.msra.mxu0 %v4287_v10  ;;  %v3535_v10 = vld [vmem:[#allocation9 + $0x60] sm:$0xf]  ;;  %664 = vmatpush.bf16.msra.mxu3 %v4311_v8  ;;  %v3728_v6 = vor.u32 %v4384_v3, %v3727_v0  ;;  %v4340_v8 = vld [vmem:[#allocation9 + $0x84] sm:$0xf0]  ;;  %v3719_v12 = vld [vmem:[#allocation9 + $0x1d0] sm:$0xf] }
  0x3b   :  { %v3487_v4 = vld [vmem:[#allocation9] sm:$0xf]  ;;  %v4376_v0 = vld [vmem:[#allocation9 + $0x1a4] sm:$0xf0] }
  0x3c   :  { %471 = vmatpush.bf16.msra.mxu1 %v4293_v21  ;;  %v3528_v21 = vor.u32 %v4334_v19, %v3527_v18  ;;  %v3799_v19 = vld [vmem:[#allocation9 + $0x270] sm:$0xf] }
  0x3d   :  { %484 = vmatpush.bf16.msra.mxu2 %v4301_v22  ;;  %v4350_v22 = vld [vmem:[#allocation9 + $0xd4] sm:$0xf0] }
  0x3e   :  { %264 = vmatpush.bf16.msra.mxu0 %v4286_v13  ;;  %v327_v27 = vld [vmem:[#allocation1] sm:$0xf]  ;;  %v329_v28 = vld [vmem:[#allocation1 + $0x9] sm:$0xf]  ;;  %v3536_v13 = vor.u32 %v4336_v11, %v3535_v10  ;;  %665 = vmatpush.bf16.msra.mxu3 %v4310_v16  ;;  %v4366_v11 = vld [vmem:[#allocation9 + $0x154] sm:$0xf0] }
  0x3f   :  { %332 = vst [vmem:[#allocation1] ss:$9 sm:$0xff] %v281_v25  ;;  %v345_v35 = vunpack.c.l.b16 %v327_v27  ;;  %v346_v36 = vunpack.c.l.b16 %v329_v28  ;;  %v4317_v25 = vld [vmem:[#allocation8 + $0x50] sm:$0xff]  ;;  %v3519_v27 = vld [vmem:[#allocation9 + $0x40] sm:$0xf] }
  0x40   :  { %472 = vmatpush.bf16.msra.mxu1 %v4292_v24  ;;  %v4309_v24 = vld [vmem:[#allocation8 + $0x10] sm:$0xff]  ;;  %v4332_v28 = vld [vmem:[#allocation9 + $0x44] sm:$0xf0] }
  0x41   :  { %485 = vmatpush.bf16.msra.mxu2 %v4300_v26  ;;  %v351_v42 = vrot.slane %v345_v35, 7  ;;  %v360_v44 = vrot.slane %v346_v36, 7  ;;  %v4813_v26 = vmov 0   ;;  %v3511_v35 = vld [vmem:[#allocation9 + $0x30] sm:$0xf] }
  0x42   :  { %265 = vmatpush.bf16.msra.mxu0 %v4285_v20  ;;  %v3591_v20 = vld [vmem:[#allocation9 + $0xd0] sm:$0xf]  ;;  %703 = vst [vmem:[#allocation2 + $0x28] sm:$0xff] %v4813_v26  ;;  %666 = vmatpush.bf16.msra.mxu3 %v4309_v24  ;;  %v4330_v36 = vld [vmem:[#allocation9 + $0x34] sm:$0xf0] }
  0x43   :  { %v353_v47 = vsel %vm352_vm0, %v351_v42, %v343_v41  ;;  %v361_v48 = vsel %vm352_vm0, %v360_v44, %v344_v43  ;;  %704 = vst [vmem:[#allocation2] sm:$0xff] %v4813_v26  ;;  %v4307_v41 = vld [vmem:[#allocation8] sm:$0xff]  ;;  %v4364_v24 = vld [vmem:[#allocation9 + $0x144] sm:$0xf0] }
  0x44   :  { %473 = vmatpush.bf16.msra.mxu1 %v4291_v30  ;;  %v3520_v30 = vor.u32 %v4332_v28, %v3519_v27  ;;  %705 = vst [vmem:[#allocation2 + $0x30] sm:$0xff] %v4813_v26  ;;  %v4315_v42 = vld [vmem:[#allocation8 + $0x40] sm:$0xff] }
  0x45   :  { %486 = vmatpush.bf16.msra.mxu2 %v4299_v31  ;;  %v4348_v31 = vld [vmem:[#allocation9 + $0xc4] sm:$0xf0]  ;;  %706 = vst [vmem:[#allocation2 + $0x20] sm:$0xff] %v4813_v26  ;;  %v3503_v44 = vld [vmem:[#allocation9 + $0x20] sm:$0xf] }
  0x46   :  { %266 = vmatpush.bf16.msra.mxu0 %v4284_v23  ;;  %v333_v37 = vld [vmem:[#allocation1] sm:$0xf]  ;;  %v335_v38 = vld [vmem:[#allocation1 + $0x9] sm:$0xf]  ;;  %v3592_v23 = vor.u32 %v4350_v22, %v3591_v20  ;;  %v4402_v20 = vld [vmem:[#allocation9 + $0x274] sm:$0xf0] }
  0x47   :  { %338 = vst [vmem:[#allocation1] ss:$9 sm:$0xff] %v282_v34  ;;  %v347_v39 = vunpack.c.l.b16 %v333_v37  ;;  %v348_v40 = vunpack.c.l.b16 %v335_v38  ;;  %v4316_v34 = vld [vmem:[#allocation8 + $0x48] sm:$0xff]  ;;  %v3575_v37 = vld [vmem:[#allocation9 + $0xb0] sm:$0xf]  ;;  %v3512_v38 = vor.u32 %v4330_v36, %v3511_v35 }
  0x48   :  { %2192 = vmatpush.bf16.msrb.mxu1 %v3544_v5  ;;  %v4324_v5 = vld [vmem:[#allocation9 + $0x4] sm:$0xf0]  ;;  %v4418_v26 = vld [vmem:[#allocation9 + $0x2f4] sm:$0xf0]  ;;  %v3855_v36 = vld [vmem:[#allocation9 + $0x2e0] sm:$0xf] }
  0x49   :  { %v354_v45 = vrot.slane %v347_v39, 6  ;;  %v362_v46 = vrot.slane %v348_v40, 6  ;;  %2211 = vmatpush.bf16.msrb.mxu2 %v3608_v7  ;;  %v4346_v39 = vld [vmem:[#allocation9 + $0xb4] sm:$0xf0]  ;;  %v3551_v7 = vld [vmem:[#allocation9 + $0x80] sm:$0xf]  ;;  %v3488_v10 = vor.u32 %v4324_v5, %v3487_v4 }
  0x4a   :  { %267 = vmatpush.bf16.msra.mxu0 %v4283_v29  ;;  %v3583_v29 = vld [vmem:[#allocation9 + $0xc0] sm:$0xf]  ;;  %v3576_v40 = vor.u32 %v4346_v39, %v3575_v37  ;;  %v3552_v14 = vor.u32 %v4340_v8, %v3551_v7  ;;  %v4400_v35 = vld [vmem:[#allocation9 + $0x264] sm:$0xf0]  ;;  %v3639_v37 = vld [vmem:[#allocation9 + $0x130] sm:$0xf] }
  0x4b   :  { %v356_v53 = vsel %vm355_vm1, %v354_v45, %v353_v47  ;;  %v363_v54 = vsel %vm355_vm1, %v362_v46, %v361_v48  ;;  %v4328_v45 = vld [vmem:[#allocation9 + $0x24] sm:$0xf0]  ;;  %v3567_v46 = vld [vmem:[#allocation9 + $0xa0] sm:$0xf]  ;;  %v4358_v7 = vld [vmem:[#allocation9 + $0x114] sm:$0xf0] }
  0x4c   :  { %2193 = vmatpush.bf16.msrb.mxu1 %v3536_v13  ;;  %v3504_v47 = vor.u32 %v4328_v45, %v3503_v44  ;;  %v4344_v48 = vld [vmem:[#allocation9 + $0xa4] sm:$0xf0]  ;;  %v4382_v13 = vld [vmem:[#allocation9 + $0x1d4] sm:$0xf0]  ;;  %v3703_v45 = vld [vmem:[#allocation9 + $0x1b0] sm:$0xf] }
  0x4d   :  { %268 = vmatmul.bf16.vlgmr.msra.gmra.mxu0 %v4281_v33  ;;  %2212 = vmatpush.bf16.msrb.mxu2 %v3600_v15  ;;  %v4308_v33 = vld [vmem:[#allocation8 + $0x8] sm:$0xff]  ;;  %v3720_v16 = vor.u32 %v4382_v13, %v3719_v12  ;;  %v3775_v8 = vld [vmem:[#allocation9 + $0x240] sm:$0xf] }
  0x4e   :  { %680 = vmatpush.bf16.msrb.mxu0 %v4322_v32  ;;  %v339_v49 = vld [vmem:[#allocation1] sm:$0xf]  ;;  %v341_v50 = vld [vmem:[#allocation1 + $0x9] sm:$0xf]  ;;  %v3584_v32 = vor.u32 %v4348_v31, %v3583_v29  ;;  %667 = vmatpush.bf16.msra.mxu3 %v4308_v33  ;;  %v3711_v29 = vld [vmem:[#allocation9 + $0x1c0] sm:$0xf] }
  0x4f   :  { %v349_v51 = vunpack.c.l.b16 %v339_v49  ;;  %v350_v52 = vunpack.c.l.b16 %v341_v50  ;;  %v3671_v49 = vld [vmem:[#allocation9 + $0x170] sm:$0xf]  ;;  %v4370_v50 = vld [vmem:[#allocation9 + $0x174] sm:$0xf0]  ;;  %v4535_v33 = vld [vmem:[%s5582_s24] ss:$0 sm:$0xff] }
  0x50   :  { %2194 = vmatpush.bf16.msrb.mxu1 %v3528_v21  ;;  %v3863_v21 = vld [vmem:[#allocation9 + $0x2f0] sm:$0xf] }
  0x51   :  { %v357_v55 = vrot.slane %v349_v51, 5  ;;  %v364_v56 = vrot.slane %v350_v52, 5  ;;  %2213 = vmatpush.bf16.msrb.mxu2 %v3592_v23  ;;  %v3568_v51 = vor.u32 %v4344_v48, %v3567_v46  ;;  %v3672_v52 = vor.u32 %v4370_v50, %v3671_v49  ;;  %v3647_v23 = vld [vmem:[#allocation9 + $0x140] sm:$0xf]  ;;  %v4378_v46 = vld [vmem:[#allocation9 + $0x1b4] sm:$0xf0] }
  0x52   :  { %681 = vmatpush.bf16.msrb.mxu0 %v4321_v63  ;;  %668 = vmatpush.bf16.msra.mxu3 %v4307_v41  ;;  %v4368_v63 = vld [vmem:[#allocation9 + $0x164] sm:$0xf0]  ;;  %v3648_v27 = vor.u32 %v4364_v24, %v3647_v23  ;;  %v3864_v28 = vor.u32 %v4418_v26, %v3863_v21  ;;  %v5011_v49 = vld [vmem:[#allocation2 + $0x28] sm:$0xcc]  ;;  %v3704_v50 = vor.u32 %v4378_v46, %v3703_v45  ;;  %v3767_v46 = vld [vmem:[#allocation9 + $0x230] sm:$0xf] }
  0x53   :  { %v359_v57 = vsel %vm358_vm2, %v357_v55, %v356_v53  ;;  %v365_v58 = vsel %vm358_vm2, %v364_v56, %v363_v54  ;;  %v3735_v53 = vld [vmem:[#allocation9 + $0x1f0] sm:$0xf]  ;;  %v4386_v54 = vld [vmem:[#allocation9 + $0x1f4] sm:$0xf0]  ;;  %v3664_v2 = vor.u32 %v4368_v63, %v3663_v62 }
  0x54   :  { %v366_v60 = vpack.c.b16 %v359_v57, %v359_v57  ;;  %v367_v61 = vpack.c.b16 %v365_v58, %v365_v58  ;;  %2195 = vmatpush.bf16.msrb.mxu1 %v3520_v30  ;;  %v3495_v55 = vld [vmem:[#allocation9 + $0x10] sm:$0xf]  ;;  %v3736_v56 = vor.u32 %v4386_v54, %v3735_v53  ;;  %v4326_v57 = vld [vmem:[#allocation9 + $0x14] sm:$0xf0]  ;;  %v4380_v30 = vld [vmem:[#allocation9 + $0x1c4] sm:$0xf0] }
  0x55   :  { %2214 = vmatpush.bf16.msrb.mxu2 %v3584_v32  ;;  %v3559_v58 = vld [vmem:[#allocation9 + $0x90] sm:$0xf]  ;;  %v3712_v32 = vor.u32 %v4380_v30, %v3711_v29  ;;  %v4398_v53 = vld [vmem:[#allocation9 + $0x254] sm:$0xf0] }
  0x56   :  { %474 = vmatmul.bf16.vlgmr.msra.gmra.mxu1 %v366_v60  ;;  %487 = vmatmul.bf16.vlgmr.msra.gmra.mxu2 %v367_v61  ;;  %v3496_v60 = vor.u32 %v4326_v57, %v3495_v55  ;;  %v3847_v57 = vld [vmem:[#allocation9 + $0x2d0] sm:$0xf] }
  0x57   :  { %682 = vmatpush.bf16.msrb.mxu0 %v4320_v1  ;;  %2230 = vmatpush.bf16.msrb.mxu3 %v3672_v52  ;;  %v3783_v52 = vld [vmem:[#allocation9 + $0x250] sm:$0xf] }
  0x58   :  { %2196 = vmatpush.bf16.msrb.mxu1 %v3512_v38  ;;  %v4362_v38 = vld [vmem:[#allocation9 + $0x134] sm:$0xf0]  ;;  %v5013_v62 = vld [vmem:[#allocation2] sm:$0xcc] }
  0x59   :  { %2215 = vmatpush.bf16.msrb.mxu2 %v3576_v40  ;;  %v4416_v40 = vld [vmem:[#allocation9 + $0x2e4] sm:$0xf0] }
  0x5a   :  { %v3856_v44 = vor.u32 %v4416_v40, %v3855_v36  ;;  %v3470_v36 = vrot.slane %v5013_v62, 10  ;;  %v5047_v40 = vld [vmem:[#allocation2] sm:$0x88] }
  0x5b   :  { %683 = vmatpush.bf16.msrb.mxu0 %v4319_v9  ;;  %v3655_v9 = vld [vmem:[#allocation9 + $0x150] sm:$0xf]  ;;  %2231 = vmatpush.bf16.msrb.mxu3 %v3664_v2 }
  0x5c   :  { %2197 = vmatpush.bf16.msrb.mxu1 %v3504_v47  ;;  %v3656_v15 = vor.u32 %v4366_v11, %v3655_v9  ;;  %v3631_v47 = vld [vmem:[#allocation9 + $0x120] sm:$0xf]  ;;  %v3623_v2 = vld [vmem:[#allocation9 + $0x110] sm:$0xf]  ;;  %v4396_v9 = vld [vmem:[#allocation9 + $0x244] sm:$0xf0] }
  0x5d   :  { %273 = vmatmul.bf16.gmra.mxu0 %v4282_v59  ;;  %v4342_v59 = vld [vmem:[#allocation9 + $0x94] sm:$0xf0]  ;;  %2216 = vmatpush.bf16.msrb.mxu2 %v3568_v51  ;;  %v4360_v51 = vld [vmem:[#allocation9 + $0x124] sm:$0xf0] }
  0x5e   :  { %v3560_v61 = vor.u32 %v4342_v59, %v3559_v58  ;;  %v3632_v55 = vor.u32 %v4360_v51, %v3631_v47  ;;  %v4414_v58 = vld [vmem:[#allocation9 + $0x2d4] sm:$0xf0]  ;;  %v3695_v59 = vld [vmem:[#allocation9 + $0x1a0] sm:$0xf] }
  0x5f   :  { %684 = vmatpush.bf16.msrb.mxu0 %v4318_v17  ;;  %v4536_v17 = vld [vmem:[%s5548_s6] ss:$0 sm:$0xff]  ;;  %2232 = vmatpush.bf16.msrb.mxu3 %v3656_v15  ;;  %v3848_v63 = vor.u32 %v4414_v58, %v3847_v57  ;;  %v4394_v47 = vld [vmem:[#allocation9 + $0x234] sm:$0xf0]  ;;  %v3615_v51 = vld [vmem:[#allocation9 + $0x100] sm:$0xf] }
  0x60   :  { %2198 = vmatpush.bf16.msrb.mxu1 %v3496_v60  ;;  %s4816_s6 = smov 256  }
  0x61   :  { %2217 = vmatpush.bf16.msrb.mxu2 %v3560_v61 }
  0x63   :  { %685 = vmatpush.bf16.msrb.mxu0 %v4317_v25  ;;  %v3800_v25 = vor.u32 %v4402_v20, %v3799_v19  ;;  %2233 = vmatpush.bf16.msrb.mxu3 %v3648_v27  ;;  %v3687_v19 = vld [vmem:[#allocation9 + $0x190] sm:$0xf]  ;;  %v4374_v20 = vld [vmem:[#allocation9 + $0x194] sm:$0xf0]  ;;  %v743_v27 = vunpack.c.l.b16 %v5013_v62 }
  0x64   :  { %2199 = vmatpush.bf16.msrb.mxu1 %v3488_v10  ;;  %v3688_v29 = vor.u32 %v4374_v20, %v3687_v19 }
  0x65   :  { %2218 = vmatpush.bf16.msrb.mxu2 %v3552_v14  ;;  %v3839_v14 = vld [vmem:[#allocation9 + $0x2c0] sm:$0xf] }
  0x67   :  { %686 = vmatpush.bf16.msrb.mxu0 %v4316_v34  ;;  %v3791_v34 = vld [vmem:[#allocation9 + $0x260] sm:$0xf] }
  0x68   :  { %2268 = vmatpush.bf16.msra.mxu1 %v3800_v25  ;;  %v3792_v39 = vor.u32 %v4400_v35, %v3791_v34  ;;  %v5027_v25 = vld [vmem:[#allocation2 + $0x30] sm:$0xcc]  ;;  %v5039_v34 = vld [vmem:[#allocation2 + $0x28] sm:$0x88]  ;;  %v3465_v35 = vrot.slane %v5011_v49, 10 }
  0x69   :  { %2287 = vmatpush.bf16.msra.mxu2 %v3864_v28 }
  0x6b   :  { %687 = vmatpush.bf16.msrb.mxu0 %v4315_v42  ;;  %v3640_v42 = vor.u32 %v4362_v38, %v3639_v37  ;;  %v5043_v37 = vld [vmem:[#allocation2 + $0x20] sm:$0xcc]  ;;  %v747_v38 = vunpack.c.l.b16 %v5027_v25 }
  0x6c   :  { %2269 = vmatpush.bf16.msra.mxu1 %v3792_v39  ;;  %v748_v39 = vunpack.c.h.b16 %v5027_v25  ;;  %v3480_v58 = vrot.slane %v5043_v37, 10 }
  0x6d   :  { %2234 = vmatpush.bf16.msrb.mxu3 %v3640_v42  ;;  %2288 = vmatpush.bf16.msra.mxu2 %v3856_v44 }
  0x6f   :  { %2249 = vmatpush.bf16.msra.mxu0 %v3736_v56  ;;  %v3784_v56 = vor.u32 %v4398_v53, %v3783_v52  ;;  %v4356_v52 = vld [vmem:[#allocation9 + $0x104] sm:$0xf0]  ;;  %v3768_v53 = vor.u32 %v4394_v47, %v3767_v46  ;;  %v4434_v46 = vld [vmem:[#allocation9 + $0x374] sm:$0xf0] }
  0x71   :  { %2270 = vmatpush.bf16.msra.mxu1 %v3784_v56  ;;  %2235 = vmatpush.bf16.msrb.mxu3 %v3632_v55 }
  0x72   :  { %2289 = vmatpush.bf16.msra.mxu2 %v3848_v63 }
  0x73   :  { %2250 = vmatpush.bf16.msra.mxu0 %v3728_v6  ;;  %v3696_v6 = vor.u32 %v4376_v0, %v3695_v59  ;;  %v3616_v59 = vor.u32 %v4356_v52, %v3615_v51 }
  0x77   :  { %2251 = vmatpush.bf16.msra.mxu0 %v3720_v16  ;;  %v3624_v16 = vor.u32 %v4358_v7, %v3623_v2  ;;  %v4372_v7 = vld [vmem:[#allocation9 + $0x184] sm:$0xf0] }
  0x79   :  { %2236 = vmatpush.bf16.msrb.mxu3 %v3624_v16  ;;  %v3823_v16 = vld [vmem:[#allocation9 + $0x2a0] sm:$0xf] }
  0x7b   :  { %2252 = vmatpush.bf16.msra.mxu0 %v3712_v32 }
  0x7d   :  { %2237 = vmatpush.bf16.msrb.mxu3 %v3616_v59 }
  0x7f   :  { %2253 = vmatpush.bf16.msra.mxu0 %v3704_v50  ;;  %v3475_v50 = vrot.slane %v5027_v25, 10 }
  0x83   :  { %2254 = vmatpush.bf16.msra.mxu0 %v3696_v6  ;;  %v3679_v6 = vld [vmem:[#allocation9 + $0x180] sm:$0xf] }
  0x87   :  { %2255 = vmatpush.bf16.msra.mxu0 %v3688_v29 }
  0xca   :  { %v5001_v43 = vpop.f32.mrf.mxu0 }
  0xcb   :  { %v5016_v3 = vadd.f32 %v4535_v33, %v5001_v43  ;;  %v739_v43 = vunpack.c.l.b16 %v5011_v49 }
  0xd2   :  { %v5003_v1 = vpop.f32.mrf.mxu0 }
  0xd3   :  { %v475_v18 = vpop.f32.mrf.mxu1  ;;  %v5023_v15 = vadd.f32 %v4535_v33, %v5003_v1  ;;  %v740_v1 = vunpack.c.h.b16 %v5011_v49 }
  0xd4   :  { %v476_v31 = vadd.f32 %v4536_v17, %v475_v18  ;;  %v3776_v17 = vor.u32 %v4396_v9, %v3775_v8  ;;  %v4412_v18 = vld [vmem:[#allocation9 + $0x2c4] sm:$0xf0]  ;;  %v836_v8 = vunpack.c.h.b16 %v5039_v34  ;;  %v5076_v9 = vld [vmem:[#allocation2 + $0x30] sm:$0x88] }
  0xd5   :  { %v3840_v28 = vor.u32 %v4412_v18, %v3839_v14  ;;  %v4392_v14 = vld [vmem:[#allocation9 + $0x224] sm:$0xf0] }
  0xd6   :  { %2271 = vmatpush.bf16.msra.mxu1 %v3776_v17  ;;  %v837_v17 = vunpack.c.l.b16 %v5047_v40 }
  0xd7   :  { %2290 = vmatpush.bf16.msra.mxu2 %v3840_v28 }
  0xd9   :  { %v488_v41 = vpop.f32.mrf.mxu2 }
  0xda   :  { %v274_v22 = vpop.f32.mrf.mxu0  ;;  %v489_v48 = vadd.f32 %v488_v41, %v476_v31  ;;  %2272 = vmatpush.bf16.msra.mxu1 %v3768_v53 }
  0xdb   :  { %v477_v54 = vpop.f32.mrf.mxu1  ;;  %v5018_v4 = vadd.f32 %v4535_v33, %v274_v22 }
  0xdc   :  { %v492_v60 = vmax.f32 %v489_v48, 0.0  ;;  %v835_v54 = vunpack.c.l.b16 %v5039_v34 }
  0xdd   :  { %5583 = vst [vmem:[#allocation24_spill] sm:$0xff] %v5018_v4 }
  0xde   :  { %v494_v10 = vrot.slane %v492_v60, 1  ;;  %v497_v11 = vperm.slane %v492_v60, 0  ;;  %v495_v12 = vrot.slane %v492_v60, 2  ;;  %v496_v13 = vrot.slane %v492_v60, 3  ;;  %v3831_v60 = vld [vmem:[#allocation9 + $0x2b0] sm:$0xf] }
  0xe0   :  { %v498_v21 = vperm.slane %v494_v10, 0  ;;  %v499_v22 = vperm.slane %v495_v12, 0  ;;  %v500_v23 = vperm.slane %v496_v13, 0  ;;  %v505_v24 = vpack.c.bf16 %v497_v11, %v5016_v3  ;;  %v3759_v13 = vld [vmem:[#allocation9 + $0x220] sm:$0xf] }
  0xe1   :  { %v490_v26 = vpop.f32.mrf.mxu2  ;;  %v751_v10 = vunpack.c.l.b16 %v5043_v37  ;;  %v752_v11 = vunpack.c.h.b16 %v5043_v37  ;;  %v3680_v12 = vor.u32 %v4372_v7, %v3679_v6 }
  0xe2   :  { %v276_v61 = vpop.f32.mrf.mxu0  ;;  %v5032_v30 = vpack.c.bf16 %v499_v22, %v5018_v4  ;;  %v506_v32 = vpack.c.bf16 %v498_v21, %v5023_v15  ;;  %707 = vst [vmem:[#allocation2 + $0x10] sm:$0xff] %v505_v24  ;;  %v5050_v41 = vunpack.c.l.b16 %v505_v24  ;;  %v5054_v44 = vunpack.c.h.b16 %v505_v24  ;;  %v4388_v24 = vld [vmem:[#allocation9 + $0x204] sm:$0xf0] }
  0xe3   :  { %v5020_v5 = vadd.f32 %v4535_v33, %v276_v61  ;;  %v744_v33 = vunpack.c.h.b16 %v5013_v62  ;;  %v4410_v61 = vld [vmem:[#allocation9 + $0x2b4] sm:$0xf0]  ;;  %v3760_v22 = vor.u32 %v4392_v14, %v3759_v13  ;;  %2256 = vmatpush.bf16.msra.mxu0 %v3680_v12  ;;  %v3991_v62 = vld [vmem:[#allocation9 + $0x3f0] sm:$0xf] }
  0xe4   :  { %709 = vst [vmem:[#allocation2 + $0x18] sm:$0xff] %v5032_v30  ;;  %v5052_v42 = vunpack.c.l.b16 %v506_v32  ;;  %v5056_v45 = vunpack.c.h.b16 %v506_v32  ;;  %v553_v63 = vunpack.c.l.b16 %v5032_v30  ;;  %v3832_v2 = vor.u32 %v4410_v61, %v3831_v60 }
  0xe5   :  { %5584 = vst [vmem:[#allocation25_spill] sm:$0xff] %v5020_v5  ;;  %v5035_v31 = vpack.c.bf16 %v500_v23, %v5020_v5  ;;  %v554_v21 = vunpack.c.h.b16 %v5032_v30  ;;  %v4408_v23 = vld [vmem:[#allocation9 + $0x2a4] sm:$0xf0]  ;;  %2273 = vmatpush.bf16.msra.mxu1 %v3760_v22  ;;  %v4379_v5 = vld [vmem:[#allocation9 + $0x1c4] sm:$0xf] }
  0xe6   :  { %v557_v55 = vpack.c.b16 %v5052_v42, %v5050_v41  ;;  %708 = vst [vmem:[#allocation2 + $0x8] sm:$0xff] %v506_v32  ;;  %v558_v56 = vpack.c.b16 %v5056_v45, %v5054_v44  ;;  %2291 = vmatpush.bf16.msra.mxu2 %v3832_v2  ;;  %v3927_v32 = vld [vmem:[#allocation9 + $0x370] sm:$0xf] }
  0xe7   :  { %710 = vst [vmem:[#allocation2 + $0x38] sm:$0xff] %v5035_v31  ;;  %v555_v48 = vunpack.c.l.b16 %v5035_v31  ;;  %v556_v0 = vunpack.c.h.b16 %v5035_v31  ;;  %v3824_v31 = vor.u32 %v4408_v23, %v3823_v16  ;;  %v3928_v30 = vor.u32 %v4434_v46, %v3927_v32 }
  0xe8   :  { %669 = vmatmul.bf16.vlgmr.msra.gmra.mxu3 %v557_v55  ;;  %688 = vmatmul.bf16.vlgmr.msrb.gmra.mxu0 %v558_v56 }
  0xe9   :  { %v712_v18 = vld [vmem:[#allocation2 + $0x10] sm:$0x33]  ;;  %v5083_v20 = vpack.c.b16 %v555_v48, %v553_v63  ;;  %v5089_v47 = vpack.c.b16 %v556_v0, %v554_v21  ;;  %2306 = vmatpush.bf16.msra.mxu3 %v3928_v30 }
  0xea   :  { %v5081_v19 = vld [vmem:[#allocation2 + $0x10] sm:$0x77]  ;;  %v1068_v29 = vrot.slane %v712_v18, 6  ;;  %2292 = vmatpush.bf16.msra.mxu2 %v3824_v31 }
  0xeb   :  { %v759_v26 = vunpack.c.l.b16 %v5081_v19  ;;  %v760_v28 = vunpack.c.h.b16 %v5081_v19  ;;  %v5091_v48 = vld [vmem:[#allocation2 + $0x18] sm:$0x77] }
  0xec   :  { %v1069_v56 = vsel %vm5068_vm5, %v3465_v35, %v1068_v29  ;;  %v716_v59 = vld [vmem:[#allocation2 + $0x18] sm:$0x33]  ;;  %v5569_v61 = vunpack.c.l.b16 %v5091_v48  ;;  %v5568_v6 = vunpack.c.h.b16 %v5091_v48 }
  0xed   :  { %v767_v53 = vpack.c.b16 %v759_v26, %v739_v43  ;;  %v5103_v55 = vpack.c.b16 %v760_v28, %v740_v1  ;;  %v714_v63 = vld [vmem:[#allocation2 + $0x8] sm:$0x33]  ;;  %v1312_v43 = vunpack.c.l.b16 %v1069_v56  ;;  %v1313_v2 = vunpack.c.h.b16 %v1069_v56 }
  0xee   :  { %v5109_v60 = vld [vmem:[#allocation2 + $0x38] sm:$0x77]  ;;  %v5112_v0 = vld [vmem:[#allocation2 + $0x8] sm:$0x77]  ;;  %v1088_v7 = vrot.slane %v714_v63, 6  ;;  %v5123_v14 = vpack.c.b16 %v5569_v61, %v747_v38  ;;  %v5129_v16 = vpack.c.b16 %v5568_v6, %v748_v39  ;;  %v1108_v21 = vrot.slane %v716_v59, 6 }
  0xef   :  { %v5567_v1 = vunpack.c.l.b16 %v5109_v60  ;;  %v761_v49 = vunpack.c.l.b16 %v5112_v0  ;;  %v5570_v35 = vunpack.c.h.b16 %v5112_v0  ;;  %v718_v12 = vld [vmem:[#allocation2 + $0x38] sm:$0x33]  ;;  %v5566_v13 = vunpack.c.h.b16 %v5109_v60  ;;  %v4450_v56 = vld [vmem:[#allocation9 + $0x3f4] sm:$0xf0]  ;;  %v3751_v59 = vld [vmem:[#allocation9 + $0x210] sm:$0xf] }
  0xf0   :  { %v1089_v39 = vsel %vm5068_vm5, %v3470_v36, %v1088_v7  ;;  %v1128_v31 = vrot.slane %v718_v12, 6  ;;  %v778_v30 = vshll.u32 %v767_v53, 16  ;;  %v3815_v7 = vld [vmem:[#allocation9 + $0x290] sm:$0xf]  ;;  %v4448_v6 = vld [vmem:[#allocation9 + $0x3e4] sm:$0xf0]  ;;  %v3992_v61 = vor.u32 %v4450_v56, %v3991_v62 }
  0xf1   :  { %v5133_v18 = vpack.c.b16 %v5567_v1, %v751_v10  ;;  %v769_v22 = vpack.c.b16 %v761_v49, %v743_v27  ;;  %v770_v38 = vpack.c.b16 %v5570_v35, %v744_v33  ;;  %v5149_v10 = vpack.c.b16 %v5566_v13, %v752_v11  ;;  %v3919_v13 = vld [vmem:[#allocation9 + $0x360] sm:$0xf]  ;;  %v4430_v62 = vld [vmem:[#allocation9 + $0x354] sm:$0xf0] }
  0xf2   :  { %v1322_v23 = vunpack.c.l.b16 %v1089_v39  ;;  %v1323_v29 = vunpack.c.h.b16 %v1089_v39  ;;  %v1109_v27 = vsel %vm5068_vm5, %v3475_v50, %v1108_v21  ;;  %v776_v33 = vshrl.u32 %v767_v53, 16  ;;  %v4390_v50 = vld [vmem:[#allocation9 + $0x214] sm:$0xf0]  ;;  %v3743_v35 = vld [vmem:[#allocation9 + $0x200] sm:$0xf]  ;;  %2325 = vmatpush.bf16.msrb.mxu0 %v3992_v61 }
  0xf3   :  { %v1332_v32 = vunpack.c.l.b16 %v1109_v27  ;;  %v1333_v46 = vunpack.c.h.b16 %v1109_v27  ;;  %v1129_v25 = vsel %vm5068_vm5, %v3480_v58, %v1128_v31  ;;  %v783_v11 = vshrl.u32 %v5103_v55, 16  ;;  %v4406_v27 = vld [vmem:[#allocation9 + $0x294] sm:$0xf0]  ;;  %v4432_v58 = vld [vmem:[#allocation9 + $0x364] sm:$0xf0] }
  0xf4   :  { %v5155_v36 = vpack.c.b16 %v1322_v23, %v1312_v43  ;;  %v5157_v63 = vpack.c.b16 %v1323_v29, %v1313_v2  ;;  %v1342_v12 = vunpack.c.l.b16 %v1129_v25  ;;  %v1343_v21 = vunpack.c.h.b16 %v1129_v25 }
  0xf5   :  { %v780_v39 = vrot.slane %v778_v30, 1  ;;  %v785_v53 = vshll.u32 %v5103_v55, 16  ;;  %v790_v43 = vshrl.u32 %v769_v22, 16  ;;  %v792_v37 = vshll.u32 %v769_v22, 16  ;;  %v3983_v30 = vld [vmem:[#allocation9 + $0x3e0] sm:$0xf] }
  0xf6   :  { %2200 = vmatmul.bf16.vlgmr.msrb.gmra.mxu1 %v5155_v36  ;;  %2219 = vmatmul.bf16.vlgmr.msrb.gmra.mxu2 %v5157_v63  ;;  %v797_v2 = vshrl.u32 %v770_v38, 16  ;;  %v799_v23 = vshll.u32 %v770_v38, 16  ;;  %v5167_v29 = vpack.c.b16 %v1342_v12, %v1332_v32  ;;  %v5169_v31 = vpack.c.b16 %v1343_v21, %v1333_v46  ;;  %v3807_v46 = vld [vmem:[#allocation9 + $0x280] sm:$0xf]  ;;  %v4404_v21 = vld [vmem:[#allocation9 + $0x284] sm:$0xf0] }
  0xf7   :  { %v781_v1 = vor.u32 %v780_v39, %v776_v33  ;;  %v787_v25 = vrot.slane %v785_v53, 1  ;;  %v794_v55 = vrot.slane %v792_v37, 1  ;;  %v3752_v51 = vor.u32 %v4390_v50, %v3751_v59  ;;  %v3911_v37 = vld [vmem:[#allocation9 + $0x350] sm:$0xf] }
  0xf8   :  { %v801_v52 = vrot.slane %v799_v23, 1  ;;  %674 = vmatmul.bf16.gmra.mxu3 %v5083_v20  ;;  %693 = vmatmul.bf16.gmra.mxu0 %v5089_v47  ;;  %v3816_v12 = vor.u32 %v4406_v27, %v3815_v7  ;;  %v3920_v53 = vor.u32 %v4432_v58, %v3919_v13  ;;  %v804_v56 = vshrl.u32 %v5123_v14, 16  ;;  %v4446_v23 = vld [vmem:[#allocation9 + $0x3d4] sm:$0xf0] }
  0xf9   :  { %v788_v22 = vor.u32 %v787_v25, %v783_v11  ;;  %v959_v38 = vunpack.c.l.b16 %v781_v1  ;;  %v967_v32 = vunpack.c.h.b16 %v781_v1  ;;  %v795_v33 = vor.u32 %v794_v55, %v790_v43  ;;  %2274 = vmatpush.bf16.msra.mxu1 %v3752_v51  ;;  %v3975_v11 = vld [vmem:[#allocation9 + $0x3d0] sm:$0xf]  ;;  %v3903_v55 = vld [vmem:[#allocation9 + $0x340] sm:$0xf] }
  0xfa   :  { %v802_v39 = vor.u32 %v801_v52, %v797_v2  ;;  %2293 = vmatpush.bf16.msra.mxu2 %v3816_v12  ;;  %v3984_v20 = vor.u32 %v4448_v6, %v3983_v30  ;;  %v3744_v47 = vor.u32 %v4388_v24, %v3743_v35  ;;  %2307 = vmatpush.bf16.msra.mxu3 %v3920_v53  ;;  %v806_v24 = vshll.u32 %v5123_v14, 16 }
  0xfb   :  { %v960_v59 = vunpack.c.l.b16 %v788_v22  ;;  %v968_v50 = vunpack.c.h.b16 %v788_v22  ;;  %v975_v1 = vunpack.c.l.b16 %v795_v33  ;;  %v983_v27 = vunpack.c.h.b16 %v795_v33  ;;  %v4428_v22 = vld [vmem:[#allocation9 + $0x344] sm:$0xf0] }
  0xfc   :  { %v976_v7 = vunpack.c.l.b16 %v802_v39  ;;  %v984_v25 = vunpack.c.h.b16 %v802_v39  ;;  %v3808_v51 = vor.u32 %v4404_v21, %v3807_v46  ;;  %v3912_v13 = vor.u32 %v4430_v62, %v3911_v37  ;;  %2326 = vmatpush.bf16.msrb.mxu0 %v3984_v20  ;;  %v4055_v20 = vld [vmem:[#allocation9 + $0x470] sm:$0xf] }
  0xfd   :  { %v1024_v52 = vpack.c.b16 %v960_v59, %v959_v38  ;;  %v1029_v61 = vpack.c.b16 %v968_v50, %v967_v32  ;;  %2275 = vmatpush.bf16.msra.mxu1 %v3744_v47  ;;  %v3976_v58 = vor.u32 %v4446_v23, %v3975_v11  ;;  %v843_v30 = vpack.c.b16 %v759_v26, %v835_v54 }
  0xfe   :  { %v1034_v43 = vpack.c.b16 %v976_v7, %v975_v1  ;;  %v1039_v2 = vpack.c.b16 %v984_v25, %v983_v27  ;;  %2294 = vmatpush.bf16.msra.mxu2 %v3808_v51  ;;  %v844_v38 = vpack.c.b16 %v760_v28, %v836_v8  ;;  %2308 = vmatpush.bf16.msra.mxu3 %v3912_v13  ;;  %v5587_v21 = vunpack.c.h.b16 %v5047_v40  ;;  %v4119_v1 = vld [vmem:[#allocation9 + $0x4f0] sm:$0xf]  ;;  %v3967_v51 = vld [vmem:[#allocation9 + $0x3c0] sm:$0xf]  ;;  %v4444_v13 = vld [vmem:[#allocation9 + $0x3c4] sm:$0xf0] }
  0xff   :  { %v3466_v6 = vrot.slane %v1024_v52, 10  ;;  %v1072_v35 = vrot.slane %v1029_v61, 6  ;;  %v845_v46 = vpack.c.b16 %v761_v49, %v837_v17  ;;  %v5588_v33 = vunpack.c.h.b16 %v5112_v0  ;;  %v4466_v0 = vld [vmem:[#allocation9 + $0x474] sm:$0xf0] }
 0x100   :  { %v3471_v32 = vrot.slane %v1034_v43, 10  ;;  %v1092_v12 = vrot.slane %v1039_v2, 6  ;;  %v851_v53 = vrot.slane %v843_v30, 1  ;;  %v852_v37 = vrot.slane %v844_v38, 1  ;;  %2327 = vmatpush.bf16.msrb.mxu0 %v3976_v58  ;;  %v4482_v61 = vld [vmem:[#allocation9 + $0x4f4] sm:$0xf0] }
 0x101   :  { %v846_v39 = vpack.c.b16 %v5588_v33, %v5587_v21  ;;  %v1073_v26 = vsel %vm5068_vm5, %v3466_v6, %v1072_v35  ;;  %v3904_v19 = vor.u32 %v4428_v22, %v3903_v55  ;;  %v853_v50 = vrot.slane %v845_v46, 1 }
 0x102   :  { %v1093_v28 = vsel %vm5068_vm5, %v3471_v32, %v1092_v12  ;;  %v1314_v62 = vunpack.c.l.b16 %v1073_v26  ;;  %v1315_v59 = vunpack.c.h.b16 %v1073_v26  ;;  %v961_v23 = vunpack.c.l.b16 %v851_v53 }
 0x103   :  { %v1324_v49 = vunpack.c.l.b16 %v1093_v28  ;;  %v1325_v47 = vunpack.c.h.b16 %v1093_v28  ;;  %v854_v11 = vrot.slane %v846_v39, 1  ;;  %v962_v7 = vunpack.c.l.b16 %v852_v37  ;;  %2309 = vmatpush.bf16.msra.mxu3 %v3904_v19 }
 0x104   :  { %v969_v27 = vunpack.c.h.b16 %v851_v53  ;;  %v970_v25 = vunpack.c.h.b16 %v852_v37  ;;  %v977_v52 = vunpack.c.l.b16 %v853_v50  ;;  %v985_v55 = vunpack.c.h.b16 %v853_v50  ;;  %v4464_v50 = vld [vmem:[#allocation9 + $0x464] sm:$0xf0] }
 0x105   :  { %v5195_v43 = vpack.c.b16 %v1324_v49, %v1314_v62  ;;  %v5197_v2 = vpack.c.b16 %v1325_v47, %v1315_v59  ;;  %v978_v58 = vunpack.c.l.b16 %v854_v11  ;;  %v986_v22 = vunpack.c.h.b16 %v854_v11  ;;  %v4426_v62 = vld [vmem:[#allocation9 + $0x334] sm:$0xf0]  ;;  %v4047_v59 = vld [vmem:[#allocation9 + $0x460] sm:$0xf] }
 0x106   :  { %2205 = vmatmul.bf16.gmra.mxu1 %v5167_v29  ;;  %2224 = vmatmul.bf16.gmra.mxu2 %v5169_v31  ;;  %v1025_v6 = vpack.c.b16 %v962_v7, %v961_v23  ;;  %v1030_v35 = vpack.c.b16 %v970_v25, %v969_v27  ;;  %v4056_v30 = vor.u32 %v4466_v0, %v4055_v20  ;;  %v808_v46 = vrot.slane %v806_v24, 1  ;;  %v3895_v24 = vld [vmem:[#allocation9 + $0x330] sm:$0xf]  ;;  %v4111_v20 = vld [vmem:[#allocation9 + $0x4e0] sm:$0xf] }
 0x107   :  { %v1035_v38 = vpack.c.b16 %v978_v58, %v977_v52  ;;  %v4120_v32 = vor.u32 %v4482_v61, %v4119_v1  ;;  %v3968_v12 = vor.u32 %v4444_v13, %v3967_v51  ;;  %v1040_v21 = vpack.c.b16 %v986_v22, %v985_v55  ;;  %v3959_v7 = vld [vmem:[#allocation9 + $0x3b0] sm:$0xf]  ;;  %v4442_v27 = vld [vmem:[#allocation9 + $0x3b4] sm:$0xf0]  ;;  %v3887_v13 = vld [vmem:[#allocation9 + $0x320] sm:$0xf] }
 0x108   :  { %v3467_v33 = vrot.slane %v1025_v6, 10  ;;  %v1076_v39 = vrot.slane %v1030_v35, 6  ;;  %2344 = vmatpush.bf16.msrb.mxu1 %v4056_v30  ;;  %v811_v26 = vshrl.u32 %v5129_v16, 16  ;;  %2238 = vmatmul.bf16.vlgmr.msrb.gmra.mxu3 %v5195_v43  ;;  %v5206_v37 = vor.u32 %v808_v46, %v804_v56  ;;  %v4480_v56 = vld [vmem:[#allocation9 + $0x4e4] sm:$0xf0] }
 0x109   :  { %2257 = vmatmul.bf16.vlgmr.msra.gmra.mxu0 %v5197_v2  ;;  %v3472_v53 = vrot.slane %v1035_v38, 10  ;;  %v813_v19 = vshll.u32 %v5129_v16, 16  ;;  %v818_v28 = vshrl.u32 %v5133_v18, 16  ;;  %v1096_v47 = vrot.slane %v1040_v21, 6  ;;  %2363 = vmatpush.bf16.msrb.mxu2 %v4120_v32  ;;  %v4039_v35 = vld [vmem:[#allocation9 + $0x450] sm:$0xf] }
 0x10a   :  { %v1077_v49 = vsel %vm5068_vm5, %v3467_v33, %v1076_v39  ;;  %2328 = vmatpush.bf16.msrb.mxu0 %v3968_v12  ;;  %v820_v11 = vshll.u32 %v5133_v18, 16  ;;  %v825_v14 = vshrl.u32 %v5149_v10, 16  ;;  %v827_v1 = vshll.u32 %v5149_v10, 16  ;;  %v4424_v18 = vld [vmem:[#allocation9 + $0x324] sm:$0xf0] }
 0x10b   :  { %v1316_v23 = vunpack.c.l.b16 %v1077_v49  ;;  %v1317_v16 = vunpack.c.h.b16 %v1077_v49  ;;  %v815_v0 = vrot.slane %v813_v19, 1  ;;  %v1097_v25 = vsel %vm5068_vm5, %v3472_v53, %v1096_v47  ;;  %v4462_v30 = vld [vmem:[#allocation9 + $0x454] sm:$0xf0]  ;;  %v4103_v46 = vld [vmem:[#allocation9 + $0x4d0] sm:$0xf] }
 0x10c   :  { %v822_v52 = vrot.slane %v820_v11, 1  ;;  %v991_v61 = vunpack.c.l.b16 %v5206_v37  ;;  %v999_v51 = vunpack.c.h.b16 %v5206_v37  ;;  %v1326_v58 = vunpack.c.l.b16 %v1097_v25  ;;  %v4478_v21 = vld [vmem:[#allocation9 + $0x4d4] sm:$0xf0]  ;;  %v3951_v33 = vld [vmem:[#allocation9 + $0x3a0] sm:$0xf] }
 0x10d   :  { %v1327_v55 = vunpack.c.h.b16 %v1097_v25  ;;  %v816_v22 = vor.u32 %v815_v0, %v811_v26  ;;  %v829_v6 = vrot.slane %v827_v1, 1  ;;  %v3896_v10 = vor.u32 %v4426_v62, %v3895_v24  ;;  %v4440_v49 = vld [vmem:[#allocation9 + $0x3a4] sm:$0xf0]  ;;  %v3879_v47 = vld [vmem:[#allocation9 + $0x310] sm:$0xf] }
 0x10e   :  { %v823_v38 = vor.u32 %v822_v52, %v818_v28  ;;  %v4048_v32 = vor.u32 %v4464_v50, %v4047_v59  ;;  %v4112_v12 = vor.u32 %v4480_v56, %v4111_v20  ;;  %v5219_v39 = vpack.c.b16 %v1326_v58, %v1316_v23  ;;  %v4422_v11 = vld [vmem:[#allocation9 + $0x314] sm:$0xf0]  ;;  %v4031_v24 = vld [vmem:[#allocation9 + $0x440] sm:$0xf]  ;;  %v4460_v62 = vld [vmem:[#allocation9 + $0x444] sm:$0xf0] }
 0x10f   :  { %v5221_v53 = vpack.c.b16 %v1327_v55, %v1317_v16  ;;  %v830_v37 = vor.u32 %v829_v6, %v825_v14  ;;  %v992_v19 = vunpack.c.l.b16 %v816_v22  ;;  %v1000_v26 = vunpack.c.h.b16 %v816_v22  ;;  %2310 = vmatpush.bf16.msra.mxu3 %v3896_v10  ;;  %v4095_v59 = vld [vmem:[#allocation9 + $0x4c0] sm:$0xf]  ;;  %v4476_v16 = vld [vmem:[#allocation9 + $0x4c4] sm:$0xf0]  ;;  %v3943_v14 = vld [vmem:[#allocation9 + $0x390] sm:$0xf] }
 0x110   :  { %v1007_v0 = vunpack.c.l.b16 %v823_v38  ;;  %v1015_v1 = vunpack.c.h.b16 %v823_v38  ;;  %2345 = vmatpush.bf16.msrb.mxu1 %v4048_v32  ;;  %v3960_v28 = vor.u32 %v4442_v27, %v3959_v7  ;;  %2364 = vmatpush.bf16.msrb.mxu2 %v4112_v12  ;;  %v3888_v23 = vor.u32 %v4424_v18, %v3887_v13  ;;  %v4438_v25 = vld [vmem:[#allocation9 + $0x394] sm:$0xf0]  ;;  %v5223_v6 = vld [vmem:[#allocation2 + $0x20] sm:$0x88] }
 0x111   :  { %v1008_v50 = vunpack.c.l.b16 %v830_v37  ;;  %v1016_v20 = vunpack.c.h.b16 %v830_v37  ;;  %v1044_v56 = vpack.c.b16 %v992_v19, %v991_v61  ;;  %v1049_v52 = vpack.c.b16 %v1000_v26, %v999_v51  ;;  %v4420_v26 = vld [vmem:[#allocation9 + $0x304] sm:$0xf0] }
 0x112   :  { %2329 = vmatpush.bf16.msrb.mxu0 %v3960_v28  ;;  %v4040_v58 = vor.u32 %v4462_v30, %v4039_v35  ;;  %v4104_v55 = vor.u32 %v4478_v21, %v4103_v46  ;;  %v3952_v22 = vor.u32 %v4440_v49, %v3951_v33  ;;  %v3880_v10 = vor.u32 %v4422_v11, %v3879_v47  ;;  %v3871_v30 = vld [vmem:[#allocation9 + $0x300] sm:$0xf] }
 0x113   :  { %v1054_v38 = vpack.c.b16 %v1008_v50, %v1007_v0  ;;  %v1059_v7 = vpack.c.b16 %v1016_v20, %v1015_v1  ;;  %v3476_v27 = vrot.slane %v1044_v56, 10  ;;  %v1112_v32 = vrot.slane %v1049_v52, 6  ;;  %2311 = vmatpush.bf16.msra.mxu3 %v3888_v23  ;;  %v4023_v0 = vld [vmem:[#allocation9 + $0x430] sm:$0xf]  ;;  %v4458_v1 = vld [vmem:[#allocation9 + $0x434] sm:$0xf0] }
 0x114   :  { %2346 = vmatpush.bf16.msrb.mxu1 %v4040_v58  ;;  %v4032_v61 = vor.u32 %v4460_v62, %v4031_v24  ;;  %v4096_v12 = vor.u32 %v4476_v16, %v4095_v59  ;;  %v3944_v13 = vor.u32 %v4438_v25, %v3943_v14  ;;  %2365 = vmatpush.bf16.msrb.mxu2 %v4104_v55  ;;  %v841_v51 = vunpack.c.l.b16 %v5223_v6  ;;  %v4087_v55 = vld [vmem:[#allocation9 + $0x4b0] sm:$0xf] }
 0x115   :  { %v3481_v18 = vrot.slane %v1054_v38, 10  ;;  %v1132_v37 = vrot.slane %v1059_v7, 6  ;;  %v5571_v35 = vunpack.c.h.b16 %v5223_v6  ;;  %v1113_v46 = vsel %vm5068_vm5, %v3476_v27, %v1112_v32  ;;  %v3935_v32 = vld [vmem:[#allocation9 + $0x380] sm:$0xf] }
 0x116   :  { %2276 = vmatmul.bf16.vlgmr.msra.gmra.mxu1 %v5219_v39  ;;  %2295 = vmatmul.bf16.vlgmr.msra.gmra.mxu2 %v5221_v53  ;;  %v5589_v21 = vunpack.c.l.b16 %v5076_v9  ;;  %v5590_v33 = vunpack.c.l.b16 %v5091_v48  ;;  %v5591_v49 = vunpack.c.h.b16 %v5076_v9  ;;  %v5592_v47 = vunpack.c.h.b16 %v5091_v48 }
 0x117   :  { %v1133_v28 = vsel %vm5068_vm5, %v3481_v18, %v1132_v37  ;;  %v1334_v24 = vunpack.c.l.b16 %v1113_v46  ;;  %v1335_v62 = vunpack.c.h.b16 %v1113_v46  ;;  %2330 = vmatpush.bf16.msrb.mxu0 %v3952_v22  ;;  %v5593_v59 = vunpack.c.l.b16 %v5109_v60  ;;  %2312 = vmatpush.bf16.msra.mxu3 %v3880_v10  ;;  %v4474_v22 = vld [vmem:[#allocation9 + $0x4b4] sm:$0xf0]  ;;  %v5253_v18 = vld [vmem:[#allocation2 + $0x18] sm:$0xff] }
 0x118   :  { %v847_v19 = vpack.c.b16 %v5590_v33, %v5589_v21  ;;  %v848_v11 = vpack.c.b16 %v5592_v47, %v5591_v49  ;;  %v1344_v20 = vunpack.c.l.b16 %v1133_v28  ;;  %v1345_v56 = vunpack.c.h.b16 %v1133_v28  ;;  %2347 = vmatpush.bf16.msrb.mxu1 %v4032_v61  ;;  %2366 = vmatpush.bf16.msrb.mxu2 %v4096_v12  ;;  %v4436_v61 = vld [vmem:[#allocation9 + $0x384] sm:$0xf0] }
 0x119   :  { %v849_v50 = vpack.c.b16 %v5593_v59, %v841_v51  ;;  %v5594_v48 = vunpack.c.h.b16 %v5109_v60  ;;  %v3872_v52 = vor.u32 %v4420_v26, %v3871_v30  ;;  %v4024_v58 = vor.u32 %v4458_v1, %v4023_v0 }
 0x11a   :  { %v855_v16 = vrot.slane %v847_v19, 1  ;;  %v856_v14 = vrot.slane %v848_v11, 1  ;;  %v5249_v38 = vpack.c.b16 %v1344_v20, %v1334_v24  ;;  %v5251_v7 = vpack.c.b16 %v1345_v56, %v1335_v62 }
 0x11b   :  { %v850_v23 = vpack.c.b16 %v5594_v48, %v5571_v35  ;;  %v857_v25 = vrot.slane %v849_v50, 1  ;;  %2331 = vmatpush.bf16.msrb.mxu0 %v3944_v13  ;;  %v4088_v19 = vor.u32 %v4474_v22, %v4087_v55  ;;  %2313 = vmatpush.bf16.msra.mxu3 %v3872_v52  ;;  %v3936_v11 = vor.u32 %v4436_v61, %v3935_v32  ;;  %v4456_v52 = vld [vmem:[#allocation9 + $0x424] sm:$0xf0]  ;;  %v4079_v22 = vld [vmem:[#allocation9 + $0x4a0] sm:$0xf] }
 0x11c   :  { %v993_v10 = vunpack.c.l.b16 %v855_v16  ;;  %v994_v60 = vunpack.c.l.b16 %v856_v14  ;;  %v1001_v37 = vunpack.c.h.b16 %v855_v16  ;;  %v1002_v12 = vunpack.c.h.b16 %v856_v14  ;;  %2243 = vmatmul.bf16.gmra.mxu3 %v5249_v38  ;;  %2262 = vmatmul.bf16.gmra.mxu0 %v5251_v7 }
 0x11d   :  { %v858_v27 = vrot.slane %v850_v23, 1  ;;  %v1009_v46 = vunpack.c.l.b16 %v857_v25  ;;  %v1017_v21 = vunpack.c.h.b16 %v857_v25  ;;  %2348 = vmatpush.bf16.msrb.mxu1 %v4024_v58  ;;  %v5258_v26 = vunpack.c.l.b16 %v5253_v18  ;;  %2367 = vmatpush.bf16.msrb.mxu2 %v4088_v19  ;;  %v4015_v25 = vld [vmem:[#allocation9 + $0x420] sm:$0xf]  ;;  %v4353_v19 = vld [vmem:[#allocation9 + $0xf4] sm:$0xf] }
 0x11e   :  { %v1045_v49 = vpack.c.b16 %v994_v60, %v993_v10  ;;  %v1050_v47 = vpack.c.b16 %v1002_v12, %v1001_v37  ;;  %v871_v1 = vpack.c.b16 %v5050_v41, %v835_v54  ;;  %v872_v28 = vpack.c.b16 %v5054_v44, %v836_v8  ;;  %v4337_v37 = vld [vmem:[#allocation9 + $0x74] sm:$0xf]  ;;  %v3545_v12 = vld [vmem:[#allocation9 + $0x78] sm:$0xf0] }
 0x11f   :  { %v1010_v30 = vunpack.c.l.b16 %v858_v27  ;;  %v1018_v33 = vunpack.c.h.b16 %v858_v27  ;;  %2332 = vmatpush.bf16.msrb.mxu0 %v3936_v11  ;;  %v873_v59 = vpack.c.b16 %v5052_v42, %v837_v17  ;;  %v5595_v50 = vunpack.c.h.b16 %v5047_v40  ;;  %v4472_v27 = vld [vmem:[#allocation9 + $0x4a4] sm:$0xf0] }
 0x120   :  { %v3477_v24 = vrot.slane %v1045_v49, 10  ;;  %v1116_v62 = vrot.slane %v1050_v47, 6  ;;  %v880_v23 = vshrl.u32 %v871_v1, 16  ;;  %v883_v16 = vshll.u32 %v871_v1, 16  ;;  %v3609_v49 = vld [vmem:[#allocation9 + $0xf8] sm:$0xf0] }
 0x121   :  { %v1055_v13 = vpack.c.b16 %v1010_v30, %v1009_v46  ;;  %v1060_v0 = vpack.c.b16 %v1018_v33, %v1017_v21  ;;  %v874_v20 = vpack.c.b16 %v5056_v45, %v5595_v50  ;;  %v888_v54 = vshrl.u32 %v872_v28, 16  ;;  %v4007_v47 = vld [vmem:[#allocation9 + $0x410] sm:$0xf] }
 0x122   :  { %v1117_v34 = vsel %vm5068_vm5, %v3477_v24, %v1116_v62  ;;  %v891_v8 = vshll.u32 %v872_v28, 16  ;;  %v896_v14 = vshrl.u32 %v873_v59, 16  ;;  %v882_v40 = vrot.slane %v880_v23, 1  ;;  %v4454_v28 = vld [vmem:[#allocation9 + $0x414] sm:$0xf0] }
 0x123   :  { %v3482_v56 = vrot.slane %v1055_v13, 10  ;;  %v1136_v48 = vrot.slane %v1060_v0, 6  ;;  %v1336_v17 = vunpack.c.l.b16 %v1117_v34  ;;  %v1337_v55 = vunpack.c.h.b16 %v1117_v34  ;;  %v4071_v24 = vld [vmem:[#allocation9 + $0x490] sm:$0xf]  ;;  %v4470_v23 = vld [vmem:[#allocation9 + $0x494] sm:$0xf0] }
 0x124   :  { %v885_v61 = vrot.slane %v883_v16, 2  ;;  %v890_v60 = vrot.slane %v888_v54, 1  ;;  %v893_v46 = vrot.slane %v891_v8, 2  ;;  %v898_v30 = vrot.slane %v896_v14, 1  ;;  %v4335_v16 = vld [vmem:[#allocation9 + $0x64] sm:$0xf] }
 0x125   :  { %v1137_v58 = vsel %vm5068_vm5, %v3482_v56, %v1136_v48  ;;  %v899_v21 = vshll.u32 %v873_v59, 16  ;;  %v904_v33 = vshrl.u32 %v874_v20, 16  ;;  %v907_v1 = vshll.u32 %v874_v20, 16  ;;  %v3537_v14 = vld [vmem:[#allocation9 + $0x68] sm:$0xf0] }
 0x126   :  { %v1346_v10 = vunpack.c.l.b16 %v1137_v58  ;;  %v1347_v32 = vunpack.c.h.b16 %v1137_v58  ;;  %v886_v0 = vor.u32 %v885_v61, %v882_v40  ;;  %v894_v62 = vor.u32 %v893_v46, %v890_v60  ;;  %v4351_v58 = vld [vmem:[#allocation9 + $0xe4] sm:$0xf] }
 0x127   :  { %v901_v50 = vrot.slane %v899_v21, 2  ;;  %v906_v56 = vrot.slane %v904_v33, 1  ;;  %v4016_v48 = vor.u32 %v4456_v52, %v4015_v25  ;;  %v909_v59 = vrot.slane %v907_v1, 2  ;;  %v4452_v25 = vld [vmem:[#allocation9 + $0x404] sm:$0xf0] }
 0x128   :  { %v5276_v11 = vpack.c.b16 %v1346_v10, %v1336_v17  ;;  %v5278_v13 = vpack.c.b16 %v1347_v32, %v1337_v55  ;;  %v963_v34 = vunpack.c.l.b16 %v886_v0  ;;  %v971_v54 = vunpack.c.h.b16 %v886_v0  ;;  %v3601_v10 = vld [vmem:[#allocation9 + $0xe8] sm:$0xf0]  ;;  %v3999_v32 = vld [vmem:[#allocation9 + $0x400] sm:$0xf]  ;;  %v4468_v33 = vld [vmem:[#allocation9 + $0x484] sm:$0xf0] }
 0x129   :  { %v4080_v8 = vor.u32 %v4472_v27, %v4079_v22  ;;  %v902_v17 = vor.u32 %v901_v50, %v898_v30  ;;  %v964_v20 = vunpack.c.l.b16 %v894_v62  ;;  %v972_v55 = vunpack.c.h.b16 %v894_v62  ;;  %2349 = vmatpush.bf16.msrb.mxu1 %v4016_v48  ;;  %v4063_v21 = vld [vmem:[#allocation9 + $0x480] sm:$0xf]  ;;  %v4333_v1 = vld [vmem:[#allocation9 + $0x54] sm:$0xf]  ;;  %v3529_v30 = vld [vmem:[#allocation9 + $0x58] sm:$0xf0] }
 0x12a   :  { %2281 = vmatmul.bf16.gmra.mxu1 %v5276_v11  ;;  %2300 = vmatmul.bf16.gmra.mxu2 %v5278_v13  ;;  %v3548_v40 = vor.u32 %v4337_v37, %v3545_v12  ;;  %v910_v52 = vor.u32 %v909_v59, %v906_v56  ;;  %v3612_v61 = vor.u32 %v4353_v19, %v3609_v49  ;;  %v4349_v62 = vld [vmem:[#allocation9 + $0xd4] sm:$0xf]  ;;  %v3593_v50 = vld [vmem:[#allocation9 + $0xd8] sm:$0xf0] }
 0x12b   :  { %2368 = vmatpush.bf16.msrb.mxu2 %v4080_v8  ;;  %v4008_v60 = vor.u32 %v4454_v28, %v4007_v47  ;;  %v4072_v46 = vor.u32 %v4470_v23, %v4071_v24  ;;  %v979_v0 = vunpack.c.l.b16 %v902_v17  ;;  %v987_v22 = vunpack.c.h.b16 %v902_v17  ;;  %v3521_v8 = vld [vmem:[#allocation9 + $0x48] sm:$0xf0]  ;;  %v4369_v17 = vld [vmem:[#allocation9 + $0x174] sm:$0xf] }
 0x12c   :  { %v1026_v27 = vpack.c.b16 %v964_v20, %v963_v34  ;;  %v1031_v35 = vpack.c.b16 %v972_v55, %v971_v54  ;;  %2382 = vmatpush.bf16.msrb.mxu3 %v3548_v40  ;;  %v980_v37 = vunpack.c.l.b16 %v910_v52  ;;  %v988_v12 = vunpack.c.h.b16 %v910_v52  ;;  %2401 = vmatpush.bf16.msra.mxu0 %v3612_v61  ;;  %v4331_v54 = vld [vmem:[#allocation9 + $0x44] sm:$0xf]  ;;  %v4385_v55 = vld [vmem:[#allocation9 + $0x1f4] sm:$0xf]  ;;  %v3737_v40 = vld [vmem:[#allocation9 + $0x1f8] sm:$0xf0] }
 0x12d   :  { %v3540_v48 = vor.u32 %v4335_v16, %v3537_v14  ;;  %v3604_v56 = vor.u32 %v4351_v58, %v3601_v10  ;;  %2350 = vmatpush.bf16.msrb.mxu1 %v4008_v60  ;;  %v4000_v49 = vor.u32 %v4452_v25, %v3999_v32  ;;  %v4064_v47 = vor.u32 %v4468_v33, %v4063_v21  ;;  %v3673_v58 = vld [vmem:[#allocation9 + $0x178] sm:$0xf0] }
 0x12e   :  { %v3468_v59 = vrot.slane %v1026_v27, 10  ;;  %v1080_v19 = vrot.slane %v1031_v35, 6  ;;  %v1036_v28 = vpack.c.b16 %v980_v37, %v979_v0  ;;  %v1041_v24 = vpack.c.b16 %v988_v12, %v987_v22 }
 0x12f   :  { %2369 = vmatpush.bf16.msrb.mxu2 %v4072_v46  ;;  %v3532_v23 = vor.u32 %v4333_v1, %v3529_v30  ;;  %v3596_v34 = vor.u32 %v4349_v62, %v3593_v50  ;;  %v943_v16 = vpack.c.b16 %v5050_v41, %v5050_v41  ;;  %v944_v35 = vpack.c.b16 %v5054_v44, %v5054_v44  ;;  %v4347_v30 = vld [vmem:[#allocation9 + $0xc4] sm:$0xf]  ;;  %v3585_v62 = vld [vmem:[#allocation9 + $0xc8] sm:$0xf0] }
 0x130   :  { %v1081_v20 = vsel %vm5068_vm5, %v3468_v59, %v1080_v19  ;;  %2383 = vmatpush.bf16.msrb.mxu3 %v3540_v48  ;;  %v945_v14 = vpack.c.b16 %v5052_v42, %v5052_v42  ;;  %v3473_v10 = vrot.slane %v1036_v28, 10  ;;  %v1100_v32 = vrot.slane %v1041_v24, 6  ;;  %2402 = vmatpush.bf16.msra.mxu0 %v3604_v56  ;;  %v730_v48 = vld [vmem:[#allocation2 + $0x38] sm:$0xff] }
 0x131   :  { %v1318_v25 = vunpack.c.l.b16 %v1081_v20  ;;  %v1319_v52 = vunpack.c.h.b16 %v1081_v20  ;;  %2351 = vmatpush.bf16.msrb.mxu1 %v4000_v49  ;;  %v946_v61 = vpack.c.b16 %v5056_v45, %v5056_v45  ;;  %v951_v60 = vrot.slane %v943_v16, 6 }
 0x132   :  { %v952_v41 = vrot.slane %v944_v35, 6  ;;  %v953_v46 = vrot.slane %v945_v14, 6  ;;  %v1101_v44 = vsel %vm5068_vm5, %v3473_v10, %v1100_v32  ;;  %v3524_v42 = vor.u32 %v4331_v54, %v3521_v8 }
 0x133   :  { %2370 = vmatpush.bf16.msrb.mxu2 %v4064_v47  ;;  %v3676_v21 = vor.u32 %v4369_v17, %v3673_v58  ;;  %v3740_v33 = vor.u32 %v4385_v55, %v3737_v40  ;;  %v1328_v1 = vunpack.c.l.b16 %v1101_v44  ;;  %v1329_v0 = vunpack.c.h.b16 %v1101_v44 }
 0x134   :  { %2384 = vmatpush.bf16.msrb.mxu3 %v3532_v23  ;;  %v954_v22 = vrot.slane %v946_v61, 6  ;;  %v965_v27 = vunpack.c.l.b16 %v951_v60  ;;  %2403 = vmatpush.bf16.msra.mxu0 %v3596_v34  ;;  %v966_v50 = vunpack.c.l.b16 %v952_v41  ;;  %v973_v45 = vunpack.c.h.b16 %v951_v60 }
 0x135   :  { %v974_v37 = vunpack.c.h.b16 %v952_v41  ;;  %v981_v12 = vunpack.c.l.b16 %v953_v46  ;;  %2420 = vmatpush.bf16.msra.mxu1 %v3676_v21  ;;  %v5294_v56 = vpack.c.b16 %v1328_v1, %v1318_v25  ;;  %v5296_v59 = vpack.c.b16 %v1329_v0, %v1319_v52  ;;  %v4329_v0 = vld [vmem:[#allocation9 + $0x34] sm:$0xf] }
 0x136   :  { %v982_v19 = vunpack.c.l.b16 %v954_v22  ;;  %v989_v49 = vunpack.c.h.b16 %v953_v46  ;;  %v990_v47 = vunpack.c.h.b16 %v954_v22  ;;  %v1027_v28 = vpack.c.b16 %v966_v50, %v965_v27  ;;  %v4367_v50 = vld [vmem:[#allocation9 + $0x164] sm:$0xf] }
 0x137   :  { %2439 = vmatpush.bf16.msra.mxu2 %v3740_v33  ;;  %v1032_v24 = vpack.c.b16 %v974_v37, %v973_v45  ;;  %v3588_v23 = vor.u32 %v4347_v30, %v3585_v62  ;;  %2314 = vmatmul.bf16.vlgmr.msra.gmra.mxu3 %v5294_v56  ;;  %v5301_v54 = vunpack.c.h.b16 %v5253_v18  ;;  %v5303_v8 = vunpack.c.l.b16 %v730_v48  ;;  %v3665_v45 = vld [vmem:[#allocation9 + $0x168] sm:$0xf0]  ;;  %v4383_v37 = vld [vmem:[#allocation9 + $0x1e4] sm:$0xf] }
 0x138   :  { %2333 = vmatmul.bf16.vlgmr.msrb.gmra.mxu0 %v5296_v59  ;;  %v1037_v34 = vpack.c.b16 %v982_v19, %v981_v12  ;;  %v5305_v17 = vunpack.c.h.b16 %v730_v48  ;;  %v1042_v20 = vpack.c.b16 %v990_v47, %v989_v49  ;;  %v3469_v16 = vrot.slane %v1027_v28, 10  ;;  %2385 = vmatpush.bf16.msrb.mxu3 %v3524_v42  ;;  %v3729_v12 = vld [vmem:[#allocation9 + $0x1e8] sm:$0xf0]  ;;  %v4345_v48 = vld [vmem:[#allocation9 + $0xb4] sm:$0xf] }
 0x139   :  { %v1084_v35 = vrot.slane %v1032_v24, 6  ;;  %2404 = vmatpush.bf16.msra.mxu0 %v3588_v23  ;;  %v5596_v14 = vunpack.c.l.b16 %v5076_v9  ;;  %v5597_v40 = vunpack.c.h.b16 %v5076_v9  ;;  %v877_v18 = vpack.c.b16 %v5303_v8, %v841_v51  ;;  %v3577_v19 = vld [vmem:[#allocation9 + $0xb8] sm:$0xf0]  ;;  %v4327_v23 = vld [vmem:[#allocation9 + $0x24] sm:$0xf] }
 0x13a   :  { %v3474_v55 = vrot.slane %v1037_v34, 10  ;;  %v5598_v32 = vunpack.c.h.b16 %v5223_v6  ;;  %v1104_v61 = vrot.slane %v1042_v20, 6  ;;  %v3513_v6 = vld [vmem:[#allocation9 + $0x38] sm:$0xf0]  ;;  %v3505_v34 = vld [vmem:[#allocation9 + $0x28] sm:$0xf0] }
 0x13b   :  { %v875_v58 = vpack.c.b16 %v5258_v26, %v5596_v14  ;;  %v876_v10 = vpack.c.b16 %v5301_v54, %v5597_v40  ;;  %v1085_v52 = vsel %vm5068_vm5, %v3469_v16, %v1084_v35  ;;  %v928_v51 = vshrl.u32 %v877_v18, 16 }
 0x13c   :  { %v878_v25 = vpack.c.b16 %v5305_v17, %v5598_v32  ;;  %v1320_v46 = vunpack.c.l.b16 %v1085_v52  ;;  %v1321_v44 = vunpack.c.h.b16 %v1085_v52  ;;  %v1105_v21 = vsel %vm5068_vm5, %v3474_v55, %v1104_v61  ;;  %v3657_v55 = vld [vmem:[#allocation9 + $0x158] sm:$0xf0]  ;;  %v4381_v61 = vld [vmem:[#allocation9 + $0x1d4] sm:$0xf] }
 0x13d   :  { %v912_v60 = vshrl.u32 %v875_v58, 16  ;;  %v915_v41 = vshll.u32 %v875_v58, 16  ;;  %v920_v42 = vshrl.u32 %v876_v10, 16  ;;  %v923_v9 = vshll.u32 %v876_v10, 16  ;;  %v4365_v58 = vld [vmem:[#allocation9 + $0x154] sm:$0xf] }
 0x13e   :  { %v1330_v22 = vunpack.c.l.b16 %v1105_v21  ;;  %v1331_v27 = vunpack.c.h.b16 %v1105_v21  ;;  %v930_v47 = vrot.slane %v928_v51, 1  ;;  %v931_v28 = vshll.u32 %v877_v18, 16  ;;  %v4325_v51 = vld [vmem:[#allocation9 + $0x14] sm:$0xf] }
 0x13f   :  { %v914_v33 = vrot.slane %v912_v60, 1  ;;  %v917_v1 = vrot.slane %v915_v41, 2  ;;  %v922_v30 = vrot.slane %v920_v42, 1  ;;  %v925_v62 = vrot.slane %v923_v9, 2  ;;  %v3721_v60 = vld [vmem:[#allocation9 + $0x1d8] sm:$0xf0] }
 0x140   :  { %v936_v24 = vshrl.u32 %v878_v25, 16  ;;  %v5323_v20 = vpack.c.b16 %v1330_v22, %v1320_v46  ;;  %v5325_v16 = vpack.c.b16 %v1331_v27, %v1321_v44  ;;  %v939_v14 = vshll.u32 %v878_v25, 16  ;;  %v4343_v44 = vld [vmem:[#allocation9 + $0xa4] sm:$0xf]  ;;  %v3569_v9 = vld [vmem:[#allocation9 + $0xa8] sm:$0xf0] }
 0x141   :  { %v918_v49 = vor.u32 %v917_v1, %v914_v33  ;;  %v926_v35 = vor.u32 %v925_v62, %v922_v30  ;;  %v933_v40 = vrot.slane %v931_v28, 2  ;;  %v3516_v42 = vor.u32 %v4329_v0, %v3513_v6  ;;  %v3497_v22 = vld [vmem:[#allocation9 + $0x18] sm:$0xf0]  ;;  %v4363_v27 = vld [vmem:[#allocation9 + $0x144] sm:$0xf] }
 0x142   :  { %v938_v10 = vrot.slane %v936_v24, 1  ;;  %2352 = vmatmul.bf16.vlgmr.msrb.gmra.mxu1 %v5323_v20  ;;  %2371 = vmatmul.bf16.vlgmr.msrb.gmra.mxu2 %v5325_v16  ;;  %v941_v18 = vrot.slane %v939_v14, 2  ;;  %v3668_v25 = vor.u32 %v4367_v50, %v3665_v45  ;;  %v3732_v33 = vor.u32 %v4383_v37, %v3729_v12  ;;  %v3649_v24 = vld [vmem:[#allocation9 + $0x148] sm:$0xf0]  ;;  %v4341_v50 = vld [vmem:[#allocation9 + $0x94] sm:$0xf] }
 0x143   :  { %v995_v32 = vunpack.c.l.b16 %v918_v49  ;;  %v1003_v52 = vunpack.c.h.b16 %v918_v49  ;;  %v996_v41 = vunpack.c.l.b16 %v926_v35  ;;  %v1004_v46 = vunpack.c.h.b16 %v926_v35  ;;  %2386 = vmatpush.bf16.msrb.mxu3 %v3516_v42  ;;  %v3713_v14 = vld [vmem:[#allocation9 + $0x1c8] sm:$0xf0]  ;;  %v3561_v45 = vld [vmem:[#allocation9 + $0x98] sm:$0xf0]  ;;  %v4377_v42 = vld [vmem:[#allocation9 + $0x1b4] sm:$0xf] }
 0x144   :  { %v934_v21 = vor.u32 %v933_v40, %v930_v47  ;;  %v3580_v1 = vor.u32 %v4345_v48, %v3577_v19  ;;  %v942_v30 = vor.u32 %v941_v18, %v938_v10  ;;  %v3508_v28 = vor.u32 %v4327_v23, %v3505_v34  ;;  %2421 = vmatpush.bf16.msra.mxu1 %v3668_v25  ;;  %v4323_v34 = vld [vmem:[#allocation9 + $0x4] sm:$0xf] }
 0x145   :  { %v1046_v62 = vpack.c.b16 %v996_v41, %v995_v32  ;;  %v1051_v49 = vpack.c.b16 %v1004_v46, %v1003_v52  ;;  %2440 = vmatpush.bf16.msra.mxu2 %v3732_v33  ;;  %v3660_v0 = vor.u32 %v4365_v58, %v3657_v55  ;;  %v3724_v6 = vor.u32 %v4381_v61, %v3721_v60  ;;  %v3489_v55 = vld [vmem:[#allocation9 + $0x8] sm:$0xf0]  ;;  %v5331_v61 = vld [vmem:[#allocation9 + $0x134] sm:$0xf]  ;;  %v5333_v60 = vld [vmem:[#allocation9 + $0x138] sm:$0xf0] }
 0x146   :  { %v1011_v4 = vunpack.c.l.b16 %v934_v21  ;;  %v1019_v35 = vunpack.c.h.b16 %v934_v21  ;;  %v1012_v37 = vunpack.c.l.b16 %v942_v30  ;;  %v1020_v12 = vunpack.c.h.b16 %v942_v30  ;;  %2405 = vmatpush.bf16.msra.mxu0 %v3580_v1 }
 0x147   :  { %v3478_v48 = vrot.slane %v1046_v62, 10  ;;  %v1120_v19 = vrot.slane %v1051_v49, 6  ;;  %v3572_v47 = vor.u32 %v4343_v44, %v3569_v9  ;;  %v3500_v40 = vor.u32 %v4325_v51, %v3497_v22  ;;  %2387 = vmatpush.bf16.msrb.mxu3 %v3508_v28  ;;  %v3705_v44 = vld [vmem:[#allocation9 + $0x1b8] sm:$0xf0] }
 0x148   :  { %v3652_v10 = vor.u32 %v4363_v27, %v3649_v24  ;;  %v3716_v23 = vor.u32 %v4379_v5, %v3713_v14  ;;  %v1056_v32 = vpack.c.b16 %v1012_v37, %v1011_v4  ;;  %v1061_v52 = vpack.c.b16 %v1020_v12, %v1019_v35  ;;  %2422 = vmatpush.bf16.msra.mxu1 %v3660_v0  ;;  %v3553_v14 = vld [vmem:[#allocation9 + $0x88] sm:$0xf0]  ;;  %v4359_v35 = vld [vmem:[#allocation9 + $0x124] sm:$0xf] }
 0x149   :  { %v1121_v18 = vsel %vm5068_vm5, %v3478_v48, %v1120_v19  ;;  %v3564_v58 = vor.u32 %v4341_v50, %v3561_v45  ;;  %2441 = vmatpush.bf16.msra.mxu2 %v3724_v6  ;;  %v947_v5 = vpack.c.b16 %v5258_v26, %v5258_v26  ;;  %v948_v4 = vpack.c.b16 %v5301_v54, %v5301_v54  ;;  %v3633_v37 = vld [vmem:[#allocation9 + $0x128] sm:$0xf0]  ;;  %v4375_v12 = vld [vmem:[#allocation9 + $0x1a4] sm:$0xf] }
 0x14a   :  { %v1338_v41 = vunpack.c.l.b16 %v1121_v18  ;;  %v1339_v46 = vunpack.c.h.b16 %v1121_v18  ;;  %v3483_v9 = vrot.slane %v1056_v32, 10  ;;  %v1140_v21 = vrot.slane %v1061_v52, 6  ;;  %2406 = vmatpush.bf16.msra.mxu0 %v3572_v47  ;;  %v3697_v48 = vld [vmem:[#allocation9 + $0x1a8] sm:$0xf0] }
 0x14b   :  { %v949_v25 = vpack.c.b16 %v5303_v8, %v5303_v8  ;;  %v950_v33 = vpack.c.b16 %v5305_v17, %v5305_v17  ;;  %v955_v1 = vrot.slane %v947_v5, 6  ;;  %v956_v51 = vrot.slane %v948_v4, 6  ;;  %2388 = vmatpush.bf16.msrb.mxu3 %v3500_v40  ;;  %v4339_v17 = vld [vmem:[#allocation9 + $0x84] sm:$0xf]  ;;  %v3793_v4 = vld [vmem:[#allocation9 + $0x268] sm:$0xf0] }
 0x14c   :  { %v3492_v22 = vor.u32 %v4323_v34, %v3489_v55  ;;  %v3644_v26 = vor.u32 %v5331_v61, %v5333_v60  ;;  %v1141_v54 = vsel %vm5068_vm5, %v3483_v9, %v1140_v21  ;;  %v3708_v62 = vor.u32 %v4377_v42, %v3705_v44  ;;  %2423 = vmatpush.bf16.msra.mxu1 %v3652_v10  ;;  %v3801_v34 = vld [vmem:[#allocation9 + $0x278] sm:$0xf0]  ;;  %v4417_v55 = vld [vmem:[#allocation9 + $0x2f4] sm:$0xf]  ;;  %v4415_v42 = vld [vmem:[#allocation9 + $0x2e4] sm:$0xf] }
 0x14d   :  { %v957_v27 = vrot.slane %v949_v25, 6  ;;  %v958_v30 = vrot.slane %v950_v33, 6  ;;  %v1348_v49 = vunpack.c.l.b16 %v1141_v54  ;;  %v1349_v28 = vunpack.c.h.b16 %v1141_v54  ;;  %2442 = vmatpush.bf16.msra.mxu2 %v3716_v23  ;;  %v4401_v23 = vld [vmem:[#allocation9 + $0x274] sm:$0xf]  ;;  %v3865_v61 = vld [vmem:[#allocation9 + $0x2f8] sm:$0xf0] }
 0x14e   :  { %v997_v8 = vunpack.c.l.b16 %v955_v1  ;;  %v998_v24 = vunpack.c.l.b16 %v956_v51  ;;  %2407 = vmatpush.bf16.msra.mxu0 %v3564_v58  ;;  %v1005_v0 = vunpack.c.h.b16 %v955_v1  ;;  %v1006_v6 = vunpack.c.h.b16 %v956_v51  ;;  %v3857_v33 = vld [vmem:[#allocation9 + $0x2e8] sm:$0xf0] }
 0x14f   :  { %v1013_v50 = vunpack.c.l.b16 %v957_v27  ;;  %v1014_v45 = vunpack.c.l.b16 %v958_v30  ;;  %v5347_v19 = vpack.c.b16 %v1348_v49, %v1338_v41  ;;  %v5349_v47 = vpack.c.b16 %v1349_v28, %v1339_v46  ;;  %2389 = vmatpush.bf16.msrb.mxu3 %v3492_v22  ;;  %v4399_v46 = vld [vmem:[#allocation9 + $0x264] sm:$0xf]  ;;  %v4357_v22 = vld [vmem:[#allocation9 + $0x114] sm:$0xf]  ;;  %v3689_v49 = vld [vmem:[#allocation9 + $0x198] sm:$0xf0] }
 0x150   :  { %v1021_v40 = vunpack.c.h.b16 %v957_v27  ;;  %v1022_v10 = vunpack.c.h.b16 %v958_v30  ;;  %v1047_v32 = vpack.c.b16 %v998_v24, %v997_v8  ;;  %v1052_v52 = vpack.c.b16 %v1006_v6, %v1005_v0  ;;  %2424 = vmatpush.bf16.msra.mxu1 %v3644_v26  ;;  %v3625_v27 = vld [vmem:[#allocation9 + $0x118] sm:$0xf0]  ;;  %v4373_v30 = vld [vmem:[#allocation9 + $0x194] sm:$0xf] }
 0x151   :  { %v1057_v18 = vpack.c.b16 %v1014_v45, %v1013_v50  ;;  %v3556_v58 = vor.u32 %v4339_v17, %v3553_v14  ;;  %2319 = vmatmul.bf16.gmra.mxu3 %v5347_v19  ;;  %2338 = vmatmul.bf16.gmra.mxu0 %v5349_v47  ;;  %v3636_v41 = vor.u32 %v4359_v35, %v3633_v37  ;;  %v3785_v24 = vld [vmem:[#allocation9 + $0x258] sm:$0xf0]  ;;  %v4413_v6 = vld [vmem:[#allocation9 + $0x2d4] sm:$0xf] }
 0x152   :  { %v1062_v60 = vpack.c.b16 %v1022_v10, %v1021_v40  ;;  %v3700_v5 = vor.u32 %v4375_v12, %v3697_v48  ;;  %v3479_v44 = vrot.slane %v1047_v32, 10  ;;  %v1124_v9 = vrot.slane %v1052_v52, 6  ;;  %2443 = vmatpush.bf16.msra.mxu2 %v3708_v62  ;;  %v4397_v62 = vld [vmem:[#allocation9 + $0x254] sm:$0xf]  ;;  %v3849_v50 = vld [vmem:[#allocation9 + $0x2d8] sm:$0xf0] }
 0x153   :  { %v3484_v21 = vrot.slane %v1057_v18, 10  ;;  %v3804_v25 = vor.u32 %v4401_v23, %v3801_v34  ;;  %2408 = vmatpush.bf16.msra.mxu0 %v3556_v58  ;;  %v3868_v51 = vor.u32 %v4417_v55, %v3865_v61  ;;  %v3796_v28 = vor.u32 %v4399_v46, %v3793_v4  ;;  %v4355_v12 = vld [vmem:[#allocation9 + $0x104] sm:$0xf]  ;;  %v3617_v48 = vld [vmem:[#allocation9 + $0x108] sm:$0xf0] }
 0x154   :  { %v1144_v1 = vrot.slane %v1062_v60, 6  ;;  %v1125_v54 = vsel %vm5068_vm5, %v3479_v44, %v1124_v9  ;;  %v3860_v26 = vor.u32 %v4415_v42, %v3857_v33  ;;  %2425 = vmatpush.bf16.msra.mxu1 %v3636_v41  ;;  %v3628_v45 = vor.u32 %v4357_v22, %v3625_v27  ;;  %v4371_v10 = vld [vmem:[#allocation9 + $0x184] sm:$0xf]  ;;  %v3681_v23 = vld [vmem:[#allocation9 + $0x188] sm:$0xf0] }
 0x155   :  { %2458 = vmatpush.bf16.msra.mxu3 %v3804_v25  ;;  %v1340_v17 = vunpack.c.l.b16 %v1125_v54  ;;  %v1341_v35 = vunpack.c.h.b16 %v1125_v54  ;;  %v3692_v37 = vor.u32 %v4373_v30, %v3689_v49  ;;  %v3788_v34 = vor.u32 %v4397_v62, %v3785_v24  ;;  %v4395_v32 = vld [vmem:[#allocation9 + $0x244] sm:$0xf]  ;;  %v3777_v18 = vld [vmem:[#allocation9 + $0x248] sm:$0xf0]  ;;  %v4433_v58 = vld [vmem:[#allocation9 + $0x374] sm:$0xf] }
 0x156   :  { %v1145_v8 = vsel %vm5068_vm5, %v3484_v21, %v1144_v1  ;;  %2444 = vmatpush.bf16.msra.mxu2 %v3700_v5  ;;  %v3852_v52 = vor.u32 %v4413_v6, %v3849_v50  ;;  %v3929_v55 = vld [vmem:[#allocation9 + $0x378] sm:$0xf0]  ;;  %v4449_v61 = vld [vmem:[#allocation9 + $0x3f4] sm:$0xf]  ;;  %v3620_v60 = vor.u32 %v4355_v12, %v3617_v48  ;;  %v3684_v41 = vor.u32 %v4371_v10, %v3681_v23  ;;  %v4411_v46 = vld [vmem:[#allocation9 + $0x2c4] sm:$0xf] }
 0x157   :  { %2477 = vmatpush.bf16.msrb.mxu0 %v3868_v51  ;;  %v1350_v14 = vunpack.c.l.b16 %v1145_v8  ;;  %v1351_v0 = vunpack.c.h.b16 %v1145_v8  ;;  %v3993_v5 = vld [vmem:[#allocation9 + $0x3f8] sm:$0xf0]  ;;  %v3841_v4 = vld [vmem:[#allocation9 + $0x2c8] sm:$0xf0]  ;;  %v3780_v42 = vor.u32 %v4395_v32, %v3777_v18  ;;  %v3932_v44 = vor.u32 %v4433_v58, %v3929_v55  ;;  %v4393_v9 = vld [vmem:[#allocation9 + $0x234] sm:$0xf] }
 0x158   :  { %2426 = vmatpush.bf16.msra.mxu1 %v3628_v45  ;;  %v3769_v21 = vld [vmem:[#allocation9 + $0x238] sm:$0xf0]  ;;  %v4431_v25 = vld [vmem:[#allocation9 + $0x364] sm:$0xf]  ;;  %v3921_v33 = vld [vmem:[#allocation9 + $0x368] sm:$0xf0]  ;;  %v3996_v1 = vor.u32 %v4449_v61, %v3993_v5  ;;  %v3844_v51 = vor.u32 %v4411_v46, %v3841_v4 }
 0x159   :  { %v5357_v40 = vpack.c.b16 %v1350_v14, %v1340_v17  ;;  %v5359_v57 = vpack.c.b16 %v1351_v0, %v1341_v35  ;;  %2459 = vmatpush.bf16.msra.mxu3 %v3796_v28  ;;  %v4447_v22 = vld [vmem:[#allocation9 + $0x3e4] sm:$0xf]  ;;  %v3985_v54 = vld [vmem:[#allocation9 + $0x3e8] sm:$0xf0]  ;;  %v4409_v27 = vld [vmem:[#allocation9 + $0x2b4] sm:$0xf]  ;;  %v3772_v49 = vor.u32 %v4393_v9, %v3769_v21  ;;  %v3924_v28 = vor.u32 %v4431_v25, %v3921_v33 }
 0x15a   :  { %2445 = vmatpush.bf16.msra.mxu2 %v3692_v37  ;;  %v3833_v30 = vld [vmem:[#allocation9 + $0x2b8] sm:$0xf0]  ;;  %v4391_v8 = vld [vmem:[#allocation9 + $0x224] sm:$0xf]  ;;  %v4429_v62 = vld [vmem:[#allocation9 + $0x354] sm:$0xf]  ;;  %v3988_v17 = vor.u32 %v4447_v22, %v3985_v54 }
 0x15b   :  { %2478 = vmatpush.bf16.msrb.mxu0 %v3860_v26  ;;  %2357 = vmatmul.bf16.gmra.mxu1 %v5357_v40  ;;  %v3761_v26 = vld [vmem:[#allocation9 + $0x228] sm:$0xf0]  ;;  %v3913_v24 = vld [vmem:[#allocation9 + $0x358] sm:$0xf0]  ;;  %v3836_v14 = vor.u32 %v4409_v27, %v3833_v30  ;;  %v4445_v35 = vld [vmem:[#allocation9 + $0x3d4] sm:$0xf] }
 0x15c   :  { %2376 = vmatmul.bf16.gmra.mxu2 %v5359_v57  ;;  %2427 = vmatpush.bf16.msra.mxu1 %v3620_v60  ;;  %v3977_v0 = vld [vmem:[#allocation9 + $0x3d8] sm:$0xf0]  ;;  %v3764_v6 = vor.u32 %v4391_v8, %v3761_v26  ;;  %v3916_v50 = vor.u32 %v4429_v62, %v3913_v24  ;;  %v4407_v45 = vld [vmem:[#allocation9 + $0x2a4] sm:$0xf]  ;;  %v3825_v37 = vld [vmem:[#allocation9 + $0x2a8] sm:$0xf0] }
 0x15d   :  { %2460 = vmatpush.bf16.msra.mxu3 %v3788_v34  ;;  %v4389_v12 = vld [vmem:[#allocation9 + $0x214] sm:$0xf]  ;;  %v3753_v48 = vld [vmem:[#allocation9 + $0x218] sm:$0xf0]  ;;  %v3905_v10 = vld [vmem:[#allocation9 + $0x348] sm:$0xf0]  ;;  %v3828_v23 = vor.u32 %v4407_v45, %v3825_v37 }
 0x15e   :  { %2446 = vmatpush.bf16.msra.mxu2 %v3684_v41  ;;  %v4443_v34 = vld [vmem:[#allocation9 + $0x3c4] sm:$0xf]  ;;  %v3969_v32 = vld [vmem:[#allocation9 + $0x3c8] sm:$0xf0]  ;;  %v4405_v58 = vld [vmem:[#allocation9 + $0x294] sm:$0xf] }
 0x15f   :  { %2479 = vmatpush.bf16.msrb.mxu0 %v3852_v52  ;;  %v3756_v52 = vor.u32 %v4389_v12, %v3753_v48  ;;  %v3817_v55 = vld [vmem:[#allocation9 + $0x298] sm:$0xf0]  ;;  %v4387_v61 = vld [vmem:[#allocation9 + $0x204] sm:$0xf]  ;;  %v3745_v41 = vld [vmem:[#allocation9 + $0x208] sm:$0xf0] }
 0x160   :  { %2496 = vmatpush.bf16.msrb.mxu1 %v3932_v44  ;;  %v4425_v5 = vld [vmem:[#allocation9 + $0x334] sm:$0xf]  ;;  %v3897_v46 = vld [vmem:[#allocation9 + $0x338] sm:$0xf0]  ;;  %v3972_v44 = vor.u32 %v4443_v34, %v3969_v32  ;;  %v3820_v9 = vor.u32 %v4405_v58, %v3817_v55  ;;  %v5370_v33 = vld [vmem:[%s5550_s8] ss:$0 sm:$0xff] }
 0x161   :  { %2461 = vmatpush.bf16.msra.mxu3 %v3780_v42  ;;  %2409 = vmatmul.bf16.vlgmr.msra.gmra.mxu0 %v5157_v63  ;;  %v3980_v63 = vor.u32 %v4445_v35, %v3977_v0  ;;  %v4441_v4 = vld [vmem:[#allocation9 + $0x3b4] sm:$0xf]  ;;  %v3961_v42 = vld [vmem:[#allocation9 + $0x3b8] sm:$0xf0]  ;;  %v3809_v22 = vld [vmem:[#allocation9 + $0x288] sm:$0xf0] }
 0x162   :  { %2390 = vmatmul.bf16.vlgmr.msrb.gmra.mxu3 %v5155_v36  ;;  %2515 = vmatpush.bf16.msrb.mxu2 %v3996_v1  ;;  %v4427_v36 = vld [vmem:[#allocation9 + $0x344] sm:$0xf]  ;;  %v4465_v21 = vld [vmem:[#allocation9 + $0x474] sm:$0xf]  ;;  %v4057_v25 = vld [vmem:[#allocation9 + $0x478] sm:$0xf0]  ;;  %v3748_v1 = vor.u32 %v4387_v61, %v3745_v41  ;;  %v3964_v8 = vor.u32 %v4441_v4, %v3961_v42 }
 0x163   :  { %2480 = vmatpush.bf16.msrb.mxu0 %v3844_v51  ;;  %v3908_v18 = vor.u32 %v4427_v36, %v3905_v10  ;;  %v3900_v51 = vor.u32 %v4425_v5, %v3897_v46  ;;  %v3889_v54 = vld [vmem:[#allocation9 + $0x328] sm:$0xf0]  ;;  %v4481_v27 = vld [vmem:[#allocation9 + $0x4f4] sm:$0xf]  ;;  %v4121_v30 = vld [vmem:[#allocation9 + $0x4f8] sm:$0xf0] }
 0x164   :  { %2497 = vmatpush.bf16.msrb.mxu1 %v3924_v28  ;;  %v4463_v24 = vld [vmem:[#allocation9 + $0x464] sm:$0xf]  ;;  %v3953_v0 = vld [vmem:[#allocation9 + $0x3a8] sm:$0xf0]  ;;  %v3881_v12 = vld [vmem:[#allocation9 + $0x318] sm:$0xf0] }
 0x165   :  { %2462 = vmatpush.bf16.msra.mxu3 %v3772_v49  ;;  %v689_v60 = vpop.f32.mrf.mxu0  ;;  %v4060_v49 = vor.u32 %v4465_v21, %v4057_v25  ;;  %v4439_v35 = vld [vmem:[#allocation9 + $0x3a4] sm:$0xf]  ;;  %v4113_v36 = vld [vmem:[#allocation9 + $0x4e8] sm:$0xf0]  ;;  %v3945_v34 = vld [vmem:[#allocation9 + $0x398] sm:$0xf0] }
 0x166   :  { %2516 = vmatpush.bf16.msrb.mxu2 %v3988_v17  ;;  %v4049_v17 = vld [vmem:[#allocation9 + $0x468] sm:$0xf0]  ;;  %v4479_v48 = vld [vmem:[#allocation9 + $0x4e4] sm:$0xf]  ;;  %v5382_v32 = vld [vmem:[%s5552_s10] sm:$0x3] }
 0x167   :  { %2481 = vmatpush.bf16.msrb.mxu0 %v3836_v14  ;;  %v4052_v10 = vor.u32 %v4463_v24, %v4049_v17  ;;  %v4041_v58 = vld [vmem:[#allocation9 + $0x458] sm:$0xf0]  ;;  %v3873_v61 = vld [vmem:[#allocation9 + $0x308] sm:$0xf0]  ;;  %v5385_v5 = vperm.slane %v5382_v32, 0 }
 0x168   :  { %2498 = vmatpush.bf16.msrb.mxu1 %v3916_v50  ;;  %v4421_v50 = vld [vmem:[#allocation9 + $0x314] sm:$0xf]  ;;  %v4105_v41 = vld [vmem:[#allocation9 + $0x4d8] sm:$0xf0]  ;;  %v4435_v42 = vld [vmem:[#allocation9 + $0x384] sm:$0xf] }
 0x169   :  { %2463 = vmatpush.bf16.msra.mxu3 %v3764_v6  ;;  %v4124_v6 = vor.u32 %v4481_v27, %v4121_v30  ;;  %v3937_v21 = vld [vmem:[#allocation9 + $0x388] sm:$0xf0]  ;;  %v4473_v17 = vld [vmem:[#allocation9 + $0x4b4] sm:$0xf] }
 0x16a   :  { %2517 = vmatpush.bf16.msrb.mxu2 %v3980_v63  ;;  %v3956_v63 = vor.u32 %v4439_v35, %v3953_v0  ;;  %v3940_v27 = vor.u32 %v4435_v42, %v3937_v21 }
 0x16b   :  { %2428 = vmatmul.bf16.vlgmr.msra.gmra.mxu1 %v5195_v43  ;;  %2482 = vmatpush.bf16.msrb.mxu0 %v3828_v23  ;;  %v4403_v43 = vld [vmem:[#allocation9 + $0x284] sm:$0xf]  ;;  %v670_v28 = vpop.f32.mrf.mxu3  ;;  %v4437_v23 = vld [vmem:[#allocation9 + $0x394] sm:$0xf] }
 0x16c   :  { %2447 = vmatmul.bf16.vlgmr.msra.gmra.mxu2 %v5197_v2  ;;  %2499 = vmatpush.bf16.msrb.mxu1 %v3908_v18  ;;  %v4423_v2 = vld [vmem:[#allocation9 + $0x324] sm:$0xf]  ;;  %v3812_v26 = vor.u32 %v4403_v43, %v3809_v22  ;;  %v671_v62 = vadd.f32 %v5370_v33, %v670_v28  ;;  %v4461_v18 = vld [vmem:[#allocation9 + $0x454] sm:$0xf]  ;;  %v3948_v4 = vor.u32 %v4437_v23, %v3945_v34 }
 0x16d   :  { %2464 = vmatpush.bf16.msra.mxu3 %v3756_v52  ;;  %v3892_v14 = vor.u32 %v4423_v2, %v3889_v54  ;;  %v5373_v45 = vpop.f32.mrf.mxu0  ;;  %v4419_v52 = vld [vmem:[#allocation9 + $0x304] sm:$0xf]  ;;  %v4097_v2 = vld [vmem:[#allocation9 + $0x4c8] sm:$0xf0]  ;;  %v4453_v34 = vld [vmem:[#allocation9 + $0x414] sm:$0xf] }
 0x16e   :  { %2518 = vmatpush.bf16.msrb.mxu2 %v3972_v44  ;;  %v5377_v37 = vadd.f32 %v689_v60, %v671_v62  ;;  %v4477_v60 = vld [vmem:[#allocation9 + $0x4d4] sm:$0xf]  ;;  %v4044_v44 = vor.u32 %v4461_v18, %v4041_v58  ;;  %v4475_v22 = vld [vmem:[#allocation9 + $0x4c4] sm:$0xf]  ;;  %v4025_v62 = vld [vmem:[#allocation9 + $0x438] sm:$0xf0] }
 0x16f   :  { %2483 = vmatpush.bf16.msrb.mxu0 %v3820_v9  ;;  %v3876_v9 = vor.u32 %v4419_v52, %v3873_v61  ;;  %v4108_v25 = vor.u32 %v4477_v60, %v4105_v41  ;;  %v4100_v28 = vor.u32 %v4475_v22, %v4097_v2  ;;  %v4469_v52 = vld [vmem:[#allocation9 + $0x494] sm:$0xf]  ;;  %v4073_v18 = vld [vmem:[#allocation9 + $0x498] sm:$0xf0]  ;;  %v4001_v61 = vld [vmem:[#allocation9 + $0x408] sm:$0xf0] }
 0x170   :  { %2500 = vmatpush.bf16.msrb.mxu1 %v3900_v51  ;;  %v4033_v51 = vld [vmem:[#allocation9 + $0x448] sm:$0xf0]  ;;  %v4076_v58 = vor.u32 %v4469_v52, %v4073_v18  ;;  %v4467_v60 = vld [vmem:[#allocation9 + $0x484] sm:$0xf] }
 0x171   :  { %2465 = vmatpush.bf16.msra.mxu3 %v3748_v1  ;;  %2414 = vmatmul.bf16.gmra.mxu0 %v5169_v31  ;;  %v4116_v31 = vor.u32 %v4479_v48, %v4113_v36  ;;  %v4459_v1 = vld [vmem:[#allocation9 + $0x444] sm:$0xf]  ;;  %v4081_v36 = vld [vmem:[#allocation9 + $0x4a8] sm:$0xf0] }
 0x172   :  { %2395 = vmatmul.bf16.gmra.mxu3 %v5167_v29  ;;  %2519 = vmatpush.bf16.msrb.mxu2 %v3964_v8  ;;  %v3884_v29 = vor.u32 %v4421_v50, %v3881_v12  ;;  %v4036_v30 = vor.u32 %v4459_v1, %v4033_v51  ;;  %v4017_v50 = vld [vmem:[#allocation9 + $0x428] sm:$0xf0]  ;;  %v4471_v48 = vld [vmem:[#allocation9 + $0x4a4] sm:$0xf] }
 0x173   :  { %2484 = vmatpush.bf16.msrb.mxu0 %v3812_v26  ;;  %v2201_v55 = vpop.f32.mrf.mxu1  ;;  %v5387_v46 = vpop.f32.mrf.mxu3  ;;  %v4457_v26 = vld [vmem:[#allocation9 + $0x434] sm:$0xf]  ;;  %v4065_v41 = vld [vmem:[#allocation9 + $0x488] sm:$0xf0] }
 0x174   :  { %2501 = vmatpush.bf16.msrb.mxu1 %v3892_v14  ;;  %v2202_v54 = vadd.f32 %v2201_v55, %v5385_v5  ;;  %v4089_v14 = vld [vmem:[#allocation9 + $0x4b8] sm:$0xf0]  ;;  %v4451_v55 = vld [vmem:[#allocation9 + $0x404] sm:$0xf] }
 0x175   :  { %2534 = vmatpush.bf16.msrb.mxu3 %v4060_v49  ;;  %v694_v43 = vpop.f32.mrf.mxu0  ;;  %v4092_v0 = vor.u32 %v4473_v17, %v4089_v14  ;;  %v4004_v42 = vor.u32 %v4451_v55, %v4001_v61 }
 0x176   :  { %2520 = vmatpush.bf16.msrb.mxu2 %v3956_v63 }
 0x177   :  { %2553 = vmatpush.bf16.msra.mxu0 %v4124_v6  ;;  %v4455_v6 = vld [vmem:[#allocation9 + $0x424] sm:$0xf] }
 0x178   :  { %2502 = vmatpush.bf16.msrb.mxu1 %v3884_v29  ;;  %v4009_v29 = vld [vmem:[#allocation9 + $0x418] sm:$0xf0] }
 0x179   :  { %2535 = vmatpush.bf16.msrb.mxu3 %v4052_v10  ;;  %v2220_v49 = vpop.f32.mrf.mxu2  ;;  %v4020_v10 = vor.u32 %v4455_v6, %v4017_v50 }
 0x17a   :  { %2521 = vmatpush.bf16.msrb.mxu2 %v3948_v4  ;;  %v2221_v8 = vadd.f32 %v2220_v49, %v2202_v54 }
 0x17b   :  { %2554 = vmatpush.bf16.msra.mxu0 %v4116_v31  ;;  %2433 = vmatmul.bf16.gmra.mxu1 %v5249_v38  ;;  %v5392_v24 = vpop.f32.mrf.mxu1  ;;  %v675_v38 = vpop.f32.mrf.mxu3 }
 0x17c   :  { %2452 = vmatmul.bf16.gmra.mxu2 %v5251_v7  ;;  %2503 = vmatpush.bf16.msrb.mxu1 %v3876_v9  ;;  %v4028_v7 = vor.u32 %v4457_v26, %v4025_v62  ;;  %v676_v35 = vadd.f32 %v5370_v33, %v675_v38  ;;  %v4084_v33 = vor.u32 %v4471_v48, %v4081_v36 }
 0x17d   :  { %2536 = vmatpush.bf16.msrb.mxu3 %v4044_v44  ;;  %v5399_v63 = vpop.f32.mrf.mxu0  ;;  %v4068_v9 = vor.u32 %v4467_v60, %v4065_v41 }
 0x17e   :  { %2522 = vmatpush.bf16.msrb.mxu2 %v3940_v27  ;;  %v5397_v12 = vadd.f32 %v694_v43, %v676_v35 }
 0x17f   :  { %2555 = vmatpush.bf16.msra.mxu0 %v4108_v25 }
 0x181   :  { %2537 = vmatpush.bf16.msrb.mxu3 %v4036_v30  ;;  %2485 = vmatmul.bf16.vlgmr.msrb.gmra.mxu0 %v5221_v53  ;;  %v5401_v23 = vpop.f32.mrf.mxu2  ;;  %v4012_v53 = vor.u32 %v4453_v34, %v4009_v29 }
 0x182   :  { %2466 = vmatmul.bf16.vlgmr.msra.gmra.mxu3 %v5219_v39 }
 0x183   :  { %2556 = vmatpush.bf16.msra.mxu0 %v4100_v28  ;;  %v2206_v31 = vpop.f32.mrf.mxu1  ;;  %v5403_v39 = vpop.f32.mrf.mxu3 }
 0x184   :  { %v2207_v4 = vadd.f32 %v2206_v31, %v5385_v5 }
 0x185   :  { %2538 = vmatpush.bf16.msrb.mxu3 %v4028_v7 }
 0x186   :  { %v2258_v25 = vpop.f32.mrf.mxu0 }
 0x187   :  { %2557 = vmatpush.bf16.msra.mxu0 %v4092_v0 }
 0x189   :  { %2539 = vmatpush.bf16.msrb.mxu3 %v4020_v10  ;;  %v2225_v44 = vpop.f32.mrf.mxu2 }
 0x18a   :  { %v2226_v21 = vadd.f32 %v2225_v44, %v2207_v4 }
 0x18b   :  { %2558 = vmatpush.bf16.msra.mxu0 %v4084_v33  ;;  %2504 = vmatmul.bf16.vlgmr.msrb.gmra.mxu1 %v5294_v56  ;;  %v2208_v1 = vpop.f32.mrf.mxu1  ;;  %v2239_v51 = vpop.f32.mrf.mxu3 }
 0x18c   :  { %2523 = vmatmul.bf16.vlgmr.msrb.gmra.mxu2 %v5296_v59  ;;  %v2240_v43 = vadd.f32 %v2239_v51, %v2221_v8  ;;  %v2209_v17 = vadd.f32 %v2208_v1, %v5385_v5 }
 0x18d   :  { %2540 = vmatpush.bf16.msrb.mxu3 %v4012_v53 }
 0x18e   :  { %v2259_v56 = vadd.f32 %v2258_v25, %v2240_v43  ;;  %v2260_v54 = vpop.f32.mrf.mxu0 }
 0x18f   :  { %2559 = vmatpush.bf16.msra.mxu0 %v4076_v58 }
 0x191   :  { %2541 = vmatpush.bf16.msrb.mxu3 %v4004_v42  ;;  %2490 = vmatmul.bf16.gmra.mxu0 %v5278_v13  ;;  %v2227_v59 = vpop.f32.mrf.mxu2 }
 0x192   :  { %2471 = vmatmul.bf16.gmra.mxu3 %v5276_v11  ;;  %v2228_v7 = vadd.f32 %v2227_v59, %v2209_v17 }
 0x193   :  { %2560 = vmatpush.bf16.msra.mxu0 %v4068_v9  ;;  %v2277_v22 = vpop.f32.mrf.mxu1  ;;  %v2241_v27 = vpop.f32.mrf.mxu3 }
 0x194   :  { %v2278_v2 = vadd.f32 %v2277_v22, %v2259_v56 }
 0x199   :  { %v2296_v30 = vpop.f32.mrf.mxu2  ;;  %v2263_v11 = vpop.f32.mrf.mxu0 }
 0x19a   :  { %v2297_v49 = vadd.f32 %v2296_v30, %v2278_v2 }
 0x19b   :  { %2509 = vmatmul.bf16.gmra.mxu1 %v5347_v19  ;;  %v2279_v28 = vpop.f32.mrf.mxu1 }
 0x19c   :  { %2528 = vmatmul.bf16.gmra.mxu2 %v5349_v47 }
 0x19f   :  { %v2244_v8 = vpop.f32.mrf.mxu3 }
 0x1a0   :  { %v2245_v13 = vadd.f32 %v2244_v8, %v2226_v21 }
 0x1a1   :  { %2561 = vmatmul.bf16.vlgmr.msra.gmra.mxu0 %v5325_v16  ;;  %v2298_v26 = vpop.f32.mrf.mxu2  ;;  %v2265_v47 = vpop.f32.mrf.mxu0  ;;  %v2204_v16 = vadd.f32 %v5392_v24, %v5385_v5 }
 0x1a2   :  { %2542 = vmatmul.bf16.vlgmr.msrb.gmra.mxu3 %v5323_v20  ;;  %v2264_v62 = vadd.f32 %v2263_v11, %v2245_v13 }
 0x1a3   :  { %v2223_v33 = vadd.f32 %v5401_v23, %v2204_v16 }
 0x1a5   :  { %v2242_v34 = vadd.f32 %v2241_v27, %v2223_v33 }
 0x1a7   :  { %v2282_v14 = vpop.f32.mrf.mxu1  ;;  %v2246_v19 = vpop.f32.mrf.mxu3  ;;  %v2261_v52 = vadd.f32 %v2260_v54, %v2242_v34 }
 0x1a8   :  { %v2283_v38 = vadd.f32 %v2282_v14, %v2264_v62  ;;  %v2247_v35 = vadd.f32 %v2246_v19, %v2228_v7 }
 0x1a9   :  { %v2280_v55 = vadd.f32 %v2279_v28, %v2261_v52 }
 0x1aa   :  { %v2266_v6 = vadd.f32 %v2265_v47, %v2247_v35 }
 0x1ab   :  { %v2299_v60 = vadd.f32 %v2298_v26, %v2280_v55 }
 0x1ad   :  { %v2301_v0 = vpop.f32.mrf.mxu2 }
 0x1ae   :  { %v2302_v50 = vadd.f32 %v2301_v0, %v2283_v38 }
 0x1af   :  { %v2284_v48 = vpop.f32.mrf.mxu1 }
 0x1b0   :  { %v2285_v20 = vadd.f32 %v2284_v48, %v2266_v6 }
 0x1b1   :  { %2566 = vmatmul.bf16.gmra.mxu0 %v5359_v57 }
 0x1b2   :  { %2547 = vmatmul.bf16.gmra.mxu3 %v5357_v40 }
 0x1b5   :  { %v2303_v36 = vpop.f32.mrf.mxu2  ;;  %v2334_v29 = vpop.f32.mrf.mxu0 }
 0x1b6   :  { %v2304_v10 = vadd.f32 %v2303_v36, %v2285_v20 }
 0x1ba   :  { %v2315_v31 = vpop.f32.mrf.mxu3 }
 0x1bb   :  { %v2316_v18 = vadd.f32 %v2315_v31, %v2297_v49 }
 0x1bd   :  { %v2335_v53 = vadd.f32 %v2334_v29, %v2316_v18  ;;  %v2336_v41 = vpop.f32.mrf.mxu0 }
 0x1bf   :  { %v2353_v58 = vpop.f32.mrf.mxu1 }
 0x1c0   :  { %v2354_v61 = vadd.f32 %v2353_v58, %v2335_v53 }
 0x1c2   :  { %v2317_v40 = vpop.f32.mrf.mxu3 }
 0x1c3   :  { %v2318_v57 = vadd.f32 %v2317_v40, %v2299_v60 }
 0x1c5   :  { %v2372_v4 = vpop.f32.mrf.mxu2  ;;  %v2337_v5 = vadd.f32 %v2336_v41, %v2318_v57 }
 0x1c6   :  { %v5420_v42 = vadd.f32 %v2372_v4, %v2354_v61 }
 0x1c7   :  { %v2355_v24 = vpop.f32.mrf.mxu1 }
 0x1c8   :  { %v2356_v44 = vadd.f32 %v2355_v24, %v2337_v5 }
 0x1cd   :  { %v2374_v23 = vpop.f32.mrf.mxu2 }
 0x1ce   :  { %v2339_v9 = vpop.f32.mrf.mxu0  ;;  %v5422_v21 = vadd.f32 %v2374_v23, %v2356_v44 }
 0x1d4   :  { %v2320_v25 = vpop.f32.mrf.mxu3 }
 0x1d5   :  { %v2321_v1 = vadd.f32 %v2320_v25, %v2302_v50 }
 0x1d6   :  { %v2341_v51 = vpop.f32.mrf.mxu0 }
 0x1d7   :  { %v2340_v43 = vadd.f32 %v2339_v9, %v2321_v1 }
 0x1d8   :  { %v2358_v56 = vpop.f32.mrf.mxu1 }
 0x1d9   :  { %v2359_v59 = vadd.f32 %v2358_v56, %v2340_v43 }
 0x1dc   :  { %v2322_v22 = vpop.f32.mrf.mxu3 }
 0x1dd   :  { %v2323_v2 = vadd.f32 %v2322_v22, %v2304_v10  ;;  %v1309_v10 = vperm.slane %v5382_v32, 1 }
 0x1de   :  { %v2410_v27 = vpop.f32.mrf.mxu0 }
 0x1df   :  { %v2377_v54 = vpop.f32.mrf.mxu2  ;;  %v2342_v49 = vadd.f32 %v2341_v51, %v2323_v2 }
 0x1e0   :  { %v5424_v30 = vadd.f32 %v2377_v54, %v2359_v59  ;;  %v2360_v28 = vpop.f32.mrf.mxu1 }
 0x1e1   :  { %v2361_v11 = vadd.f32 %v2360_v28, %v2342_v49  ;;  %v4490_v28 = vld [vmem:[#allocation11 + $0x38] sm:$0xff] }
 0x1e2   :  { %2722 = vmatpush.bf16.msra.mxu1 %v4490_v28  ;;  %v4491_v28 = vld [vmem:[%s5599_s3] sm:$0xff] }
 0x1e3   :  { %2774 = vmatpush.bf16.xpose.msra.mxu2 %v4491_v28  ;;  %2900 = vmatpush.bf16.msrb.mxu0 %v4491_v28 }
 0x1e5   :  { %v2391_v8 = vpop.f32.mrf.mxu3 }
 0x1e6   :  { %v2412_v26 = vpop.f32.mrf.mxu0  ;;  %v2392_v34 = vadd.f32 %v2391_v8, %v1309_v10 }
 0x1e7   :  { %v2379_v13 = vpop.f32.mrf.mxu2 }
 0x1e8   :  { %v5426_v62 = vadd.f32 %v2379_v13, %v2361_v11  ;;  %v2429_v38 = vpop.f32.mrf.mxu1  ;;  %v2411_v18 = vadd.f32 %v2410_v27, %v2392_v34 }
 0x1ea   :  { %v2430_v58 = vadd.f32 %v2429_v38, %v2411_v18 }
 0x1ed   :  { %v2393_v17 = vpop.f32.mrf.mxu3 }
 0x1ee   :  { %v2415_v14 = vpop.f32.mrf.mxu0  ;;  %v2394_v55 = vadd.f32 %v2393_v17, %v1309_v10 }
 0x1ef   :  { %v2448_v7 = vpop.f32.mrf.mxu2 }
 0x1f0   :  { %v2431_v47 = vpop.f32.mrf.mxu1  ;;  %v2449_v60 = vadd.f32 %v2448_v7, %v2430_v58  ;;  %v2413_v41 = vadd.f32 %v2412_v26, %v2394_v55  ;;  %v4487_v55 = vld [vmem:[#allocation11 + $0x20] sm:$0xff] }
 0x1f2   :  { %v2432_v24 = vadd.f32 %v2431_v47, %v2413_v41  ;;  %v4486_v41 = vld [vmem:[#allocation11 + $0x18] sm:$0xff] }
 0x1f5   :  { %v2396_v19 = vpop.f32.mrf.mxu3 }
 0x1f6   :  { %v2417_v35 = vpop.f32.mrf.mxu0  ;;  %v2397_v44 = vadd.f32 %v2396_v19, %v1309_v10  ;;  %v4489_v19 = vld [vmem:[#allocation11 + $0x30] sm:$0xff] }
 0x1f7   :  { %v2450_v0 = vpop.f32.mrf.mxu2  ;;  %2723 = vmatpush.bf16.msra.mxu1 %v4489_v19 }
 0x1f8   :  { %v2434_v48 = vpop.f32.mrf.mxu1  ;;  %v2451_v32 = vadd.f32 %v2450_v0, %v2432_v24  ;;  %v2416_v25 = vadd.f32 %v2415_v14, %v2397_v44 }
 0x1fa   :  { %v2435_v2 = vadd.f32 %v2434_v48, %v2416_v25 }
 0x1fd   :  { %v2398_v6 = vpop.f32.mrf.mxu3 }
 0x1fe   :  { %v2486_v50 = vpop.f32.mrf.mxu0  ;;  %v2399_v54 = vadd.f32 %v2398_v6, %v1309_v10  ;;  %v4488_v6 = vld [vmem:[#allocation11 + $0x28] sm:$0xff] }
 0x1ff   :  { %v2453_v16 = vpop.f32.mrf.mxu2  ;;  %2724 = vmatpush.bf16.msra.mxu1 %v4488_v6 }
 0x200   :  { %v2436_v29 = vpop.f32.mrf.mxu1  ;;  %v2454_v11 = vadd.f32 %v2453_v16, %v2435_v2  ;;  %v2418_v13 = vadd.f32 %v2417_v35, %v2399_v54 }
 0x203   :  { %2725 = vmatpush.bf16.msra.mxu1 %v4487_v55 }
 0x205   :  { %v2467_v20 = vpop.f32.mrf.mxu3 }
 0x206   :  { %v2488_v36 = vpop.f32.mrf.mxu0  ;;  %v2468_v57 = vadd.f32 %v2467_v20, %v2449_v60 }
 0x207   :  { %v2455_v52 = vpop.f32.mrf.mxu2  ;;  %2726 = vmatpush.bf16.msra.mxu1 %v4486_v41 }
 0x208   :  { %v2505_v40 = vpop.f32.mrf.mxu1  ;;  %v2487_v23 = vadd.f32 %v2486_v50, %v2468_v57  ;;  %v2437_v50 = vadd.f32 %v2436_v29, %v2418_v13 }
 0x20a   :  { %v2506_v1 = vadd.f32 %v2505_v40, %v2487_v23  ;;  %v2456_v10 = vadd.f32 %v2455_v52, %v2437_v50  ;;  %v4485_v23 = vld [vmem:[#allocation11 + $0x10] sm:$0xff] }
 0x20b   :  { %2727 = vmatpush.bf16.msra.mxu1 %v4485_v23 }
 0x20d   :  { %v2469_v33 = vpop.f32.mrf.mxu3 }
 0x20e   :  { %v2491_v31 = vpop.f32.mrf.mxu0  ;;  %v2470_v51 = vadd.f32 %v2469_v33, %v2451_v32 }
 0x20f   :  { %v2524_v4 = vpop.f32.mrf.mxu2 }
 0x210   :  { %v2507_v43 = vpop.f32.mrf.mxu1  ;;  %v2525_v56 = vadd.f32 %v2524_v4, %v2506_v1  ;;  %v2489_v27 = vadd.f32 %v2488_v36, %v2470_v51 }
 0x212   :  { %v2508_v26 = vadd.f32 %v2507_v43, %v2489_v27 }
 0x215   :  { %v2472_v53 = vpop.f32.mrf.mxu3 }
 0x216   :  { %v2493_v61 = vpop.f32.mrf.mxu0  ;;  %v2473_v17 = vadd.f32 %v2472_v53, %v2454_v11  ;;  %v4492_v11 = vld [vmem:[%s5599_s3 + $0x8] sm:$0xff] }
 0x217   :  { %v2526_v59 = vpop.f32.mrf.mxu2  ;;  %2793 = vmatpush.bf16.xpose.msra.mxu3 %v4492_v11 }
 0x218   :  { %v2527_v14 = vadd.f32 %v2526_v59, %v2508_v26  ;;  %v2510_v47 = vpop.f32.mrf.mxu1  ;;  %v2492_v20 = vadd.f32 %v2491_v31, %v2473_v17 }
 0x21a   :  { %v2511_v34 = vadd.f32 %v2510_v47, %v2492_v20 }
 0x21d   :  { %v2474_v5 = vpop.f32.mrf.mxu3 }
 0x21e   :  { %v2562_v9 = vpop.f32.mrf.mxu0  ;;  %v2475_v35 = vadd.f32 %v2474_v5, %v2456_v10 }
 0x21f   :  { %v2529_v36 = vpop.f32.mrf.mxu2 }
 0x220   :  { %v2530_v58 = vadd.f32 %v2529_v36, %v2511_v34  ;;  %v2494_v60 = vadd.f32 %v2493_v61, %v2475_v35  ;;  %v2512_v52 = vpop.f32.mrf.mxu1 }
 0x222   :  { %v2513_v5 = vadd.f32 %v2512_v52, %v2494_v60 }
 0x225   :  { %v2543_v22 = vpop.f32.mrf.mxu3 }
 0x226   :  { %v2544_v49 = vadd.f32 %v2543_v22, %v2525_v56  ;;  %v2564_v7 = vpop.f32.mrf.mxu0  ;;  %v4484_v56 = vld [vmem:[#allocation11 + $0x8] sm:$0xff] }
 0x227   :  { %v2531_v4 = vpop.f32.mrf.mxu2  ;;  %2728 = vmatpush.bf16.msra.mxu1 %v4484_v56  ;;  %v4493_v56 = vld [vmem:[%s5599_s3 + $0x10] sm:$0xff] }
 0x228   :  { %v2563_v8 = vadd.f32 %v2562_v9, %v2544_v49  ;;  %v2532_v1 = vadd.f32 %v2531_v4, %v2513_v5  ;;  %v4483_v49 = vld [vmem:[#allocation11] sm:$0xff]  ;;  %2812 = vmatpush.bf16.xpose.msrb.mxu2 %v4493_v56 }
 0x22a   :  { %v4125_v38 = vmul.f32 -1.442695, %v2563_v8 }
 0x22b   :  { %2729 = vmatpush.bf16.msra.mxu1 %v4483_v49 }
 0x22c   :  { %4541 = vpow2.f32 %v4125_v38 }
 0x22d   :  { %v2545_v0 = vpop.f32.mrf.mxu3 }
 0x22e   :  { %v2546_v48 = vadd.f32 %v2545_v0, %v2527_v14  ;;  %v2567_v29 = vpop.f32.mrf.mxu0 }
 0x22f   :  { %2916 = vmatpush.bf16.msrb.mxu1 %v4492_v11 }
 0x230   :  { %v2565_v16 = vadd.f32 %v2564_v7, %v2546_v48 }
 0x232   :  { %v4542_v33 = vpop.eup %4541  ;;  %v4126_v18 = vmul.f32 -1.442695, %v2565_v16 }
 0x233   :  { %v5429_v53 = vadd.f32 1.0, %v4542_v33 }
 0x234   :  { %4543 = vpow2.f32 %v4126_v18 }
 0x235   :  { %4545 = vrcp.f32 %v5429_v53  ;;  %v2548_v31 = vpop.f32.mrf.mxu3  ;;  %v2599_v38 = vand.u32 2147483648, %v5429_v53  ;;  %vm2593_vm7 = vweird.f32 %v5429_v53  ;;  %v2597_v14 = vand.u32 2147483647, %v5429_v53 }
 0x236   :  { %v2549_v40 = vadd.f32 %v2548_v31, %v2530_v58  ;;  %v2569_v59 = vpop.f32.mrf.mxu0 }
 0x237   :  { %v2600_v20 = vor.u32 1.1754944e-38, %v2599_v38  ;;  %vm2598_vm10 = vcmp.eq.f32.partialorder %v2597_v14, 8.507059e+37  ;;  %v5600_v38 = vld [vmem:[#allocation24_spill] sm:$0xff] }
 0x238   :  { %v2568_v57 = vadd.f32 %v2567_v29, %v2549_v40 }
 0x23a   :  { %v4544_v24 = vpop.eup %4543  ;;  %v4127_v44 = vmul.f32 -1.442695, %v2568_v57 }
 0x23b   :  { %v4546_v32 = vpop.eup %4545  ;;  %v2585_v9 = vadd.f32 1.0, %v4544_v24 }
 0x23c   :  { %v2589_v25 = vmul.f32 %v4546_v32, %v5429_v53  ;;  %4547 = vpow2.f32 %v4127_v44  ;;  %vm2594_vm6 = vweird.f32 %v4546_v32 }
 0x23d   :  { %4549 = vrcp.f32 %v2585_v9  ;;  %v2550_v51 = vpop.f32.mrf.mxu3  ;;  %vm2595_vm8 = vmor %vm2593_vm7, %vm2594_vm6  ;;  %v2614_v19 = vand.u32 2147483648, %v2585_v9  ;;  %v2612_v50 = vand.u32 2147483647, %v2585_v9  ;;  %vm2608_vm11 = vweird.f32 %v2585_v9 }
 0x23e   :  { %v2590_v61 = vsub.f32 1.0, %v2589_v25  ;;  %v2551_v43 = vadd.f32 %v2550_v51, %v2532_v1  ;;  %vm2837_vm6 = vcmask 130048   ;;  %vm3204_vm7 = vcmask 523264  }
 0x23f   :  { %v2615_v33 = vor.u32 1.1754944e-38, %v2614_v19  ;;  %vm2613_vm13 = vcmp.eq.f32.partialorder %v2612_v50, 8.507059e+37 }
 0x240   :  { %v2570_v22 = vadd.f32 %v2569_v59, %v2551_v43  ;;  %v2591_v2 = vmul.f32 %v4546_v32, %v2590_v61  ;;  %v4494_v59 = vld [vmem:[%s5599_s3 + $0x18] sm:$0xff] }
 0x241   :  { %2831 = vmatpush.bf16.xpose.msrb.mxu3 %v4494_v59 }
 0x242   :  { %v4548_v54 = vpop.eup %4547  ;;  %v4128_v27 = vmul.f32 -1.442695, %v2570_v22  ;;  %v2592_v17 = vadd.f32 %v4546_v32, %v2591_v2 }
 0x243   :  { %v4550_v8 = vpop.eup %4549  ;;  %v2586_v13 = vadd.f32 1.0, %v4548_v54 }
 0x244   :  { %v2604_v26 = vmul.f32 %v4550_v8, %v2585_v9  ;;  %4551 = vpow2.f32 %v4128_v27  ;;  %v2596_v47 = vsel %vm2595_vm8, %v4546_v32, %v2592_v17  ;;  %vm2609_vm9 = vweird.f32 %v4550_v8 }
 0x245   :  { %4553 = vrcp.f32 %v2586_v13  ;;  %v2601_v16 = vsel %vm2598_vm10, %v2600_v20, %v2596_v47  ;;  %vm2610_vm12 = vmor %vm2608_vm11, %vm2609_vm9  ;;  %v2629_v52 = vand.u32 2147483648, %v2586_v13  ;;  %vm2623_vm15 = vweird.f32 %v2586_v13 }
 0x246   :  { %v2605_v7 = vsub.f32 1.0, %v2604_v26  ;;  %v5443_v53 = vmul.f32 %v2601_v16, %v5420_v42  ;;  %v2627_v57 = vand.u32 2147483647, %v2586_v13 }
 0x247   :  { %v2630_v44 = vor.u32 1.1754944e-38, %v2629_v52 }
 0x248   :  { %v2606_v0 = vmul.f32 %v4550_v8, %v2605_v7  ;;  %vm2628_vm2 = vcmp.eq.f32.partialorder %v2627_v57, 8.507059e+37 }
 0x24a   :  { %v4552_v48 = vpop.eup %4551  ;;  %v2607_v6 = vadd.f32 %v4550_v8, %v2606_v0  ;;  %v5601_v0 = vld [vmem:[#allocation25_spill] sm:$0xff] }
 0x24b   :  { %v4554_v36 = vpop.eup %4553  ;;  %v2587_v10 = vadd.f32 1.0, %v4552_v48 }
 0x24c   :  { %v2619_v34 = vmul.f32 %v4554_v36, %v2586_v13  ;;  %v2611_v35 = vsel %vm2610_vm12, %v4550_v8, %v2607_v6  ;;  %vm2624_vm14 = vweird.f32 %v4554_v36 }
 0x24d   :  { %4555 = vrcp.f32 %v2587_v10  ;;  %v2616_v18 = vsel %vm2613_vm13, %v2615_v33, %v2611_v35  ;;  %vm2625_vm0 = vmor %vm2623_vm15, %vm2624_vm14  ;;  %v2644_v42 = vand.u32 2147483648, %v2587_v10  ;;  %vm2638_vm3 = vweird.f32 %v2587_v10 }
 0x24e   :  { %v5446_v58 = vmul.f32 %v2616_v18, %v5422_v21  ;;  %v2620_v55 = vsub.f32 1.0, %v2619_v34  ;;  %v2642_v21 = vand.u32 2147483647, %v2587_v10 }
 0x24f   :  { %v2645_v9 = vor.u32 1.1754944e-38, %v2644_v42 }
 0x250   :  { %v2668_v29 = vpack.c.bf16 %v5446_v58, %v5443_v53  ;;  %v2621_v31 = vmul.f32 %v4554_v36, %v2620_v55  ;;  %vm2643_vm5 = vcmp.eq.f32.partialorder %v2642_v21, 8.507059e+37 }
 0x252   :  { %2730 = vmatmul.bf16.vlgmr.msra.gmra.mxu1 %v2668_v29  ;;  %v2622_v41 = vadd.f32 %v4554_v36, %v2621_v31 }
 0x253   :  { %v4556_v60 = vpop.eup %4555 }
 0x254   :  { %v2634_v40 = vmul.f32 %v4556_v60, %v2587_v10  ;;  %v2626_v24 = vsel %vm2625_vm0, %v4554_v36, %v2622_v41  ;;  %vm2639_vm1 = vweird.f32 %v4556_v60 }
 0x255   :  { %v2631_v32 = vsel %vm2628_vm2, %v2630_v44, %v2626_v24  ;;  %vm2640_vm4 = vmor %vm2638_vm3, %vm2639_vm1 }
 0x256   :  { %v2635_v4 = vsub.f32 1.0, %v2634_v40  ;;  %v5451_v51 = vmul.f32 %v2631_v32, %v5424_v30  ;;  %v4538_v30 = vld [vmem:[%s5554_s12] ss:$0 sm:$0xff] }
 0x258   :  { %v2636_v5 = vmul.f32 %v4556_v60, %v2635_v4 }
 0x25a   :  { %v2637_v23 = vadd.f32 %v4556_v60, %v2636_v5 }
 0x25c   :  { %v2641_v25 = vsel %vm2640_vm4, %v4556_v60, %v2637_v23 }
 0x25d   :  { %v2646_v1 = vsel %vm2643_vm5, %v2645_v9, %v2641_v25 }
 0x25e   :  { %v5454_v61 = vmul.f32 %v2646_v1, %v5426_v62 }
 0x260   :  { %v2669_v43 = vpack.c.bf16 %v5454_v61, %v5451_v51 }
 0x262   :  { %2735 = vmatmul.bf16.gmra.mxu1 %v2669_v43 }
 0x2cf   :  { %v2731_v62 = vpop.f32.mrf.mxu1 }
 0x2d0   :  { %v2732_v22 = vadd.f32 %v4538_v30, %v2731_v62 }
 0x2d2   :  { %v2741_v2 = vadd.f32 %v2732_v22, %v5016_v3  ;;  %v4502_v22 = vld [vmem:[#allocation12 + $0x38] sm:$0xff] }
 0x2d3   :  { %3024 = vmatpush.bf16.msra.mxu0 %v4502_v22  ;;  %v4517_v22 = vld [vmem:[#allocation14 + $0x34] sm:$0xf] }
 0x2d4   :  { %v2745_v54 = vmul.f32 0.70710677, %v2741_v2  ;;  %v4501_v2 = vld [vmem:[#allocation12 + $0x30] sm:$0xff] }
 0x2d6   :  { %v2757_v27 = vpack.c.bf16 %v2745_v54, %v2745_v54 }
 0x2d7   :  { %v2733_v49 = vpop.f32.mrf.mxu1  ;;  %3025 = vmatpush.bf16.msra.mxu0 %v4501_v2 }
 0x2d8   :  { %v2734_v28 = vadd.f32 %v4538_v30, %v2733_v49  ;;  %2775 = vmatmul.bf16.vlgmr.msra.gmra.mxu2 %v2757_v27 }
 0x2d9   :  { %2932 = vmatpush.bf16.msra.mxu2 %v4493_v56 }
 0x2da   :  { %v2742_v11 = vadd.f32 %v2734_v28, %v5023_v15 }
 0x2dc   :  { %v2746_v8 = vmul.f32 0.70710677, %v2742_v11  ;;  %v4500_v11 = vld [vmem:[#allocation12 + $0x28] sm:$0xff] }
 0x2dd   :  { %3026 = vmatpush.bf16.msra.mxu0 %v4500_v11 }
 0x2de   :  { %v2758_v13 = vpack.c.bf16 %v2746_v8, %v2746_v8  ;;  %v4499_v8 = vld [vmem:[#allocation12 + $0x20] sm:$0xff] }
 0x2df   :  { %v2736_v26 = vpop.f32.mrf.mxu1 }
 0x2e0   :  { %v2737_v17 = vadd.f32 %v4538_v30, %v2736_v26  ;;  %2794 = vmatmul.bf16.vlgmr.msra.gmra.mxu3 %v2758_v13 }
 0x2e1   :  { %2948 = vmatpush.bf16.msra.mxu3 %v4494_v59  ;;  %3027 = vmatpush.bf16.msra.mxu0 %v4499_v8 }
 0x2e2   :  { %v2743_v7 = vadd.f32 %v2737_v17, %v5600_v38 }
 0x2e4   :  { %v2747_v14 = vmul.f32 0.70710677, %v2743_v7  ;;  %v4498_v7 = vld [vmem:[#allocation12 + $0x18] sm:$0xff] }
 0x2e5   :  { %3028 = vmatpush.bf16.msra.mxu0 %v4498_v7 }
 0x2e6   :  { %v2759_v19 = vpack.c.bf16 %v2747_v14, %v2747_v14 }
 0x2e7   :  { %v2738_v47 = vpop.f32.mrf.mxu1 }
 0x2e8   :  { %v2739_v3 = vadd.f32 %v4538_v30, %v2738_v47  ;;  %2813 = vmatmul.bf16.vlgmr.msrb.gmra.mxu2 %v2759_v19 }
 0x2ea   :  { %v2744_v50 = vadd.f32 %v2739_v3, %v5601_v0 }
 0x2ec   :  { %v2748_v20 = vmul.f32 0.70710677, %v2744_v50 }
 0x2ee   :  { %v2760_v48 = vpack.c.bf16 %v2748_v20, %v2748_v20 }
 0x2f0   :  { %2832 = vmatmul.bf16.vlgmr.msrb.gmra.mxu3 %v2760_v48  ;;  %v4497_v48 = vld [vmem:[#allocation12 + $0x10] sm:$0xff] }
 0x2f1   :  { %3029 = vmatpush.bf16.msra.mxu0 %v4497_v48  ;;  %v4263_v48 = vld [vmem:[#allocation14 + $0x20] sm:$0xf] }
 0x35b   :  { %v2776_v15 = vpop.f32.mrf.mxu2 }
 0x35c   :  { %v2838_v6 = vsel %vm2837_vm6, %v2776_v15, -inf }
 0x35d   :  { %2839 = vmax.xlane.f32.xlu0 %v2838_v6  ;;  %v4495_v6 = vld [vmem:[#allocation12] sm:$0xff] }
 0x363   :  { %v2778_v36 = vpop.f32.mrf.mxu2  ;;  %v2795_v10 = vpop.f32.mrf.mxu3 }
 0x364   :  { %v2841_v16 = vsel %vm2837_vm6, %v2795_v10, -inf }
 0x365   :  { %2842 = vmax.xlane.f32.xlu0 %v2841_v16 }
 0x36b   :  { %v2797_v33 = vpop.f32.mrf.mxu3  ;;  %v2814_v34 = vpop.f32.mrf.mxu2 }
 0x36c   :  { %v2844_v35 = vsel %vm2837_vm6, %v2814_v34, -inf }
 0x36d   :  { %2845 = vmax.xlane.f32.xlu1 %v2844_v35 }
 0x373   :  { %v2816_v18 = vpop.f32.mrf.mxu2  ;;  %v2833_v55 = vpop.f32.mrf.mxu3 }
 0x374   :  { %v2847_v29 = vsel %vm2837_vm6, %v2833_v55, -inf  ;;  %v4508_v18 = vld [vmem:[%s5557_s15 + $0x28] sm:$0xff] }
 0x375   :  { %2848 = vmax.xlane.f32.xlu1 %v2847_v29 }
 0x37b   :  { %v2835_v31 = vpop.f32.mrf.mxu3 }
 0x3d0   :  { %v2840_v60 = vpop.xlane.xlu0 %2839 }
 0x3d1   :  { %v2850_v40 = vsub.f32 %v2776_v15, %v2840_v60  ;;  %v4496_v15 = vld [vmem:[#allocation12 + $0x8] sm:$0xff] }
 0x3d2   :  { %3030 = vmatpush.bf16.msra.mxu0 %v4496_v15  ;;  %v4516_v15 = vld [vmem:[#allocation14 + $0x24] sm:$0xf0] }
 0x3d3   :  { %v2854_v41 = vmul.f32 1.442695, %v2850_v40 }
 0x3d5   :  { %4557 = vpow2.f32 %v2854_v41 }
 0x3d6   :  { %3031 = vmatpush.bf16.msra.mxu0 %v4495_v6  ;;  %v4264_v6 = vor.u32 %v4516_v15, %v4263_v48 }
 0x3d8   :  { %v2843_v52 = vpop.xlane.xlu0 %2842 }
 0x3d9   :  { %v2851_v57 = vsub.f32 %v2795_v10, %v2843_v52  ;;  %v4510_v10 = vld [vmem:[%s5557_s15 + $0x38] sm:$0xff]  ;;  %v4507_v52 = vld [vmem:[%s5557_s15 + $0x20] sm:$0xff] }
 0x3da   :  { %3129 = vmatpush.bf16.msra.mxu1 %v4510_v10  ;;  %v4514_v10 = vld [vmem:[#allocation14 + $0x14] sm:$0xf0] }
 0x3db   :  { %v4558_v4 = vpop.eup %4557  ;;  %v2856_v42 = vmul.f32 1.442695, %v2851_v57  ;;  %v4506_v57 = vld [vmem:[%s5557_s15 + $0x18] sm:$0xff] }
 0x3dc   :  { %v2862_v24 = vsel %vm2837_vm6, %v4558_v4, 0.0 }
 0x3dd   :  { %4559 = vpow2.f32 %v2856_v42  ;;  %2863 = vadd.xlane.f32.xlu2 %v2862_v24  ;;  %v4504_v42 = vld [vmem:[%s5557_s15 + $0x8] sm:$0xff]  ;;  %v4503_v24 = vld [vmem:[%s5557_s15] sm:$0xff] }
 0x3e0   :  { %v2846_v5 = vpop.xlane.xlu1 %2845 }
 0x3e1   :  { %v2852_v21 = vsub.f32 %v2814_v34, %v2846_v5  ;;  %v4509_v34 = vld [vmem:[%s5557_s15 + $0x30] sm:$0xff]  ;;  %v4539_v5 = vld [vmem:[%s5556_s14] ss:$0 sm:$0xff] }
 0x3e2   :  { %3130 = vmatpush.bf16.msra.mxu1 %v4509_v34  ;;  %v4247_v34 = vld [vmem:[#allocation14] sm:$0xf] }
 0x3e3   :  { %v4560_v44 = vpop.eup %4559  ;;  %v2858_v23 = vmul.f32 1.442695, %v2852_v21 }
 0x3e4   :  { %v2865_v32 = vsel %vm2837_vm6, %v4560_v44, 0.0 }
 0x3e5   :  { %4561 = vpow2.f32 %v2858_v23  ;;  %2866 = vadd.xlane.f32.xlu2 %v2865_v32  ;;  %v3043_v23 = vmul.f32 0.70710677, %v5443_v53 }
 0x3e6   :  { %3131 = vmatpush.bf16.msra.mxu1 %v4508_v18  ;;  %v4511_v18 = vld [vmem:[#allocation14 + $0x4] sm:$0xf] }
 0x3e8   :  { %v2849_v9 = vpop.xlane.xlu1 %2848 }
 0x3e9   :  { %v2853_v25 = vsub.f32 %v2833_v55, %v2849_v9 }
 0x3ea   :  { %3132 = vmatpush.bf16.msra.mxu1 %v4507_v52 }
 0x3eb   :  { %v4562_v1 = vpop.eup %4561  ;;  %v2860_v43 = vmul.f32 1.442695, %v2853_v25  ;;  %v4573_v25 = vld [vmem:[%s5550_s8] ss:$0 sm:$0xff] }
 0x3ec   :  { %v2868_v56 = vsel %vm2837_vm6, %v4562_v1, 0.0 }
 0x3ed   :  { %4563 = vpow2.f32 %v2860_v43  ;;  %2869 = vadd.xlane.f32.xlu0 %v2868_v56  ;;  %v3044_v56 = vmul.f32 0.70710677, %v5446_v58  ;;  %v3045_v58 = vmul.f32 0.70710677, %v5451_v51  ;;  %v4515_v51 = vld [vmem:[#allocation14 + $0x24] sm:$0xf] }
 0x3ee   :  { %3133 = vmatpush.bf16.msra.mxu1 %v4506_v57 }
 0x3f3   :  { %v4564_v59 = vpop.eup %4563 }
 0x3f4   :  { %v2871_v30 = vsel %vm2837_vm6, %v4564_v59, 0.0 }
 0x3f5   :  { %2872 = vadd.xlane.f32.xlu1 %v2871_v30  ;;  %v4271_v30 = vld [vmem:[#allocation14 + $0x30] sm:$0xf] }
 0x450   :  { %v2864_v62 = vpop.xlane.xlu2 %2863 }
 0x451   :  { %4565 = vrcp.f32 %v2864_v62  ;;  %v4518_v62 = vld [vmem:[#allocation14 + $0x34] sm:$0xf0] }
 0x452   :  { %v4272_v2 = vor.u32 %v4518_v62, %v4271_v30 }
 0x454   :  { %3215 = vmatpush.bf16.msrb.mxu2 %v4272_v2 }
 0x457   :  { %v4566_v54 = vpop.eup %4565 }
 0x458   :  { %v2878_v27 = vmul.f32 %v4566_v54, %v4558_v4  ;;  %v2867_v49 = vpop.xlane.xlu2 %2866  ;;  %v4505_v4 = vld [vmem:[%s5557_s15 + $0x10] sm:$0xff]  ;;  %3216 = vmatpush.bf16.msrb.mxu2 %v4264_v6  ;;  %s4814_s15 = smov [#allocation16]  }
 0x459   :  { %4567 = vrcp.f32 %v2867_v49  ;;  %3134 = vmatpush.bf16.msra.mxu1 %v4505_v4  ;;  %v4273_v54 = vld [vmem:[#allocation14 + $0x38] sm:$0xf0]  ;;  %s3274_s29 = sshll.u32 %s4814_s15, 4  ;;  %s3275_s29 = int_to_ptr.vmem [resolvable:$true] %s3274_s29 }
 0x45a   :  { %v2886_v28 = vpack.c.bf16 %v2878_v27, %v2878_v27  ;;  %2882 = vst.msk [vmem:[#allocation16] sm:$0xff] %vm2837_vm6, %v2878_v27  ;;  %v4276_v49 = vor.u32 %v4517_v22, %v4273_v54 }
 0x45c   :  { %4177 = vmatmul.msk.bf16.vlgmr.msrb.gmra.mxu0 %vm2837_vm6, %v2886_v28  ;;  %3234 = vmatpush.bf16.msrb.mxu3 %v4276_v49 }
 0x45d   :  { %3135 = vmatpush.bf16.msra.mxu1 %v4504_v42 }
 0x45f   :  { %v4568_v13 = vpop.eup %4567 }
 0x460   :  { %v2879_v26 = vmul.f32 %v4568_v13, %v4560_v44  ;;  %v2870_v17 = vpop.xlane.xlu0 %2869 }
 0x461   :  { %4569 = vrcp.f32 %v2870_v17  ;;  %3136 = vmatpush.bf16.msra.mxu1 %v4503_v24 }
 0x462   :  { %2883 = vst.msk [vmem:[#allocation16 + $0x8] sm:$0xff] %vm2837_vm6, %v2879_v26  ;;  %v2887_v38 = vpack.c.bf16 %v2879_v26, %v2879_v26 }
 0x464   :  { %4178 = vmatmul.msk.bf16.vlgmr.msrb.gmra.mxu1 %vm2837_vm6, %v2887_v38  ;;  %v678_v38 = vadd.f32 %v4573_v25, %v5403_v39 }
 0x467   :  { %v4570_v14 = vpop.eup %4569 }
 0x468   :  { %v2880_v19 = vmul.f32 %v4570_v14, %v4562_v1  ;;  %v2873_v47 = vpop.xlane.xlu1 %2872  ;;  %v673_v1 = vadd.f32 %v4573_v25, %v5387_v46  ;;  %v3046_v14 = vmul.f32 0.70710677, %v5454_v61 }
 0x469   :  { %4571 = vrcp.f32 %v2873_v47 }
 0x46a   :  { %2884 = vst.msk [vmem:[#allocation16 + $0x10] sm:$0xff] %vm2837_vm6, %v2880_v19  ;;  %v2888_v3 = vpack.c.bf16 %v2880_v19, %v2880_v19  ;;  %v692_v53 = vadd.f32 %v5373_v45, %v673_v1  ;;  %v697_v19 = vadd.f32 %v5399_v63, %v678_v38 }
 0x46c   :  { %4179 = vmatmul.msk.bf16.vlgmr.msra.gmra.mxu2 %vm2837_vm6, %v2888_v3 }
 0x46f   :  { %v4572_v0 = vpop.eup %4571 }
 0x470   :  { %v2881_v50 = vmul.f32 %v4572_v0, %v4564_v59 }
 0x472   :  { %2885 = vst.msk [vmem:[#allocation16 + $0x18] sm:$0xff] %vm2837_vm6, %v2881_v50  ;;  %v2889_v20 = vpack.c.bf16 %v2881_v50, %v2881_v50 }
 0x474   :  { %4180 = vmatmul.msk.bf16.vlgmr.msra.gmra.mxu3 %vm2837_vm6, %v2889_v20 }
 0x4d9   :  { %v2902_v36 = vpop.f32.mrf.mxu0 }
 0x4e1   :  { %v2904_v16 = vpop.f32.mrf.mxu0  ;;  %v2918_v33 = vpop.f32.mrf.mxu1 }
 0x4e2   :  { %v2970_v35 = vpack.c.bf16 %v2918_v33, %v2902_v36  ;;  %v4265_v36 = vld [vmem:[#allocation14 + $0x28] sm:$0xf0]  ;;  %v4513_v16 = vld [vmem:[#allocation14 + $0x14] sm:$0xf]  ;;  %v4257_v33 = vld [vmem:[#allocation14 + $0x18] sm:$0xf0] }
 0x4e3   :  { %v4268_v39 = vor.u32 %v4515_v51, %v4265_v36  ;;  %v4260_v63 = vor.u32 %v4513_v16, %v4257_v33 }
 0x4e4   :  { %3032 = vmatmul.bf16.vlgmr.msra.gmra.mxu0 %v2970_v35  ;;  %v4512_v35 = vld [vmem:[#allocation14 + $0x4] sm:$0xf0] }
 0x4e5   :  { %3235 = vmatpush.bf16.msrb.mxu3 %v4268_v39 }
 0x4e9   :  { %v2920_v55 = vpop.f32.mrf.mxu1  ;;  %3236 = vmatpush.bf16.msrb.mxu3 %v4260_v63 }
 0x4ea   :  { %v4248_v55 = vor.u32 %v4512_v35, %v4247_v34 }
 0x4ef   :  { %v2934_v29 = vpop.f32.mrf.mxu2 }
 0x4f7   :  { %v2936_v31 = vpop.f32.mrf.mxu2  ;;  %v2950_v60 = vpop.f32.mrf.mxu3 }
 0x4f8   :  { %v2971_v40 = vpack.c.bf16 %v2950_v60, %v2934_v29  ;;  %v4249_v29 = vld [vmem:[#allocation14 + $0x8] sm:$0xf0] }
 0x4f9   :  { %v4252_v31 = vor.u32 %v4511_v18, %v4249_v29 }
 0x4fa   :  { %3037 = vmatmul.bf16.gmra.mxu0 %v2971_v40  ;;  %v4540_v40 = vld [vmem:[%s5558_s16] ss:$0 sm:$0xff]  ;;  %s3276_s16 = sshll.u32 %s5562_s20, 4  ;;  %s3277_s16 = int_to_ptr.hbm [resolvable:$true] %s3276_s16 }
 0x4fb   :  { %3237 = vmatpush.bf16.msrb.mxu3 %v4252_v31  ;;  %3282 = dma.vmem_to_hbm [thread:$0]  %s3275_s29, 512, %s3277_s16, [#allocation17], %s4806_s30, %s4806_s30, %s4807_s5  }
 0x4ff   :  { %v2952_v41 = vpop.f32.mrf.mxu3 }
 0x561   :  { %v3033_v21 = vpop.f32.mrf.mxu0 }
 0x562   :  { %v3034_v44 = vadd.f32 %v4539_v5, %v3033_v21 }
 0x564   :  { %v3047_v32 = vadd.f32 %v3043_v23, %v3034_v44  ;;  %v3158_v23 = vld [vmem:[%s5560_s18] sm:$0x3]  ;;  %s4815_s18 = smov [#allocation15]  }
 0x565   :  { %s3261_s20 = sshll.u32 %s4815_s18, 4  ;;  %s3262_s20 = int_to_ptr.vmem [resolvable:$true] %s3261_s20 }
 0x566   :  { %v3051_v9 = vadd.f32 %v3047_v32, %v5377_v37  ;;  %v3160_v32 = vperm.slane %v3158_v23, 0 }
 0x568   :  { %v3055_v28 = vmul.f32 0.70710677, %v3051_v9  ;;  %v3161_v9 = vperm.slane %v3158_v23, 1 }
 0x569   :  { %v3035_v43 = vpop.f32.mrf.mxu0 }
 0x56a   :  { %v3036_v59 = vadd.f32 %v4539_v5, %v3035_v43 }
 0x56c   :  { %v3048_v27 = vadd.f32 %v3044_v56, %v3036_v59 }
 0x56e   :  { %v3052_v37 = vadd.f32 %v3048_v27, %v692_v53 }
 0x570   :  { %v3056_v11 = vmul.f32 0.70710677, %v3052_v37 }
 0x572   :  { %v3075_v8 = vpack.c.bf16 %v3056_v11, %v3055_v28 }
 0x574   :  { %3137 = vmatmul.bf16.vlgmr.msra.gmra.mxu1 %v3075_v8 }
 0x577   :  { %v3038_v46 = vpop.f32.mrf.mxu0 }
 0x578   :  { %v3039_v13 = vadd.f32 %v4539_v5, %v3038_v46 }
 0x57a   :  { %v3049_v26 = vadd.f32 %v3045_v58, %v3039_v13 }
 0x57c   :  { %v3053_v17 = vadd.f32 %v3049_v26, %v5397_v12  ;;  %v4255_v12 = vld [vmem:[#allocation14 + $0x10] sm:$0xf] }
 0x57d   :  { %v4256_v61 = vor.u32 %v4514_v10, %v4255_v12 }
 0x57e   :  { %v3057_v0 = vmul.f32 0.70710677, %v3053_v17 }
 0x57f   :  { %v3040_v7 = vpop.f32.mrf.mxu0  ;;  %3217 = vmatpush.bf16.msrb.mxu2 %v4256_v61 }
 0x580   :  { %v3041_v45 = vadd.f32 %v4539_v5, %v3040_v7 }
 0x582   :  { %v3050_v47 = vadd.f32 %v3046_v14, %v3041_v45 }
 0x583   :  { %3218 = vmatpush.bf16.msrb.mxu2 %v4248_v55 }
 0x584   :  { %v3054_v3 = vadd.f32 %v3050_v47, %v697_v19 }
 0x586   :  { %v3058_v50 = vmul.f32 0.70710677, %v3054_v3 }
 0x588   :  { %v3076_v20 = vpack.c.bf16 %v3058_v50, %v3057_v0 }
 0x58a   :  { %3142 = vmatmul.bf16.gmra.mxu1 %v3076_v20 }
 0x5f1   :  { %v3138_v60 = vpop.f32.mrf.mxu1 }
 0x5f2   :  { %v3139_v52 = vadd.f32 %v4540_v40, %v3138_v60 }
 0x5f9   :  { %v3140_v41 = vpop.f32.mrf.mxu1 }
 0x5fa   :  { %v3141_v57 = vadd.f32 %v4540_v40, %v3140_v41 }
 0x5fc   :  { %v3156_v4 = vpack.c.bf16 %v3141_v57, %v3139_v52 }
 0x5fe   :  { %4277 = vmatmul.msk.bf16.vlgmr.msrb.gmra.mxu2 %vm3204_vm7, %v3156_v4  ;;  %4279 = vmatmul.msk.bf16.vlgmr.msrb.gmra.mxu3 %vm3204_vm7, %v3156_v4 }
 0x607   :  { %v3143_v42 = vpop.f32.mrf.mxu1 }
 0x608   :  { %v3144_v5 = vadd.f32 %v4540_v40, %v3143_v42 }
 0x60f   :  { %v3145_v24 = vpop.f32.mrf.mxu1 }
 0x610   :  { %v3146_v21 = vadd.f32 %v4540_v40, %v3145_v24 }
 0x612   :  { %v3157_v44 = vpack.c.bf16 %v3146_v21, %v3144_v5 }
 0x614   :  { %4278 = vmatmul.msk.bf16.gmra.mxu2 %vm3204_vm7, %v3157_v44  ;;  %4280 = vmatmul.msk.bf16.gmra.mxu3 %vm3204_vm7, %v3157_v44 }
 0x681   :  { %v3220_v25 = vpop.f32.mrf.mxu2  ;;  %v3239_v1 = vpop.f32.mrf.mxu3 }
 0x682   :  { %v3221_v43 = vadd.f32 %v3220_v25, %v3160_v32  ;;  %v3240_v56 = vadd.f32 %v3239_v1, %v3161_v9 }
 0x684   :  { %3249 = vst [vmem:[#allocation15] sm:$0xff] %v3221_v43 }
 0x685   :  { %3250 = vst [vmem:[#allocation15 + $0x8] sm:$0xff] %v3240_v56 }
 0x689   :  { %v3222_v59 = vpop.f32.mrf.mxu2  ;;  %v3241_v30 = vpop.f32.mrf.mxu3 }
 0x68a   :  { %v3223_v62 = vadd.f32 %v3222_v59, %v3160_v32  ;;  %v3242_v22 = vadd.f32 %v3241_v30, %v3161_v9 }
 0x68c   :  { %3251 = vst [vmem:[#allocation15 + $0x10] sm:$0xff] %v3223_v62 }
 0x68d   :  { %3252 = vst [vmem:[#allocation15 + $0x18] sm:$0xff] %v3242_v22 }
 0x697   :  { %v3225_v2 = vpop.f32.mrf.mxu2  ;;  %v3244_v54 = vpop.f32.mrf.mxu3 }
 0x698   :  { %v3226_v53 = vadd.f32 %v3225_v2, %v3160_v32  ;;  %v3245_v27 = vadd.f32 %v3244_v54, %v3161_v9 }
 0x69a   :  { %3253 = vst [vmem:[#allocation15 + $0x20] sm:$0xff] %v3226_v53 }
 0x69b   :  { %3254 = vst [vmem:[#allocation15 + $0x28] sm:$0xff] %v3245_v27 }
 0x69f   :  { %v3227_v49 = vpop.f32.mrf.mxu2  ;;  %v3246_v37 = vpop.f32.mrf.mxu3 }
 0x6a0   :  { %v3228_v28 = vadd.f32 %v3227_v49, %v3160_v32  ;;  %v3247_v11 = vadd.f32 %v3246_v37, %v3161_v9 }
 0x6a2   :  { %3255 = vst [vmem:[#allocation15 + $0x30] sm:$0xff] %v3228_v28 }
 0x6a3   :  { %3256 = vst [vmem:[#allocation15 + $0x38] sm:$0xff] %v3247_v11 }
 0x6a4   :  { %3269 = dma.vmem_to_hbm [thread:$0]  %s3262_s20, 1024, %s3264_s21, [#allocation5], %s4816_s6, %s4816_s6, %s4817_s1  }
 0x6a5   :  { %4798 = dma.done.wait [#allocation5], 1024  }
 0x6a6   :  { %4799 = vsyncadd [#allocation5], 4294966272 }
 0x6a7   :  { %4800 = dma.done.wait [#allocation17], 512  }
 0x6a8   :  { %4801 = vsyncadd [#allocation17], 4294966784 }
 0x6a9   :  { %3291 = vsyncpa [#allocation4], 1 }
 0x6aa   :  { %3292 = vsyncpa [#allocation7], 1 }
 0x6ab   :  { %3293 = vsyncpa [#allocation10], 1 }
 0x6ac   :  { %3294 = vsyncpa [#allocation13], 1 }
 0x6ad   :  { %3295 = vsyncpa [#allocation5], 1 }
 0x6ae   :  { %3296 = vsyncpa [#allocation17], 1 }

</bundles_post_ra>
